<compile_context>
chip_gen: v6e
topology: v6e:2x2x1
jax: 0.10.0
libtpu: 0.0.40
codegen_flags: <defaults>
</compile_context>

<pallas_src>
import functools

import jax
import jax.numpy as jnp
import numpy as np
from jax.experimental import pallas as pl
from jax.experimental.pallas import tpu as pltpu


def _round_up(x, m):
    return ((x + m - 1) // m) * m


def _lrp_conv_relu_kernel(w_ref, rk_ref, ak_ref, aj_ref, out_ref,
                          spad_ref, acc_ref, *,
                          e, K, q, Hi, Wi, Ho, Wo, Cout, Cin, Hpad, Wpad,
                          mm_dtype, approx_recip):
    """One batch element per grid step (grid axis is 'parallel', megacore-safe).

    w_ref   : (K, K*Cout, Cin)   flipped, kh-stacked weight in mm_dtype:
              w_ref[kw, kh*Cout + co, ci] = W[co, ci, K-1-kh, K-1-kw]
    rk_ref  : (1, Ho, Wo, Cout)  relevance at the layer output
    ak_ref  : (1, Ho, Wo, Cout)  layer (pre-ReLU) output activations
    aj_ref  : (1, Hi, Wi, Cin)   layer input activations
    out_ref : (1, Hi, Wi, Cin)   relevance at the layer input (rJ)
    spad_ref: (Hpad, Wpad, Cout) mm_dtype scratch: stabilized relevance s at
              rows [q, q+Ho), cols [0, Wo); zero everywhere else.
    acc_ref : (Hi, Wpad, Cin)    f32 accumulator for the backward conv.
    """
    ak = ak_ref[0].astype(jnp.float32)
    rk = rk_ref[0].astype(jnp.float32)

    # LRP-epsilon stabilized division (sign(0) -> +1, as in ISNet).
    denom = ak + jnp.float32(e) * jnp.where(ak >= 0, jnp.float32(1.0),
                                            jnp.float32(-1.0))
    if approx_recip:
        s = rk * pl.reciprocal(denom, approx=True)   # EUP slot, ~free
    else:
        s = rk / denom

    # Refresh the thin zero border of the padded scratch, then store s.  Every
    # element the matmuls read is rewritten each step, so this is correct even
    # when the batch axis is split across TensorCores (per-core scratch) and
    # regardless of grid execution order.
    if q > 0:
        spad_ref[0:q, :, :] = jnp.zeros((q, Wpad, Cout), mm_dtype)
    if Hpad > q + Ho:
        spad_ref[q + Ho:Hpad, :, :] = jnp.zeros((Hpad - q - Ho, Wpad, Cout),
                                                mm_dtype)
    if Wpad > Wo:
        spad_ref[q:q + Ho, Wo:Wpad, :] = jnp.zeros((Ho, Wpad - Wo, Cout),
                                                   mm_dtype)
    # Single cast (review #3); W offset 0 -> sublane aligned store.
    spad_ref[q:q + Ho, :Wo, :] = s.astype(mm_dtype)

    # kh-fused im2col, built once and reused by all K kw matmuls: channel
    # index = kh*Cout + co, matching the weight stacking above.  The reshape
    # is a layout no-op because Wpad % 8 == 0.
    lhs = jnp.concatenate([spad_ref[kh:kh + Hi, :, :] for kh in range(K)],
                          axis=-1)
    lhs = lhs.reshape(Hi * Wpad, K * Cout)

    # One MXU matmul of contraction depth K*Cout per kw (review #1); the W
    # shift of each kw tap is applied to the narrower (Cin-wide) f32 result
    # with pltpu.roll (review #6): wrapped-around columns only land in the
    # discarded cols >= Wi, and the right zero pad supplies the halo.  K
    # accumulator updates total (review #2).
    for kw in range(K):
        contrib = jnp.dot(lhs, w_ref[kw],
                          preferred_element_type=jnp.float32)
        contrib = contrib.reshape(Hi, Wpad, Cin)      # layout no-op (Wpad%8==0)
        shift = (q - kw) % Wpad
        if shift != 0:
            contrib = pltpu.roll(contrib, shift=shift, axis=1)
        if kw == 0:
            acc_ref[...] = contrib                    # skip separate zero-init
        else:
            acc_ref[...] += contrib

    # rJ = aJ * c   (drop the padded columns).
    c = acc_ref[:, :Wi, :]
    out_ref[0] = (aj_ref[0].astype(jnp.float32) * c).astype(out_ref.dtype)


def lrp_conv_relu_nhwc(rK, aJ, aK, weight, *, e, padding,
                       mm_dtype=jnp.bfloat16, approx_recip=True):
    """LRP-eps propagation through Conv2d(+ReLU).  NHWC activations, OIHW weight.

    Precision note: the default fast path (mm_dtype=bf16, approx_recip=True)
    uses the EUP approximate reciprocal (~2^-12 relative error in s, amplified
    where |aK| ~ e) and bf16 MXU inputs — fine for heatmaps.  Callers relying
    on strict LRP relevance conservation should pass approx_recip=False and
    mm_dtype=jnp.float32 (exact path, validated tightly below).
    """
    B, Ho, Wo, Cout = rK.shape
    B2, Hi, Wi, Cin = aJ.shape
    K = weight.shape[-1]
    p = int(padding)
    q = K - 1 - p
    assert 0 <= p <= K - 1, "padding must be in [0, kernel_size - 1]"
    assert aK.shape == rK.shape and B2 == B
    assert weight.shape == (Cout, Cin, K, K)
    assert Ho == Hi + 2 * p - K + 1 and Wo == Wi + 2 * p - K + 1, \
        "stride-1, dilation-1, groups-1 conv only"
    assert e > 0, "epsilon stabilizer must be > 0"

    # Padded-scratch geometry: s sits at rows [q, q+Ho), cols [0, Wo).  The
    # right zero pad supplies the W halo (via roll wrap-around) and makes Wpad
    # a multiple of 8 so rolls / reshapes stay layout friendly.  Note
    # Wo + q == Wi + p, so one bound covers both wrap and overshoot.
    Hpad = Hi + K - 1
    Wpad = _round_up(Wi + p, 8)

    # Glue (weights only, negligible): flip spatially, stack kh into the
    # contraction axis: w[kw, kh*Cout + co, ci] = W[co, ci, K-1-kh, K-1-kw].
    wf = jnp.transpose(weight[:, :, ::-1, ::-1], (3, 2, 0, 1))   # (kw,kh,O,I)
    wf = wf.reshape(K, K * Cout, Cin).astype(mm_dtype)

    kernel = functools.partial(
        _lrp_conv_relu_kernel, e=float(e), K=K, q=q,
        Hi=Hi, Wi=Wi, Ho=Ho, Wo=Wo, Cout=Cout, Cin=Cin,
        Hpad=Hpad, Wpad=Wpad, mm_dtype=mm_dtype, approx_recip=approx_recip)

    def nbytes(shape, dtype):
        return int(np.prod(shape)) * jnp.dtype(dtype).itemsize

    def vmem_budget(w_bufs):
        # Actual per-step footprint: double-buffered activation blocks,
        # w_bufs-deep weight block, scratch, plus the in-kernel temporaries
        # (fused lhs, matmul result + rolled copy, s) and Mosaic headroom.
        blocks = (2 * nbytes((1, Ho, Wo, Cout), rK.dtype)
                  + 2 * nbytes((1, Ho, Wo, Cout), aK.dtype)
                  + 2 * nbytes((1, Hi, Wi, Cin), aJ.dtype)
                  + 2 * nbytes((1, Hi, Wi, Cin), aJ.dtype)
                  + w_bufs * nbytes((K, K * Cout, Cin), mm_dtype))
        scratch = (nbytes((Hpad, Wpad, Cout), mm_dtype)
                   + nbytes((Hi, Wpad, Cin), jnp.float32))
        temps = (nbytes((Hi, Wpad, K * Cout), mm_dtype)
                 + 2 * nbytes((Hi, Wpad, Cin), jnp.float32)
                 + nbytes((Ho, Wo, Cout), jnp.float32))
        need = blocks + scratch + temps + (4 << 20)
        try:
            cap = int(pltpu.get_tpu_info().vmem_capacity_bytes)
        except Exception:
            cap = 64 * 1024 * 1024
        return int(min(max(need, 16 << 20), int(0.85 * cap)))

    def build(w_spec, w_bufs):
        return pl.pallas_call(
            kernel,
            out_shape=jax.ShapeDtypeStruct((B, Hi, Wi, Cin), aJ.dtype),
            grid_spec=pltpu.PrefetchScalarGridSpec(
                num_scalar_prefetch=0,
                grid=(B,),
                in_specs=[
                    w_spec,
                    pl.BlockSpec((1, Ho, Wo, Cout), lambda b: (b, 0, 0, 0)),
                    pl.BlockSpec((1, Ho, Wo, Cout), lambda b: (b, 0, 0, 0)),
                    pl.BlockSpec((1, Hi, Wi, Cin), lambda b: (b, 0, 0, 0)),
                ],
                out_specs=pl.BlockSpec((1, Hi, Wi, Cin), lambda b: (b, 0, 0, 0)),
                scratch_shapes=[
                    pltpu.VMEM((Hpad, Wpad, Cout), mm_dtype),   # padded s
                    pltpu.VMEM((Hi, Wpad, Cin), jnp.float32),   # accumulator
                ],
            ),
            compiler_params=pltpu.CompilerParams(
                dimension_semantics=("parallel",),
                vmem_limit_bytes=vmem_budget(w_bufs)),
        )

    try:
        # Constant weight block -> single-buffered (review #7): saves one full
        # weight copy of VMEM, which matters against v7x's 64 MiB per core.
        w_spec = pl.BlockSpec((K, K * Cout, Cin), lambda b: (0, 0, 0),
                              pipeline_mode=pl.Buffered(1))
        return build(w_spec, 1)(wf, rK, aK, aJ)
    except Exception:
        # Stricter Pallas versions: fall back to the default 2-deep pipeline
        # (the weight block index never changes, so it is not re-fetched).
        w_spec = pl.BlockSpec((K, K * Cout, Cin), lambda b: (0, 0, 0))
        return build(w_spec, 2)(wf, rK, aK, aJ)


def lrp_conv_relu_nchw(rK, aJ, aK, weight, *, e, padding,
                       mm_dtype=jnp.bfloat16, approx_recip=True):
    """PyTorch-layout (NCHW) convenience wrapper.  NHWC-native callers should
    call `lrp_conv_relu_nhwc` directly and skip these four layout transposes."""
    out = lrp_conv_relu_nhwc(
        jnp.transpose(rK, (0, 2, 3, 1)),
        jnp.transpose(aJ, (0, 2, 3, 1)),
        jnp.transpose(aK, (0, 2, 3, 1)),
        weight, e=e, padding=padding,
        mm_dtype=mm_dtype, approx_recip=approx_recip)
    return jnp.transpose(out, (0, 3, 1, 2))


def _reference_nchw(rK, aJ, aK, weight, *, e, padding):
    """Pure-JAX f32 reference: same LRP-eps rule via jax.vjp of the conv."""
    def conv_fwd(x):
        return jax.lax.conv_general_dilated(
            x, weight, window_strides=(1, 1),
            padding=((padding, padding), (padding, padding)),
            dimension_numbers=("NCHW", "OIHW", "NCHW"))

    sign = jnp.where(aK >= 0, 1.0, -1.0).astype(aK.dtype)
    s = rK / (aK + e * sign)
    _, vjp = jax.vjp(conv_fwd, aJ)
    (c,) = vjp(s)
    return aJ * c


def _run_case(name, *, B, Cin, Cout, H, W, K, PAD, key, run_fast):
    E = 1e-2
    k_w, k_b, k_aj, k_rk = jax.random.split(key, 4)
    weight = 0.1 * jax.random.normal(k_w, (Cout, Cin, K, K), jnp.float32)  # OIHW
    bias = 0.1 * jax.random.normal(k_b, (Cout,), jnp.float32)

    aJ = jax.random.normal(k_aj, (B, Cin, H, W), jnp.float32)              # conv input
    aK = jax.lax.conv_general_dilated(
        aJ, weight, window_strides=(1, 1), padding=((PAD, PAD), (PAD, PAD)),
        dimension_numbers=("NCHW", "OIHW", "NCHW")) + bias[None, :, None, None]
    rK = jax.random.normal(k_rk, aK.shape, jnp.float32)                    # output relevance

    rJ_ref = np.asarray(_reference_nchw(rK, aJ, aK, weight, e=E, padding=PAD))

    # Exact path: f32 MXU + exact division -> tight tolerance.
    rJ = lrp_conv_relu_nchw(rK, aJ, aK, weight, e=E, padding=PAD,
                            mm_dtype=jnp.float32, approx_recip=False)
    rJ = np.asarray(jax.block_until_ready(rJ))
    np.testing.assert_allclose(rJ, rJ_ref, rtol=1e-4, atol=1e-3,
                               err_msg=f"exact path mismatch: {name}")

    if run_fast:
        # Fast path: bf16 MXU + EUP approx reciprocal, NHWC-native entry point.
        to_nhwc = lambda x: jnp.transpose(x, (0, 2, 3, 1))
        rJ_fast = lrp_conv_relu_nhwc(to_nhwc(rK), to_nhwc(aJ), to_nhwc(aK),
                                     weight, e=E, padding=PAD)
        rJ_fast = np.asarray(jax.block_until_ready(rJ_fast))
        rJ_fast = np.transpose(rJ_fast, (0, 3, 1, 2))
        rel = np.linalg.norm(rJ_fast - rJ_ref) / np.linalg.norm(rJ_ref)
        assert rel < 5e-2, f"fast path rel_err={rel:.3e}: {name}"


if __name__ == "__main__":
    base = jax.random.PRNGKey(0)
    keys = jax.random.split(base, 4)

    # 1) "same" conv (K=3, pad=1): exact path (tight) + bf16/approx fast path.
    _run_case("same_k3_p1", B=2, Cin=4, Cout=8, H=16, W=16, K=3, PAD=1,
              key=keys[0], run_fast=True)
    # 2) valid conv (pad=0, q=K-1) with a non-multiple-of-8 output width (14).
    _run_case("valid_k3_p0", B=1, Cin=4, Cout=8, H=16, W=16, K=3, PAD=0,
              key=keys[1], run_fast=False)
    # 3) full padding (pad=K-1, q=0), Cout < Cin.
    _run_case("full_k3_p2", B=1, Cin=8, Cout=4, H=12, W=12, K=3, PAD=2,
              key=keys[2], run_fast=False)
    # 4) 1x1 conv (DenseNet transition layers).
    _run_case("conv1x1", B=1, Cin=8, Cout=4, H=16, W=16, K=1, PAD=0,
              key=keys[3], run_fast=False)

    print("KERNEL_OK")
</pallas_src>

<mosaic_0001>
module attributes {stable_mosaic.version = 11 : i64} {
  func.func @_lrp_conv_relu_kernel(%arg0: i32, %arg1: memref<3x24x4xf32, #tpu.memory_space<vmem>>, %arg2: memref<1x16x16x8xf32, #tpu.memory_space<vmem>>, %arg3: memref<1x16x16x8xf32, #tpu.memory_space<vmem>>, %arg4: memref<1x16x16x4xf32, #tpu.memory_space<vmem>>, %arg5: memref<1x16x16x4xf32, #tpu.memory_space<vmem>>, %arg6: memref<18x24x8xf32, #tpu.memory_space<vmem>>, %arg7: memref<16x24x4xf32, #tpu.memory_space<vmem>>) attributes {dimension_semantics = [#tpu.dimension_semantics<parallel>], iteration_bounds = array<i64: 2>, scalar_prefetch = 0 : i64, scratch_operands = 2 : i64, tpu.core_type = #tpu.core_type<tc>, window_params = [{pipeline_mode = #tpu.pipeline_mode<synchronous>, transform_indices = @transform_0, window_bounds = array<i64: 3, 24, 4>}, {transform_indices = @transform_1, window_bounds = array<i64: 1, 16, 16, 8>}, {transform_indices = @transform_2, window_bounds = array<i64: 1, 16, 16, 8>}, {transform_indices = @transform_3, window_bounds = array<i64: 1, 16, 16, 4>}, {transform_indices = @transform_4, window_bounds = array<i64: 1, 16, 16, 4>}]} {
    %c0 = arith.constant 0 : index
    %c0_0 = arith.constant 0 : index
    %c0_1 = arith.constant 0 : index
    %c0_2 = arith.constant 0 : index
    %0 = vector.load %arg3[%c0, %c0_0, %c0_1, %c0_2] : memref<1x16x16x8xf32, #tpu.memory_space<vmem>>, vector<1x16x16x8xf32>
    %1 = vector.shape_cast %0 : vector<1x16x16x8xf32> to vector<16x16x8xf32>
    %c0_3 = arith.constant 0 : index
    %c0_4 = arith.constant 0 : index
    %c0_5 = arith.constant 0 : index
    %c0_6 = arith.constant 0 : index
    %2 = vector.load %arg2[%c0_3, %c0_4, %c0_5, %c0_6] : memref<1x16x16x8xf32, #tpu.memory_space<vmem>>, vector<1x16x16x8xf32>
    %3 = vector.shape_cast %2 : vector<1x16x16x8xf32> to vector<16x16x8xf32>
    %cst = arith.constant 0.000000e+00 : f32
    %4 = vector.broadcast %cst : f32 to vector<16x16x8xf32>
    %5 = arith.cmpf oge, %1, %4 : vector<16x16x8xf32>
    %cst_7 = arith.constant 1.000000e+00 : f32
    %cst_8 = arith.constant -1.000000e+00 : f32
    %6 = vector.broadcast %cst_7 : f32 to vector<16x16x8xf32>
    %7 = vector.broadcast %cst_8 : f32 to vector<16x16x8xf32>
    %8 = arith.select %5, %6, %7 : vector<16x16x8xi1>, vector<16x16x8xf32>
    %cst_9 = arith.constant 0.00999999977 : f32
    %9 = vector.broadcast %cst_9 : f32 to vector<16x16x8xf32>
    %10 = arith.mulf %9, %8 : vector<16x16x8xf32>
    %11 = arith.addf %1, %10 : vector<16x16x8xf32>
    %12 = arith.divf %3, %11 : vector<16x16x8xf32>
    %cst_10 = arith.constant 0.000000e+00 : f32
    %13 = vector.broadcast %cst_10 : f32 to vector<1x24x8xf32>
    %c0_11 = arith.constant 0 : index
    %c0_12 = arith.constant 0 : index
    %c0_13 = arith.constant 0 : index
    %14 = vector.load %arg6[%c0_11, %c0_12, %c0_13] : memref<18x24x8xf32, #tpu.memory_space<vmem>>, vector<1x24x8xf32>
    tpu.vector_store %arg6[%c0_11, %c0_12, %c0_13], %13 {strides = array<i32>} : memref<18x24x8xf32, #tpu.memory_space<vmem>>, vector<1x24x8xf32>,
    %cst_14 = arith.constant 0.000000e+00 : f32
    %15 = vector.broadcast %cst_14 : f32 to vector<1x24x8xf32>
    %c17 = arith.constant 17 : index
    %c0_15 = arith.constant 0 : index
    %c0_16 = arith.constant 0 : index
    %16 = vector.load %arg6[%c17, %c0_15, %c0_16] : memref<18x24x8xf32, #tpu.memory_space<vmem>>, vector<1x24x8xf32>
    tpu.vector_store %arg6[%c17, %c0_15, %c0_16], %15 {strides = array<i32>} : memref<18x24x8xf32, #tpu.memory_space<vmem>>, vector<1x24x8xf32>,
    %cst_17 = arith.constant 0.000000e+00 : f32
    %17 = vector.broadcast %cst_17 : f32 to vector<16x8x8xf32>
    %c1 = arith.constant 1 : index
    %c16 = arith.constant 16 : index
    %c0_18 = arith.constant 0 : index
    %18 = vector.load %arg6[%c1, %c16, %c0_18] : memref<18x24x8xf32, #tpu.memory_space<vmem>>, vector<16x8x8xf32>
    tpu.vector_store %arg6[%c1, %c16, %c0_18], %17 {strides = array<i32>} : memref<18x24x8xf32, #tpu.memory_space<vmem>>, vector<16x8x8xf32>,
    %c1_19 = arith.constant 1 : index
    %c0_20 = arith.constant 0 : index
    %c0_21 = arith.constant 0 : index
    %19 = vector.load %arg6[%c1_19, %c0_20, %c0_21] : memref<18x24x8xf32, #tpu.memory_space<vmem>>, vector<16x16x8xf32>
    tpu.vector_store %arg6[%c1_19, %c0_20, %c0_21], %12 {strides = array<i32>} : memref<18x24x8xf32, #tpu.memory_space<vmem>>, vector<16x16x8xf32>,
    %c0_22 = arith.constant 0 : index
    %c0_23 = arith.constant 0 : index
    %c0_24 = arith.constant 0 : index
    %20 = vector.load %arg6[%c0_22, %c0_23, %c0_24] : memref<18x24x8xf32, #tpu.memory_space<vmem>>, vector<16x24x8xf32>
    %c1_25 = arith.constant 1 : index
    %c0_26 = arith.constant 0 : index
    %c0_27 = arith.constant 0 : index
    %21 = vector.load %arg6[%c1_25, %c0_26, %c0_27] : memref<18x24x8xf32, #tpu.memory_space<vmem>>, vector<16x24x8xf32>
    %c2 = arith.constant 2 : index
    %c0_28 = arith.constant 0 : index
    %c0_29 = arith.constant 0 : index
    %22 = vector.load %arg6[%c2, %c0_28, %c0_29] : memref<18x24x8xf32, #tpu.memory_space<vmem>>, vector<16x24x8xf32>
    %23 = tpu.concatenate %20, %21, %22 in 2 : vector<16x24x8xf32>, vector<16x24x8xf32>, vector<16x24x8xf32> -> vector<16x24x24xf32>
    %24 = vector.shape_cast %23 : vector<16x24x24xf32> to vector<384x24xf32>
    %c0_30 = arith.constant 0 : index
    %c0_31 = arith.constant 0 : index
    %c0_32 = arith.constant 0 : index
    %25 = vector.load %arg1[%c0_30, %c0_31, %c0_32] : memref<3x24x4xf32, #tpu.memory_space<vmem>>, vector<1x24x4xf32>
    %26 = vector.shape_cast %25 : vector<1x24x4xf32> to vector<24x4xf32>
    %cst_33 = arith.constant dense<0.000000e+00> : vector<384x4xf32>
    %27 = tpu.matmul %24, %26, %cst_33 {dimension_numbers = #tpu.dot_dimension_numbers<[1], [0], [0], [1], [0, 0, 1, 1], [], []>} : vector<384x24xf32>, vector<24x4xf32>, vector<384x4xf32> -> vector<384x4xf32>
    %28 = vector.shape_cast %27 : vector<384x4xf32> to vector<16x24x4xf32>
    %c1_i32 = arith.constant 1 : i32
    %29 = tpu.dynamic_rotate %28 by %c1_i32 dim 1 : vector<16x24x4xf32>, i32 -> vector<16x24x4xf32>
    %c0_34 = arith.constant 0 : index
    %c0_35 = arith.constant 0 : index
    %c0_36 = arith.constant 0 : index
    %30 = vector.load %arg7[%c0_34, %c0_35, %c0_36] : memref<16x24x4xf32, #tpu.memory_space<vmem>>, vector<16x24x4xf32>
    tpu.vector_store %arg7[%c0_34, %c0_35, %c0_36], %29 {strides = array<i32>} : memref<16x24x4xf32, #tpu.memory_space<vmem>>, vector<16x24x4xf32>,
    %c1_37 = arith.constant 1 : index
    %c0_38 = arith.constant 0 : index
    %c0_39 = arith.constant 0 : index
    %31 = vector.load %arg1[%c1_37, %c0_38, %c0_39] : memref<3x24x4xf32, #tpu.memory_space<vmem>>, vector<1x24x4xf32>
    %32 = vector.shape_cast %31 : vector<1x24x4xf32> to vector<24x4xf32>
    %cst_40 = arith.constant dense<0.000000e+00> : vector<384x4xf32>
    %33 = tpu.matmul %24, %32, %cst_40 {dimension_numbers = #tpu.dot_dimension_numbers<[1], [0], [0], [1], [0, 0, 1, 1], [], []>} : vector<384x24xf32>, vector<24x4xf32>, vector<384x4xf32> -> vector<384x4xf32>
    %34 = vector.shape_cast %33 : vector<384x4xf32> to vector<16x24x4xf32>
    %c0_41 = arith.constant 0 : index
    %c0_42 = arith.constant 0 : index
    %c0_43 = arith.constant 0 : index
    %35 = vector.load %arg7[%c0_41, %c0_42, %c0_43] : memref<16x24x4xf32, #tpu.memory_space<vmem>>, vector<16x24x4xf32>
    %36 = arith.addf %35, %34 : vector<16x24x4xf32>
    %c0_44 = arith.constant 0 : index
    %c0_45 = arith.constant 0 : index
    %c0_46 = arith.constant 0 : index
    %37 = vector.load %arg7[%c0_44, %c0_45, %c0_46] : memref<16x24x4xf32, #tpu.memory_space<vmem>>, vector<16x24x4xf32>
    tpu.vector_store %arg7[%c0_44, %c0_45, %c0_46], %36 {strides = array<i32>} : memref<16x24x4xf32, #tpu.memory_space<vmem>>, vector<16x24x4xf32>,
    %c2_47 = arith.constant 2 : index
    %c0_48 = arith.constant 0 : index
    %c0_49 = arith.constant 0 : index
    %38 = vector.load %arg1[%c2_47, %c0_48, %c0_49] : memref<3x24x4xf32, #tpu.memory_space<vmem>>, vector<1x24x4xf32>
    %39 = vector.shape_cast %38 : vector<1x24x4xf32> to vector<24x4xf32>
    %cst_50 = arith.constant dense<0.000000e+00> : vector<384x4xf32>
    %40 = tpu.matmul %24, %39, %cst_50 {dimension_numbers = #tpu.dot_dimension_numbers<[1], [0], [0], [1], [0, 0, 1, 1], [], []>} : vector<384x24xf32>, vector<24x4xf32>, vector<384x4xf32> -> vector<384x4xf32>
    %41 = vector.shape_cast %40 : vector<384x4xf32> to vector<16x24x4xf32>
    %c23_i32 = arith.constant 23 : i32
    %42 = tpu.dynamic_rotate %41 by %c23_i32 dim 1 : vector<16x24x4xf32>, i32 -> vector<16x24x4xf32>
    %c0_51 = arith.constant 0 : index
    %c0_52 = arith.constant 0 : index
    %c0_53 = arith.constant 0 : index
    %43 = vector.load %arg7[%c0_51, %c0_52, %c0_53] : memref<16x24x4xf32, #tpu.memory_space<vmem>>, vector<16x24x4xf32>
    %44 = arith.addf %43, %42 : vector<16x24x4xf32>
    %c0_54 = arith.constant 0 : index
    %c0_55 = arith.constant 0 : index
    %c0_56 = arith.constant 0 : index
    %45 = vector.load %arg7[%c0_54, %c0_55, %c0_56] : memref<16x24x4xf32, #tpu.memory_space<vmem>>, vector<16x24x4xf32>
    tpu.vector_store %arg7[%c0_54, %c0_55, %c0_56], %44 {strides = array<i32>} : memref<16x24x4xf32, #tpu.memory_space<vmem>>, vector<16x24x4xf32>,
    %c0_57 = arith.constant 0 : index
    %c0_58 = arith.constant 0 : index
    %c0_59 = arith.constant 0 : index
    %46 = vector.load %arg7[%c0_57, %c0_58, %c0_59] : memref<16x24x4xf32, #tpu.memory_space<vmem>>, vector<16x16x4xf32>
    %c0_60 = arith.constant 0 : index
    %c0_61 = arith.constant 0 : index
    %c0_62 = arith.constant 0 : index
    %c0_63 = arith.constant 0 : index
    %47 = vector.load %arg4[%c0_60, %c0_61, %c0_62, %c0_63] : memref<1x16x16x4xf32, #tpu.memory_space<vmem>>, vector<1x16x16x4xf32>
    %48 = vector.shape_cast %47 : vector<1x16x16x4xf32> to vector<16x16x4xf32>
    %49 = arith.mulf %48, %46 : vector<16x16x4xf32>
    %c0_64 = arith.constant 0 : index
    %c0_65 = arith.constant 0 : index
    %c0_66 = arith.constant 0 : index
    %c0_67 = arith.constant 0 : index
    %50 = vector.load %arg5[%c0_64, %c0_65, %c0_66, %c0_67] : memref<1x16x16x4xf32, #tpu.memory_space<vmem>>, vector<1x16x16x4xf32>
    %51 = vector.shape_cast %50 : vector<1x16x16x4xf32> to vector<16x16x4xf32>
    %52 = vector.shape_cast %49 : vector<16x16x4xf32> to vector<1x16x16x4xf32>
    tpu.vector_store %arg5[%c0_64, %c0_65, %c0_66, %c0_67], %52 {strides = array<i32>} : memref<1x16x16x4xf32, #tpu.memory_space<vmem>>, vector<1x16x16x4xf32>,
    return
  }
  func.func @transform_0(%arg0: i32) -> (i32, i32, i32) {
    %c0_i32 = arith.constant 0 : i32
    %c0_i32_0 = arith.constant 0 : i32
    %c0_i32_1 = arith.constant 0 : i32
    %c0_i32_2 = arith.constant 0 : i32
    return %c0_i32, %c0_i32_0, %c0_i32_1 : i32, i32, i32
  }
  func.func @transform_1(%arg0: i32) -> (i32, i32, i32, i32) {
    %c0_i32 = arith.constant 0 : i32
    %c0_i32_0 = arith.constant 0 : i32
    %c0_i32_1 = arith.constant 0 : i32
    %c0_i32_2 = arith.constant 0 : i32
    return %arg0, %c0_i32, %c0_i32_0, %c0_i32_1 : i32, i32, i32, i32
  }
  func.func @transform_2(%arg0: i32) -> (i32, i32, i32, i32) {
    %c0_i32 = arith.constant 0 : i32
    %c0_i32_0 = arith.constant 0 : i32
    %c0_i32_1 = arith.constant 0 : i32
    %c0_i32_2 = arith.constant 0 : i32
    return %arg0, %c0_i32, %c0_i32_0, %c0_i32_1 : i32, i32, i32, i32
  }
  func.func @transform_3(%arg0: i32) -> (i32, i32, i32, i32) {
    %c0_i32 = arith.constant 0 : i32
    %c0_i32_0 = arith.constant 0 : i32
    %c0_i32_1 = arith.constant 0 : i32
    %c0_i32_2 = arith.constant 0 : i32
    return %arg0, %c0_i32, %c0_i32_0, %c0_i32_1 : i32, i32, i32, i32
  }
  func.func @transform_4(%arg0: i32) -> (i32, i32, i32, i32) {
    %c0_i32 = arith.constant 0 : i32
    %c0_i32_0 = arith.constant 0 : i32
    %c0_i32_1 = arith.constant 0 : i32
    %c0_i32_2 = arith.constant 0 : i32
    return %arg0, %c0_i32, %c0_i32_0, %c0_i32_1 : i32, i32, i32, i32
  }
}

module attributes {stable_mosaic.version = 11 : i64} {
  func.func @_lrp_conv_relu_kernel(%arg0: i32, %arg1: memref<3x24x4xf32, #tpu.memory_space<vmem>>, %arg2: memref<1x16x16x8xf32, #tpu.memory_space<vmem>>, %arg3: memref<1x16x16x8xf32, #tpu.memory_space<vmem>>, %arg4: memref<1x16x16x4xf32, #tpu.memory_space<vmem>>, %arg5: memref<1x16x16x4xf32, #tpu.memory_space<vmem>>, %arg6: memref<18x24x8xf32, #tpu.memory_space<vmem>>, %arg7: memref<16x24x4xf32, #tpu.memory_space<vmem>>) attributes {dimension_semantics = [#tpu.dimension_semantics<parallel>], iteration_bounds = array<i64: 2>, scalar_prefetch = 0 : i64, scratch_operands = 2 : i64, tpu.core_type = #tpu.core_type<tc>, window_params = [{pipeline_mode = #tpu.pipeline_mode<synchronous>, transform_indices = @transform_0, window_bounds = array<i64: 3, 24, 4>}, {transform_indices = @transform_1, window_bounds = array<i64: 1, 16, 16, 8>}, {transform_indices = @transform_2, window_bounds = array<i64: 1, 16, 16, 8>}, {transform_indices = @transform_3, window_bounds = array<i64: 1, 16, 16, 4>}, {transform_indices = @transform_4, window_bounds = array<i64: 1, 16, 16, 4>}]} {
    %c0 = arith.constant 0 : index
    %c0_0 = arith.constant 0 : index
    %c0_1 = arith.constant 0 : index
    %c0_2 = arith.constant 0 : index
    %0 = vector.load %arg3[%c0, %c0_0, %c0_1, %c0_2] : memref<1x16x16x8xf32, #tpu.memory_space<vmem>>, vector<1x16x16x8xf32>
    %1 = vector.shape_cast %0 : vector<1x16x16x8xf32> to vector<16x16x8xf32>
    %c0_3 = arith.constant 0 : index
    %c0_4 = arith.constant 0 : index
    %c0_5 = arith.constant 0 : index
    %c0_6 = arith.constant 0 : index
    %2 = vector.load %arg2[%c0_3, %c0_4, %c0_5, %c0_6] : memref<1x16x16x8xf32, #tpu.memory_space<vmem>>, vector<1x16x16x8xf32>
    %3 = vector.shape_cast %2 : vector<1x16x16x8xf32> to vector<16x16x8xf32>
    %cst = arith.constant 0.000000e+00 : f32
    %4 = vector.broadcast %cst : f32 to vector<16x16x8xf32>
    %5 = arith.cmpf oge, %1, %4 : vector<16x16x8xf32>
    %cst_7 = arith.constant 1.000000e+00 : f32
    %cst_8 = arith.constant -1.000000e+00 : f32
    %6 = vector.broadcast %cst_7 : f32 to vector<16x16x8xf32>
    %7 = vector.broadcast %cst_8 : f32 to vector<16x16x8xf32>
    %8 = arith.select %5, %6, %7 : vector<16x16x8xi1>, vector<16x16x8xf32>
    %cst_9 = arith.constant 0.00999999977 : f32
    %9 = vector.broadcast %cst_9 : f32 to vector<16x16x8xf32>
    %10 = arith.mulf %9, %8 : vector<16x16x8xf32>
    %11 = arith.addf %1, %10 : vector<16x16x8xf32>
    %12 = arith.divf %3, %11 : vector<16x16x8xf32>
    %cst_10 = arith.constant 0.000000e+00 : f32
    %13 = vector.broadcast %cst_10 : f32 to vector<1x24x8xf32>
    %c0_11 = arith.constant 0 : index
    %c0_12 = arith.constant 0 : index
    %c0_13 = arith.constant 0 : index
    %14 = vector.load %arg6[%c0_11, %c0_12, %c0_13] : memref<18x24x8xf32, #tpu.memory_space<vmem>>, vector<1x24x8xf32>
    tpu.vector_store %arg6[%c0_11, %c0_12, %c0_13], %13 {strides = array<i32>} : memref<18x24x8xf32, #tpu.memory_space<vmem>>, vector<1x24x8xf32>,
    %cst_14 = arith.constant 0.000000e+00 : f32
    %15 = vector.broadcast %cst_14 : f32 to vector<1x24x8xf32>
    %c17 = arith.constant 17 : index
    %c0_15 = arith.constant 0 : index
    %c0_16 = arith.constant 0 : index
    %16 = vector.load %arg6[%c17, %c0_15, %c0_16] : memref<18x24x8xf32, #tpu.memory_space<vmem>>, vector<1x24x8xf32>
    tpu.vector_store %arg6[%c17, %c0_15, %c0_16], %15 {strides = array<i32>} : memref<18x24x8xf32, #tpu.memory_space<vmem>>, vector<1x24x8xf32>,
    %cst_17 = arith.constant 0.000000e+00 : f32
    %17 = vector.broadcast %cst_17 : f32 to vector<16x8x8xf32>
    %c1 = arith.constant 1 : index
    %c16 = arith.constant 16 : index
    %c0_18 = arith.constant 0 : index
    %18 = vector.load %arg6[%c1, %c16, %c0_18] : memref<18x24x8xf32, #tpu.memory_space<vmem>>, vector<16x8x8xf32>
    tpu.vector_store %arg6[%c1, %c16, %c0_18], %17 {strides = array<i32>} : memref<18x24x8xf32, #tpu.memory_space<vmem>>, vector<16x8x8xf32>,
    %c1_19 = arith.constant 1 : index
    %c0_20 = arith.constant 0 : index
    %c0_21 = arith.constant 0 : index
    %19 = vector.load %arg6[%c1_19, %c0_20, %c0_21] : memref<18x24x8xf32, #tpu.memory_space<vmem>>, vector<16x16x8xf32>
    tpu.vector_store %arg6[%c1_19, %c0_20, %c0_21], %12 {strides = array<i32>} : memref<18x24x8xf32, #tpu.memory_space<vmem>>, vector<16x16x8xf32>,
    %c0_22 = arith.constant 0 : index
    %c0_23 = arith.constant 0 : index
    %c0_24 = arith.constant 0 : index
    %20 = vector.load %arg6[%c0_22, %c0_23, %c0_24] : memref<18x24x8xf32, #tpu.memory_space<vmem>>, vector<16x24x8xf32>
    %c1_25 = arith.constant 1 : index
    %c0_26 = arith.constant 0 : index
    %c0_27 = arith.constant 0 : index
    %21 = vector.load %arg6[%c1_25, %c0_26, %c0_27] : memref<18x24x8xf32, #tpu.memory_space<vmem>>, vector<16x24x8xf32>
    %c2 = arith.constant 2 : index
    %c0_28 = arith.constant 0 : index
    %c0_29 = arith.constant 0 : index
    %22 = vector.load %arg6[%c2, %c0_28, %c0_29] : memref<18x24x8xf32, #tpu.memory_space<vmem>>, vector<16x24x8xf32>
    %23 = tpu.concatenate %20, %21, %22 in 2 : vector<16x24x8xf32>, vector<16x24x8xf32>, vector<16x24x8xf32> -> vector<16x24x24xf32>
    %24 = vector.shape_cast %23 : vector<16x24x24xf32> to vector<384x24xf32>
    %c0_30 = arith.constant 0 : index
    %c0_31 = arith.constant 0 : index
    %c0_32 = arith.constant 0 : index
    %25 = vector.load %arg1[%c0_30, %c0_31, %c0_32] : memref<3x24x4xf32, #tpu.memory_space<vmem>>, vector<1x24x4xf32>
    %26 = vector.shape_cast %25 : vector<1x24x4xf32> to vector<24x4xf32>
    %cst_33 = arith.constant dense<0.000000e+00> : vector<384x4xf32>
    %27 = tpu.matmul %24, %26, %cst_33 {dimension_numbers = #tpu.dot_dimension_numbers<[1], [0], [0], [1], [0, 0, 1, 1], [], []>} : vector<384x24xf32>, vector<24x4xf32>, vector<384x4xf32> -> vector<384x4xf32>
    %28 = vector.shape_cast %27 : vector<384x4xf32> to vector<16x24x4xf32>
    %c1_i32 = arith.constant 1 : i32
    %29 = tpu.dynamic_rotate %28 by %c1_i32 dim 1 : vector<16x24x4xf32>, i32 -> vector<16x24x4xf32>
    %c0_34 = arith.constant 0 : index
    %c0_35 = arith.constant 0 : index
    %c0_36 = arith.constant 0 : index
    %30 = vector.load %arg7[%c0_34, %c0_35, %c0_36] : memref<16x24x4xf32, #tpu.memory_space<vmem>>, vector<16x24x4xf32>
    tpu.vector_store %arg7[%c0_34, %c0_35, %c0_36], %29 {strides = array<i32>} : memref<16x24x4xf32, #tpu.memory_space<vmem>>, vector<16x24x4xf32>,
    %c1_37 = arith.constant 1 : index
    %c0_38 = arith.constant 0 : index
    %c0_39 = arith.constant 0 : index
    %31 = vector.load %arg1[%c1_37, %c0_38, %c0_39] : memref<3x24x4xf32, #tpu.memory_space<vmem>>, vector<1x24x4xf32>
    %32 = vector.shape_cast %31 : vector<1x24x4xf32> to vector<24x4xf32>
    %cst_40 = arith.constant dense<0.000000e+00> : vector<384x4xf32>
    %33 = tpu.matmul %24, %32, %cst_40 {dimension_numbers = #tpu.dot_dimension_numbers<[1], [0], [0], [1], [0, 0, 1, 1], [], []>} : vector<384x24xf32>, vector<24x4xf32>, vector<384x4xf32> -> vector<384x4xf32>
    %34 = vector.shape_cast %33 : vector<384x4xf32> to vector<16x24x4xf32>
    %c0_41 = arith.constant 0 : index
    %c0_42 = arith.constant 0 : index
    %c0_43 = arith.constant 0 : index
    %35 = vector.load %arg7[%c0_41, %c0_42, %c0_43] : memref<16x24x4xf32, #tpu.memory_space<vmem>>, vector<16x24x4xf32>
    %36 = arith.addf %35, %34 : vector<16x24x4xf32>
    %c0_44 = arith.constant 0 : index
    %c0_45 = arith.constant 0 : index
    %c0_46 = arith.constant 0 : index
    %37 = vector.load %arg7[%c0_44, %c0_45, %c0_46] : memref<16x24x4xf32, #tpu.memory_space<vmem>>, vector<16x24x4xf32>
    tpu.vector_store %arg7[%c0_44, %c0_45, %c0_46], %36 {strides = array<i32>} : memref<16x24x4xf32, #tpu.memory_space<vmem>>, vector<16x24x4xf32>,
    %c2_47 = arith.constant 2 : index
    %c0_48 = arith.constant 0 : index
    %c0_49 = arith.constant 0 : index
    %38 = vector.load %arg1[%c2_47, %c0_48, %c0_49] : memref<3x24x4xf32, #tpu.memory_space<vmem>>, vector<1x24x4xf32>
    %39 = vector.shape_cast %38 : vector<1x24x4xf32> to vector<24x4xf32>
    %cst_50 = arith.constant dense<0.000000e+00> : vector<384x4xf32>
    %40 = tpu.matmul %24, %39, %cst_50 {dimension_numbers = #tpu.dot_dimension_numbers<[1], [0], [0], [1], [0, 0, 1, 1], [], []>} : vector<384x24xf32>, vector<24x4xf32>, vector<384x4xf32> -> vector<384x4xf32>
    %41 = vector.shape_cast %40 : vector<384x4xf32> to vector<16x24x4xf32>
    %c23_i32 = arith.constant 23 : i32
    %42 = tpu.dynamic_rotate %41 by %c23_i32 dim 1 : vector<16x24x4xf32>, i32 -> vector<16x24x4xf32>
    %c0_51 = arith.constant 0 : index
    %c0_52 = arith.constant 0 : index
    %c0_53 = arith.constant 0 : index
    %43 = vector.load %arg7[%c0_51, %c0_52, %c0_53] : memref<16x24x4xf32, #tpu.memory_space<vmem>>, vector<16x24x4xf32>
    %44 = arith.addf %43, %42 : vector<16x24x4xf32>
    %c0_54 = arith.constant 0 : index
    %c0_55 = arith.constant 0 : index
    %c0_56 = arith.constant 0 : index
    %45 = vector.load %arg7[%c0_54, %c0_55, %c0_56] : memref<16x24x4xf32, #tpu.memory_space<vmem>>, vector<16x24x4xf32>
    tpu.vector_store %arg7[%c0_54, %c0_55, %c0_56], %44 {strides = array<i32>} : memref<16x24x4xf32, #tpu.memory_space<vmem>>, vector<16x24x4xf32>,
    %c0_57 = arith.constant 0 : index
    %c0_58 = arith.constant 0 : index
    %c0_59 = arith.constant 0 : index
    %46 = vector.load %arg7[%c0_57, %c0_58, %c0_59] : memref<16x24x4xf32, #tpu.memory_space<vmem>>, vector<16x16x4xf32>
    %c0_60 = arith.constant 0 : index
    %c0_61 = arith.constant 0 : index
    %c0_62 = arith.constant 0 : index
    %c0_63 = arith.constant 0 : index
    %47 = vector.load %arg4[%c0_60, %c0_61, %c0_62, %c0_63] : memref<1x16x16x4xf32, #tpu.memory_space<vmem>>, vector<1x16x16x4xf32>
    %48 = vector.shape_cast %47 : vector<1x16x16x4xf32> to vector<16x16x4xf32>
    %49 = arith.mulf %48, %46 : vector<16x16x4xf32>
    %c0_64 = arith.constant 0 : index
    %c0_65 = arith.constant 0 : index
    %c0_66 = arith.constant 0 : index
    %c0_67 = arith.constant 0 : index
    %50 = vector.load %arg5[%c0_64, %c0_65, %c0_66, %c0_67] : memref<1x16x16x4xf32, #tpu.memory_space<vmem>>, vector<1x16x16x4xf32>
    %51 = vector.shape_cast %50 : vector<1x16x16x4xf32> to vector<16x16x4xf32>
    %52 = vector.shape_cast %49 : vector<16x16x4xf32> to vector<1x16x16x4xf32>
    tpu.vector_store %arg5[%c0_64, %c0_65, %c0_66, %c0_67], %52 {strides = array<i32>} : memref<1x16x16x4xf32, #tpu.memory_space<vmem>>, vector<1x16x16x4xf32>,
    return
  }
  func.func @transform_0(%arg0: i32) -> (i32, i32, i32) {
    %c0_i32 = arith.constant 0 : i32
    %c0_i32_0 = arith.constant 0 : i32
    %c0_i32_1 = arith.constant 0 : i32
    %c0_i32_2 = arith.constant 0 : i32
    return %c0_i32, %c0_i32_0, %c0_i32_1 : i32, i32, i32
  }
  func.func @transform_1(%arg0: i32) -> (i32, i32, i32, i32) {
    %c0_i32 = arith.constant 0 : i32
    %c0_i32_0 = arith.constant 0 : i32
    %c0_i32_1 = arith.constant 0 : i32
    %c0_i32_2 = arith.constant 0 : i32
    return %arg0, %c0_i32, %c0_i32_0, %c0_i32_1 : i32, i32, i32, i32
  }
  func.func @transform_2(%arg0: i32) -> (i32, i32, i32, i32) {
    %c0_i32 = arith.constant 0 : i32
    %c0_i32_0 = arith.constant 0 : i32
    %c0_i32_1 = arith.constant 0 : i32
    %c0_i32_2 = arith.constant 0 : i32
    return %arg0, %c0_i32, %c0_i32_0, %c0_i32_1 : i32, i32, i32, i32
  }
  func.func @transform_3(%arg0: i32) -> (i32, i32, i32, i32) {
    %c0_i32 = arith.constant 0 : i32
    %c0_i32_0 = arith.constant 0 : i32
    %c0_i32_1 = arith.constant 0 : i32
    %c0_i32_2 = arith.constant 0 : i32
    return %arg0, %c0_i32, %c0_i32_0, %c0_i32_1 : i32, i32, i32, i32
  }
  func.func @transform_4(%arg0: i32) -> (i32, i32, i32, i32) {
    %c0_i32 = arith.constant 0 : i32
    %c0_i32_0 = arith.constant 0 : i32
    %c0_i32_1 = arith.constant 0 : i32
    %c0_i32_2 = arith.constant 0 : i32
    return %arg0, %c0_i32, %c0_i32_0, %c0_i32_1 : i32, i32, i32, i32
  }
}

</mosaic_0001>

<bundles_post_ra>
// kernel: tpu_custom_call.1
= control target key start
LH: loop header
LB: loop body
LE: loop exit
PB: predicated region body
PF: predicated region fallthrough
CT: control target
= control target key end

     0   :  { %s3663_s15 = smov 0   ;;  %s5136_s0 = inlined_call_operand.vmem [shape: f32[3,24,4], index: 0, kind: input, shape index: {}]   ;;  %s5137_s1 = inlined_call_operand.vmem [shape: f32[2,16,16,8], index: 1, kind: input, shape index: {}]   ;;  %s5138_s2 = inlined_call_operand.vmem [shape: f32[2,16,16,8], index: 2, kind: input, shape index: {}]   ;;  %s5139_s3 = inlined_call_operand.vmem [shape: f32[2,16,16,4], index: 3, kind: input, shape index: {}]   ;;  %s5140_s4 = inlined_call_operand.vmem [shape: f32[2,16,16,4], index: 4, kind: output, shape index: {}]  }
   0x1 LB: > { %s2988_s16 = sadd.s32 4294967295, %s3632_s15   ;;  %p2992_p0 = scmp.ge.s32.totalorder %s3632_s15, 1  ;;  %s3632_s15 = sphi %s3663_s15, %s14_s15  }
   0x2   : > { %p182_p1 = scmp.lt.s32.totalorder %s3632_s15, 3 }
   0x4   : > { %p183_p2 = pnand %p2992_p0, %p182_p1 }
   0x5   : > { %p218_p3 = scmp.lt.s32.totalorder (!%p183_p2), %s2988_s16, 1  ;;  %s3635_s21 = smov (!%p183_p2), 8  }
   0x6   : > { %186 = sbr.rel (%p183_p2) target bundleno = 648 (0x288), region = 36  ;;  %s3636_s22 = smov (!%p183_p2), 16  }
   0xb   : > { %vm494_vm0 = vcmask 64512   ;;  %v3634_v0 = vmov 0.0   ;;  %s5142_s16 = smov (!%p218_p3, %s2988_s16), 1  ;;  %v3637_v6 = vmov -1.0  }
   0xc   : > { %511 = vst.msk [vmem:[#allocation2 + $0xe8] sm:$0xff] %vm494_vm0, %v3634_v0  ;;  %495 = vst.msk [vmem:[#allocation2] sm:$0xff] %vm494_vm0, %v3634_v0  ;;  %s3697_s17 = sshll.u32 %s5142_s16, 8 }
   0xd   : > { %496 = vst.msk [vmem:[#allocation2 + $0x8] sm:$0xff] %vm494_vm0, %v3634_v0  ;;  %497 = vst.msk [vmem:[#allocation2 + $0x10] sm:$0xff] %vm494_vm0, %v3634_v0  ;;  %s3703_s20 = scalar_lea.vmem %s5138_s2, %s3697_s17  ;;  %s3749_s25 = scalar_lea.vmem %s5137_s1, %s3697_s17 }
   0xe   : > { %499 = vst.msk [vmem:[#allocation2 + $0x198] sm:$0xff] %vm494_vm0, %v3634_v0  ;;  %500 = vst.msk [vmem:[#allocation2 + $0x1a0] sm:$0xff] %vm494_vm0, %v3634_v0  ;;  %v256_v1 = vld [vmem:[%s3703_s20 + $0x90] sm:$0xff]  ;;  %v254_v2 = vld [vmem:[%s3703_s20 + $0x80] sm:$0xff] }
   0xf   : > { %501 = vst.msk [vmem:[#allocation2 + $0x1a8] sm:$0xff] %vm494_vm0, %v3634_v0  ;;  %503 = vst.msk [vmem:[#allocation2 + $0x28] sm:$0xff] %vm494_vm0, %v3634_v0  ;;  %vm320_vm1 = vcmp.ge.f32.partialorder %v256_v1, 0.0  ;;  %vm318_vm2 = vcmp.ge.f32.partialorder %v254_v2, 0.0  ;;  %v257_v12 = vld [vmem:[%s3703_s20 + $0x98] sm:$0xff]  ;;  %v255_v13 = vld [vmem:[%s3703_s20 + $0x88] sm:$0xff] }
  0x10   : > { %504 = vst.msk [vmem:[#allocation2 + $0x40] sm:$0xff] %vm494_vm0, %v3634_v0  ;;  %505 = vst.msk [vmem:[#allocation2 + $0x58] sm:$0xff] %vm494_vm0, %v3634_v0  ;;  %v352_v7 = vsel %vm320_vm1, 1.0, %v3637_v6  ;;  %v350_v8 = vsel %vm318_vm2, 1.0, %v3637_v6  ;;  %vm321_vm3 = vcmp.ge.f32.partialorder %v257_v12, 0.0  ;;  %v238_v14 = vld [vmem:[%s3703_s20] sm:$0xff] }
  0x11   : > { %506 = vst.msk [vmem:[#allocation2 + $0x70] sm:$0xff] %vm494_vm0, %v3634_v0  ;;  %507 = vst.msk [vmem:[#allocation2 + $0x88] sm:$0xff] %vm494_vm0, %v3634_v0  ;;  %v384_v10 = vmul.f32 0.01, %v352_v7  ;;  %v382_v11 = vmul.f32 0.01, %v350_v8 }
  0x12   : > { %508 = vst.msk [vmem:[#allocation2 + $0xa0] sm:$0xff] %vm494_vm0, %v3634_v0  ;;  %509 = vst.msk [vmem:[#allocation2 + $0xb8] sm:$0xff] %vm494_vm0, %v3634_v0  ;;  %v353_v17 = vsel %vm321_vm3, 1.0, %v3637_v6  ;;  %vm319_vm4 = vcmp.ge.f32.partialorder %v255_v13, 0.0  ;;  %v258_v18 = vld [vmem:[%s3703_s20 + $0xa0] sm:$0xff]  ;;  %vm302_vm5 = vcmp.ge.f32.partialorder %v238_v14, 0.0 }
  0x13   : > { %510 = vst.msk [vmem:[#allocation2 + $0xd0] sm:$0xff] %vm494_vm0, %v3634_v0  ;;  %512 = vst.msk [vmem:[#allocation2 + $0x100] sm:$0xff] %vm494_vm0, %v3634_v0  ;;  %v3707_v3 = vld [vmem:[#allocation2 + $0xe8] sm:$0xff]  ;;  %v416_v15 = vadd.f32 %v384_v10, %v256_v1  ;;  %v414_v16 = vadd.f32 %v382_v11, %v254_v2  ;;  %v385_v19 = vmul.f32 0.01, %v353_v17  ;;  %v351_v20 = vsel %vm319_vm4, 1.0, %v3637_v6 }
  0x14   : > { %513 = vst.msk [vmem:[#allocation2 + $0x118] sm:$0xff] %vm494_vm0, %v3634_v0  ;;  %514 = vst.msk [vmem:[#allocation2 + $0x130] sm:$0xff] %vm494_vm0, %v3634_v0  ;;  %796 = vrot.lane.b32.xlu0 %v3707_v3, %s3635_s21  ;;  %vm322_vm6 = vcmp.ge.f32.partialorder %v258_v18, 0.0  ;;  %v239_v21 = vld [vmem:[%s3703_s20 + $0x8] sm:$0xff]  ;;  %v383_v22 = vmul.f32 0.01, %v351_v20 }
  0x15   : > { %515 = vst.msk [vmem:[#allocation2 + $0x148] sm:$0xff] %vm494_vm0, %v3634_v0  ;;  %516 = vst.msk [vmem:[#allocation2 + $0x160] sm:$0xff] %vm494_vm0, %v3634_v0  ;;  %3562 = vrcp.f32 %v416_v15  ;;  %v334_v23 = vsel %vm302_vm5, 1.0, %v3637_v6  ;;  %v354_v24 = vsel %vm322_vm6, 1.0, %v3637_v6  ;;  %v259_v25 = vld [vmem:[%s3703_s20 + $0xa8] sm:$0xff]  ;;  %v417_v26 = vadd.f32 %v385_v19, %v257_v12  ;;  %v240_v29 = vld [vmem:[%s3703_s20 + $0x10] sm:$0xff] }
  0x16   : > { %517 = vst.msk [vmem:[#allocation2 + $0x178] sm:$0xff] %vm494_vm0, %v3634_v0  ;;  %518 = vst.msk [vmem:[#allocation2 + $0x190] sm:$0xff] %vm494_vm0, %v3634_v0  ;;  %3564 = vrcp.f32 %v414_v16  ;;  %v366_v27 = vmul.f32 0.01, %v334_v23  ;;  %v386_v28 = vmul.f32 0.01, %v354_v24  ;;  %v415_v30 = vadd.f32 %v383_v22, %v255_v13 }
  0x17   : > { %v3717_v9 = vld [vmem:[#allocation2 + $0x40] sm:$0xff]  ;;  %vm303_vm7 = vcmp.ge.f32.partialorder %v239_v21, 0.0  ;;  %vm323_vm8 = vcmp.ge.f32.partialorder %v259_v25, 0.0  ;;  %vm304_vm9 = vcmp.ge.f32.partialorder %v240_v29, 0.0  ;;  %v241_v31 = vld [vmem:[%s3703_s20 + $0x18] sm:$0xff]  ;;  %3566 = vrcp.f32 %v417_v26  ;;  %v260_v35 = vld [vmem:[%s3703_s20 + $0xb0] sm:$0xff] }
  0x18   : > { %v398_v32 = vadd.f32 %v366_v27, %v238_v14  ;;  %v418_v33 = vadd.f32 %v386_v28, %v258_v18  ;;  %v335_v34 = vsel %vm303_vm7, 1.0, %v3637_v6  ;;  %v601_v36 = vld [vmem:[#allocation2 + $0x28] sm:$0xff]  ;;  %3568 = vrcp.f32 %v415_v30  ;;  %v242_v40 = vld [vmem:[%s3703_s20 + $0x20] sm:$0xff]  ;;  %v261_v43 = vld [vmem:[%s3703_s20 + $0xb8] sm:$0xff] }
  0x19   : > { %v367_v37 = vmul.f32 0.01, %v335_v34  ;;  %v355_v38 = vsel %vm323_vm8, 1.0, %v3637_v6  ;;  %v336_v39 = vsel %vm304_vm9, 1.0, %v3637_v6  ;;  %vm305_vm10 = vcmp.ge.f32.partialorder %v241_v31, 0.0  ;;  %v243_v50 = vld [vmem:[%s3703_s20 + $0x28] sm:$0xff] }
  0x1a   : > { %v674_v5 = vld [vmem:[#allocation2 + $0x100] sm:$0xff]  ;;  %3570 = vrcp.f32 %v398_v32  ;;  %v387_v41 = vmul.f32 0.01, %v355_v38  ;;  %v368_v42 = vmul.f32 0.01, %v336_v39  ;;  %v337_v45 = vsel %vm305_vm10, 1.0, %v3637_v6 }
  0x1b   : > { %v3709_v4 = vld [vmem:[#allocation2 + $0x118] sm:$0xff]  ;;  %988 = vrot.lane.b32.xlu0 %v674_v5, %s3636_s22  ;;  %3572 = vrcp.f32 %v418_v33  ;;  %v399_v44 = vadd.f32 %v367_v37, %v239_v21  ;;  %vm324_vm11 = vcmp.ge.f32.partialorder %v260_v35, 0.0  ;;  %v369_v48 = vmul.f32 0.01, %v337_v45  ;;  %v262_v52 = vld [vmem:[%s3703_s20 + $0xc0] sm:$0xff]  ;;  %v244_v53 = vld [vmem:[%s3703_s20 + $0x30] sm:$0xff] }
  0x1c   : > { %994 = vrot.lane.b32.xlu1 %v3709_v4, %s3636_s22  ;;  %v419_v46 = vadd.f32 %v387_v41, %v259_v25  ;;  %v400_v47 = vadd.f32 %v368_v42, %v240_v29  ;;  %v356_v49 = vsel %vm324_vm11, 1.0, %v3637_v6  ;;  %vm306_vm12 = vcmp.ge.f32.partialorder %v242_v40, 0.0  ;;  %v263_v60 = vld [vmem:[%s3703_s20 + $0xc8] sm:$0xff]  ;;  %v288_v61 = vld [vmem:[%s3749_s25 + $0x90] sm:$0xff]  ;;  %v286_v62 = vld [vmem:[%s3749_s25 + $0x80] sm:$0xff] }
  0x1d   : > { %3574 = vrcp.f32 %v399_v44  ;;  %v388_v51 = vmul.f32 0.01, %v356_v49  ;;  %vm325_vm13 = vcmp.ge.f32.partialorder %v261_v43, 0.0  ;;  %v401_v54 = vadd.f32 %v369_v48, %v241_v31  ;;  %v245_v10 = vld [vmem:[%s3703_s20 + $0x38] sm:$0xff]  ;;  %v264_v16 = vld [vmem:[%s3703_s20 + $0xd0] sm:$0xff]  ;;  %v287_v18 = vld [vmem:[%s3749_s25 + $0x88] sm:$0xff] }
  0x1e   : > { %3576 = vrcp.f32 %v419_v46  ;;  %v338_v55 = vsel %vm306_vm12, 1.0, %v3637_v6  ;;  %v357_v56 = vsel %vm325_vm13, 1.0, %v3637_v6  ;;  %vm307_vm14 = vcmp.ge.f32.partialorder %v243_v50, 0.0  ;;  %v289_v13 = vld [vmem:[%s3749_s25 + $0x98] sm:$0xff]  ;;  %v270_v22 = vld [vmem:[%s3749_s25] sm:$0xff]  ;;  %v1179_v42 = vld [vmem:[%s5136_s0 + $0x10] sm:$0xff] }
  0x1f   : > { %802 = vrot.lane.b32.xlu0 %v674_v5, %s3635_s21  ;;  %3578 = vrcp.f32 %v400_v47  ;;  %v420_v57 = vadd.f32 %v388_v51, %v260_v35  ;;  %v370_v58 = vmul.f32 0.01, %v338_v55  ;;  %v389_v59 = vmul.f32 0.01, %v357_v56  ;;  %v3769_v26 = vld [vmem:[%s3703_s20 + $0x40] sm:$0xff]  ;;  %v3775_v35 = vld [vmem:[%s3703_s20 + $0xd8] sm:$0xff]  ;;  %3544 = vmatprep.subr.mxu1 %v1179_v42 }
  0x20   : > { %940 = vrot.lane.b32.xlu1 %v3717_v9, %s3636_s22  ;;  %3580 = vrcp.f32 %v401_v54  ;;  %vm326_vm15 = vcmp.ge.f32.partialorder %v262_v52, 0.0  ;;  %vm308_vm1 = vcmp.ge.f32.partialorder %v244_v53, 0.0  ;;  %v339_v1 = vsel %vm307_vm14, 1.0, %v3637_v6  ;;  %v290_v29 = vld [vmem:[%s3749_s25 + $0xa0] sm:$0xff]  ;;  %v291_v44 = vld [vmem:[%s3749_s25 + $0xa8] sm:$0xff]  ;;  %3310 = vmatprep.subr.mxu0 %v1179_v42  ;;  %v272_v49 = vld [vmem:[%s3749_s25 + $0x10] sm:$0xff] }
  0x21   : > { %3582 = vrcp.f32 %v420_v57  ;;  %v402_v63 = vadd.f32 %v370_v58, %v242_v40  ;;  %v421_v0 = vadd.f32 %v389_v59, %v261_v43  ;;  %v371_v5 = vmul.f32 0.01, %v339_v1  ;;  %v3781_v37 = vld [vmem:[%s3703_s20 + $0xe0] sm:$0xff]  ;;  %v271_v40 = vld [vmem:[%s3749_s25 + $0x8] sm:$0xff]  ;;  %3547 = vmatpush3.msra.mxu1 %v1179_v42  ;;  %3311 = vmatpush3.msra.mxu0 %v1179_v42  ;;  %v273_v54 = vld [vmem:[%s3749_s25 + $0x18] sm:$0xff] }
  0x22   : > { %v3563_v2 = vpop.eup %3562  ;;  %v358_v7 = vsel %vm326_vm15, 1.0, %v3637_v6  ;;  %v340_v8 = vsel %vm308_vm1, 1.0, %v3637_v6  ;;  %vm327_vm2 = vcmp.ge.f32.partialorder %v263_v60, 0.0  ;;  %vm309_vm3 = vcmp.ge.f32.partialorder %v245_v10, 0.0  ;;  %v1178_v47 = vld [vmem:[%s5136_s0 + $0x8] sm:$0xff]  ;;  %v1177_v51 = vld [vmem:[%s5136_s0] sm:$0xff] }
  0x23   : > { %748 = vrot.lane.b32.xlu0 %v601_v36, %s3635_s21  ;;  %v3565_v11 = vpop.eup %3564  ;;  %v467_v12 = vmul.f32 %v3563_v2, %v288_v61  ;;  %3584 = vrcp.f32 %v402_v63  ;;  %v390_v14 = vmul.f32 0.01, %v358_v7  ;;  %v372_v15 = vmul.f32 0.01, %v340_v8  ;;  %v3778_v36 = vld [vmem:[%s3703_s20 + $0x48] sm:$0xff]  ;;  %v248_v57 = vld [vmem:[%s3703_s20 + $0x50] sm:$0xff]  ;;  %3545 = vmatprep.subr.mxu1 %v1178_v47 }
  0x24   : > { %v463_v17 = vmul.f32 %v3565_v11, %v286_v62  ;;  %3586 = vrcp.f32 %v421_v0  ;;  %v403_v19 = vadd.f32 %v371_v5, %v243_v50  ;;  %v359_v20 = vsel %vm327_vm2, 1.0, %v3637_v6  ;;  %v3567_v21 = vpop.eup %3566  ;;  %3312 = vmatprep.subr.mxu0 %v1178_v47  ;;  %v292_v61 = vld [vmem:[%s3749_s25 + $0xb0] sm:$0xff]  ;;  %3548 = vmatpush3.msra.mxu1 %v1178_v47  ;;  %v274_v7 = vld [vmem:[%s3749_s25 + $0x20] sm:$0xff]  ;;  %v267_v11 = vld [vmem:[%s3703_s20 + $0xe8] sm:$0xff] }
  0x25   : > { %537 = vst.msk [vmem:[#allocation2 + $0xf0] sm:$0xff] %vm494_vm0, %v467_v12  ;;  %v422_v23 = vadd.f32 %v390_v14, %v262_v52  ;;  %v404_v24 = vadd.f32 %v372_v15, %v244_v53  ;;  %v391_v25 = vmul.f32 0.01, %v359_v20  ;;  %v3569_v27 = vpop.eup %3568  ;;  %v469_v28 = vmul.f32 %v3567_v21, %v289_v13  ;;  %3313 = vmatpush3.msra.mxu0 %v1178_v47  ;;  %v250_v47 = vld [vmem:[%s3703_s20 + $0x60] sm:$0xff] }
  0x26   : > { %535 = vst.msk [vmem:[#allocation2 + $0xd8] sm:$0xff] %vm494_vm0, %v463_v17  ;;  %3588 = vrcp.f32 %v403_v19  ;;  %v341_v30 = vsel %vm309_vm3, 1.0, %v3637_v6  ;;  %vm328_vm4 = vcmp.ge.f32.partialorder %v264_v16, 0.0  ;;  %v465_v32 = vmul.f32 %v3569_v27, %v287_v18  ;;  %3546 = vmatprep.subr.mxu1 %v1177_v51  ;;  %v293_v19 = vld [vmem:[%s3749_s25 + $0xb8] sm:$0xff]  ;;  %3314 = vmatprep.subr.mxu0 %v1177_v51  ;;  %v252_v27 = vld [vmem:[%s3703_s20 + $0x70] sm:$0xff] }
  0x27   : > { %v3571_v31 = vpop.eup %3570  ;;  %3590 = vrcp.f32 %v422_v23  ;;  %v423_v33 = vadd.f32 %v391_v25, %v263_v60  ;;  %v373_v34 = vmul.f32 0.01, %v341_v30  ;;  %538 = vst.msk [vmem:[#allocation2 + $0xf8] sm:$0xff] %vm494_vm0, %v469_v28  ;;  %v360_v41 = vsel %vm328_vm4, 1.0, %v3637_v6  ;;  %3549 = vmatpush3.msra.mxu1 %v1177_v51  ;;  %3315 = vmatpush3.msra.mxu0 %v1177_v51  ;;  %v275_v30 = vld [vmem:[%s3749_s25 + $0x28] sm:$0xff] }
  0x28   : > { %v3573_v38 = vpop.eup %3572  ;;  %v431_v39 = vmul.f32 %v3571_v31, %v270_v22  ;;  %3592 = vrcp.f32 %v404_v24  ;;  %vm310_vm5 = vcmp.ge.f32.partialorder %v3769_v26, 0.0  ;;  %536 = vst.msk [vmem:[#allocation2 + $0xe0] sm:$0xff] %vm494_vm0, %v465_v32  ;;  %v392_v46 = vmul.f32 0.01, %v360_v41 }
  0x29   : > { %v471_v43 = vmul.f32 %v3573_v38, %v290_v29  ;;  %3594 = vrcp.f32 %v423_v33  ;;  %v405_v45 = vadd.f32 %v373_v34, %v245_v10  ;;  %v342_v50 = vsel %vm310_vm5, 1.0, %v3637_v6  ;;  %v294_v33 = vld [vmem:[%s3749_s25 + $0xc0] sm:$0xff] }
  0x2a   : > { %v3575_v48 = vpop.eup %3574  ;;  %519 = vst.msk [vmem:[#allocation2 + $0x18] sm:$0xff] %vm494_vm0, %v431_v39  ;;  %vm329_vm6 = vcmp.ge.f32.partialorder %v3775_v35, 0.0  ;;  %vm311_vm7 = vcmp.ge.f32.partialorder %v3778_v36, 0.0  ;;  %vm330_vm8 = vcmp.ge.f32.partialorder %v3781_v37, 0.0  ;;  %v424_v55 = vadd.f32 %v392_v46, %v264_v16  ;;  %v3831_v16 = vld [vmem:[%s3703_s20 + $0x58] sm:$0xff] }
  0x2b   : > { %v3577_v52 = vpop.eup %3576  ;;  %539 = vst.msk [vmem:[#allocation2 + $0x108] sm:$0xff] %vm494_vm0, %v471_v43  ;;  %v433_v53 = vmul.f32 %v3575_v48, %v271_v40  ;;  %3596 = vrcp.f32 %v405_v45  ;;  %v374_v56 = vmul.f32 0.01, %v342_v50  ;;  %v361_v62 = vsel %vm329_vm6, 1.0, %v3637_v6  ;;  %v276_v40 = vld [vmem:[%s3749_s25 + $0x30] sm:$0xff]  ;;  %v277_v50 = vld [vmem:[%s3749_s25 + $0x38] sm:$0xff] }
  0x2c   : > { %v3579_v58 = vpop.eup %3578  ;;  %v3807_v59 = vld [vmem:[#allocation2 + $0xf0] sm:$0xff]  ;;  %v473_v60 = vmul.f32 %v3577_v52, %v291_v44  ;;  %v343_v63 = vsel %vm311_vm7, 1.0, %v3637_v6  ;;  %v362_v0 = vsel %vm330_vm8, 1.0, %v3637_v6  ;;  %3598 = vrcp.f32 %v424_v55  ;;  %v295_v44 = vld [vmem:[%s3749_s25 + $0xc8] sm:$0xff] }
  0x2d   : > { %v3581_v1 = vpop.eup %3580  ;;  %984 = vrot.lane.b32.xlu1 %v3807_v59, %s3636_s22  ;;  %v3821_v2 = vld [vmem:[#allocation2 + $0xd8] sm:$0xff]  ;;  %520 = vst.msk [vmem:[#allocation2 + $0x20] sm:$0xff] %vm494_vm0, %v433_v53  ;;  %v435_v5 = vmul.f32 %v3579_v58, %v272_v49  ;;  %v406_v8 = vadd.f32 %v374_v56, %v3769_v26  ;;  %v393_v10 = vmul.f32 0.01, %v361_v62  ;;  %v375_v14 = vmul.f32 0.01, %v343_v63 }
  0x2e   : > { %v3583_v12 = vpop.eup %3582  ;;  %792 = vrot.lane.b32.xlu0 %v3821_v2, %s3635_s21  ;;  %540 = vst.msk [vmem:[#allocation2 + $0x110] sm:$0xff] %vm494_vm0, %v473_v60  ;;  %v437_v13 = vmul.f32 %v3581_v1, %v273_v54  ;;  %v394_v15 = vmul.f32 0.01, %v362_v0  ;;  %vm312_vm9 = vcmp.ge.f32.partialorder %v248_v57, 0.0  ;;  %v3833_v17 = vld [vmem:[#allocation2 + $0xf8] sm:$0xff]  ;;  %vm331_vm10 = vcmp.ge.f32.partialorder %v267_v11, 0.0 }
  0x2f   : > { %521 = vst.msk [vmem:[#allocation2 + $0x30] sm:$0xff] %vm494_vm0, %v435_v5  ;;  %v475_v18 = vmul.f32 %v3583_v12, %v292_v61  ;;  %3600 = vrcp.f32 %v406_v8  ;;  %v425_v20 = vadd.f32 %v393_v10, %v3775_v35  ;;  %v344_v21 = vsel %vm312_vm9, 1.0, %v3637_v6  ;;  %v3839_v23 = vld [vmem:[#allocation2 + $0xe0] sm:$0xff]  ;;  %v251_v58 = vld [vmem:[%s3703_s20 + $0x68] sm:$0xff]  ;;  %v296_v0 = vld [vmem:[%s3749_s25 + $0xd0] sm:$0xff] }
  0x30   : > { %v3585_v22 = vpop.eup %3584  ;;  %522 = vst.msk [vmem:[#allocation2 + $0x38] sm:$0xff] %vm494_vm0, %v437_v13  ;;  %v407_v24 = vadd.f32 %v375_v14, %v3778_v36  ;;  %v426_v25 = vadd.f32 %v394_v15, %v3781_v37  ;;  %v376_v26 = vmul.f32 0.01, %v344_v21  ;;  %v363_v31 = vsel %vm331_vm10, 1.0, %v3637_v6  ;;  %v253_v36 = vld [vmem:[%s3703_s20 + $0x78] sm:$0xff]  ;;  %v268_v37 = vld [vmem:[%s3703_s20 + $0xf0] sm:$0xff] }
  0x31   : > { %v3587_v28 = vpop.eup %3586  ;;  %986 = vrot.lane.b32.xlu1 %v3833_v17, %s3636_s22  ;;  %541 = vst.msk [vmem:[#allocation2 + $0x120] sm:$0xff] %vm494_vm0, %v475_v18  ;;  %v439_v29 = vmul.f32 %v3585_v22, %v274_v7  ;;  %3602 = vrcp.f32 %v425_v20  ;;  %vm313_vm11 = vcmp.ge.f32.partialorder %v3831_v16, 0.0  ;;  %v395_v35 = vmul.f32 0.01, %v363_v31  ;;  %v3856_v39 = vld [vmem:[#allocation2 + $0x18] sm:$0xff]  ;;  %v278_v13 = vld [vmem:[%s3749_s25 + $0x40] sm:$0xff] }
  0x32   : > { %794 = vrot.lane.b32.xlu0 %v3839_v23, %s3635_s21  ;;  %v477_v32 = vmul.f32 %v3587_v28, %v293_v19  ;;  %3604 = vrcp.f32 %v407_v24  ;;  %v408_v34 = vadd.f32 %v376_v26, %v248_v57  ;;  %v345_v41 = vsel %vm313_vm11, 1.0, %v3637_v6  ;;  %v3870_v53 = vld [vmem:[#allocation2 + $0x108] sm:$0xff]  ;;  %v269_v57 = vld [vmem:[%s3703_s20 + $0xf8] sm:$0xff]  ;;  %v298_v31 = vld [vmem:[%s3749_s25 + $0xe0] sm:$0xff] }
  0x33   : > { %v3589_v38 = vpop.eup %3588  ;;  %523 = vst.msk [vmem:[#allocation2 + $0x48] sm:$0xff] %vm494_vm0, %v439_v29  ;;  %3606 = vrcp.f32 %v426_v25  ;;  %vm316_vm12 = vcmp.ge.f32.partialorder %v252_v27, 0.0  ;;  %v427_v45 = vadd.f32 %v395_v35, %v267_v11  ;;  %v377_v46 = vmul.f32 0.01, %v345_v41  ;;  %v297_v24 = vld [vmem:[%s3749_s25 + $0xd8] sm:$0xff]  ;;  %v279_v29 = vld [vmem:[%s3749_s25 + $0x48] sm:$0xff] }
  0x34   : > { %v3591_v42 = vpop.eup %3590  ;;  %542 = vst.msk [vmem:[#allocation2 + $0x128] sm:$0xff] %vm494_vm0, %v477_v32  ;;  %v441_v43 = vmul.f32 %v3589_v38, %v275_v30  ;;  %3608 = vrcp.f32 %v408_v34  ;;  %v348_v51 = vsel %vm316_vm12, 1.0, %v3637_v6  ;;  %vm317_vm13 = vcmp.ge.f32.partialorder %v253_v36, 0.0  ;;  %v3887_v12 = vld [vmem:[#allocation2 + $0x20] sm:$0xff] }
  0x35   : > { %v3593_v48 = vpop.eup %3592  ;;  %798 = vrot.lane.b32.xlu1 %v3807_v59, %s3635_s21  ;;  %v479_v49 = vmul.f32 %v3591_v42, %v294_v33  ;;  %vm332_vm14 = vcmp.ge.f32.partialorder %v268_v37, 0.0  ;;  %3610 = vrcp.f32 %v427_v45  ;;  %v409_v55 = vadd.f32 %v377_v46, %v3831_v16  ;;  %v3890_v18 = vld [vmem:[#allocation2 + $0x110] sm:$0xff]  ;;  %v299_v42 = vld [vmem:[%s3749_s25 + $0xe8] sm:$0xff]  ;;  %v281_v46 = vld [vmem:[%s3749_s25 + $0x58] sm:$0xff] }
  0x36   : > { %v3595_v52 = vpop.eup %3594  ;;  %744 = vrot.lane.b32.xlu0 %v3856_v39, %s3635_s21  ;;  %524 = vst.msk [vmem:[#allocation2 + $0x50] sm:$0xff] %vm494_vm0, %v441_v43  ;;  %v443_v54 = vmul.f32 %v3593_v48, %v276_v40  ;;  %v380_v56 = vmul.f32 0.01, %v348_v51  ;;  %v349_v61 = vsel %vm317_vm13, 1.0, %v3637_v6  ;;  %v364_v62 = vsel %vm332_vm14, 1.0, %v3637_v6 }
  0x37   : > { %543 = vst.msk [vmem:[#allocation2 + $0x138] sm:$0xff] %vm494_vm0, %v479_v49  ;;  %v481_v60 = vmul.f32 %v3595_v52, %v295_v44  ;;  %vm314_vm15 = vcmp.ge.f32.partialorder %v250_v47, 0.0  ;;  %3612 = vrcp.f32 %v409_v55  ;;  %v381_v5 = vmul.f32 0.01, %v349_v61  ;;  %v3913_v43 = vld [vmem:[#allocation2 + $0x38] sm:$0xff]  ;;  %v284_v49 = vld [vmem:[%s3749_s25 + $0x70] sm:$0xff] }
  0x38   : > { %v3597_v63 = vpop.eup %3596  ;;  %525 = vst.msk [vmem:[#allocation2 + $0x60] sm:$0xff] %vm494_vm0, %v443_v54  ;;  %v412_v1 = vadd.f32 %v380_v56, %v252_v27  ;;  %v396_v7 = vmul.f32 0.01, %v364_v62  ;;  %v346_v10 = vsel %vm314_vm15, 1.0, %v3637_v6  ;;  %vm333_vm1 = vcmp.ge.f32.partialorder %v269_v57, 0.0  ;;  %v3925_v52 = vld [vmem:[#allocation2 + $0x120] sm:$0xff] }
  0x39   : > { %990 = vrot.lane.b32.xlu1 %v3870_v53, %s3636_s22  ;;  %544 = vst.msk [vmem:[#allocation2 + $0x140] sm:$0xff] %vm494_vm0, %v481_v60  ;;  %v445_v8 = vmul.f32 %v3597_v63, %v277_v50  ;;  %vm315_vm2 = vcmp.ge.f32.partialorder %v251_v58, 0.0  ;;  %v3599_v11 = vpop.eup %3598  ;;  %v413_v14 = vadd.f32 %v381_v5, %v253_v36  ;;  %v378_v16 = vmul.f32 0.01, %v346_v10  ;;  %v280_v36 = vld [vmem:[%s3749_s25 + $0x50] sm:$0xff]  ;;  %v285_v54 = vld [vmem:[%s3749_s25 + $0x78] sm:$0xff] }
  0x3a   : > { %800 = vrot.lane.b32.xlu0 %v3833_v17, %s3635_s21  ;;  %3614 = vrcp.f32 %v412_v1  ;;  %v428_v15 = vadd.f32 %v396_v7, %v268_v37  ;;  %v483_v19 = vmul.f32 %v3599_v11, %v296_v0  ;;  %v365_v20 = vsel %vm333_vm1, 1.0, %v3637_v6  ;;  %v300_v56 = vld [vmem:[%s3749_s25 + $0xf0] sm:$0xff]  ;;  %v3935_v61 = vld [vmem:[#allocation2 + $0x48] sm:$0xff]  ;;  %v301_v1 = vld [vmem:[%s3749_s25 + $0xf8] sm:$0xff] }
  0x3b   : > { %526 = vst.msk [vmem:[#allocation2 + $0x68] sm:$0xff] %vm494_vm0, %v445_v8  ;;  %v347_v21 = vsel %vm315_vm2, 1.0, %v3637_v6  ;;  %3616 = vrcp.f32 %v413_v14  ;;  %v410_v25 = vadd.f32 %v378_v16, %v250_v47  ;;  %v397_v26 = vmul.f32 0.01, %v365_v20  ;;  %v3902_v6 = vld [vmem:[#allocation2 + $0x30] sm:$0xff]  ;;  %v283_v7 = vld [vmem:[%s3749_s25 + $0x68] sm:$0xff] }
  0x3c   : > { %v3601_v22 = vpop.eup %3600  ;;  %v379_v27 = vmul.f32 0.01, %v347_v21  ;;  %545 = vst.msk [vmem:[#allocation2 + $0x150] sm:$0xff] %vm494_vm0, %v483_v19  ;;  %3618 = vrcp.f32 %v428_v15  ;;  %v3946_v11 = vld [vmem:[#allocation2 + $0x128] sm:$0xff]  ;;  %v3961_v16 = vld [vmem:[#allocation2 + $0x130] sm:$0xff]  ;;  %v3967_v19 = vld [vmem:[#allocation2 + $0x58] sm:$0xff] }
  0x3d   : > { %746 = vrot.lane.b32.xlu1 %v3887_v12, %s3635_s21  ;;  %v447_v28 = vmul.f32 %v3601_v22, %v278_v13  ;;  %3620 = vrcp.f32 %v410_v25  ;;  %v429_v32 = vadd.f32 %v397_v26, %v269_v57  ;;  %v3959_v15 = vld [vmem:[#allocation2 + $0x50] sm:$0xff]  ;;  %v3997_v22 = vld [vmem:[#allocation2 + $0x148] sm:$0xff]  ;;  %vm1180_vm3 = vcmask 195584  }
  0x3e   : > { %v3603_v30 = vpop.eup %3602  ;;  %992 = vrot.lane.b32.xlu0 %v3890_v18, %s3636_s22  ;;  %v411_v33 = vadd.f32 %v379_v27, %v251_v58  ;;  %v282_v58 = vld [vmem:[%s3749_s25 + $0x60] sm:$0xff]  ;;  %vm1128_vm4 = vcmask 130048   ;;  %vm1729_vm5 = vcmask 31744   ;;  %s4874_s25 = scalar_lea.vmem %s5140_s4, %s3697_s17 }
  0x3f   : > { %v3605_v34 = vpop.eup %3604  ;;  %527 = vst.msk [vmem:[#allocation2 + $0x78] sm:$0xff] %vm494_vm0, %v447_v28  ;;  %v485_v35 = vmul.f32 %v3603_v30, %v297_v24  ;;  %3622 = vrcp.f32 %v429_v32  ;;  %v4007_v24 = vld [vmem:[#allocation2 + $0x70] sm:$0xff] }
  0x40   : > { %v3607_v37 = vpop.eup %3606  ;;  %v449_v38 = vmul.f32 %v3605_v34, %v279_v29  ;;  %3624 = vrcp.f32 %v411_v33  ;;  %v3985_v20 = vld [vmem:[#allocation2 + $0x140] sm:$0xff] }
  0x41   : > { %v3609_v40 = vpop.eup %3608  ;;  %936 = vrot.lane.b32.xlu1 %v3902_v6, %s3636_s22  ;;  %546 = vst.msk [vmem:[#allocation2 + $0x158] sm:$0xff] %vm494_vm0, %v485_v35  ;;  %v487_v41 = vmul.f32 %v3607_v37, %v298_v31  ;;  %v4033_v29 = vld [vmem:[#allocation2 + $0x160] sm:$0xff]  ;;  %v4039_v31 = vld [vmem:[#allocation2 + $0x88] sm:$0xff] }
  0x42   : > { %804 = vrot.lane.b32.xlu0 %v3870_v53, %s3635_s21  ;;  %528 = vst.msk [vmem:[#allocation2 + $0x80] sm:$0xff] %vm494_vm0, %v449_v38  ;;  %v451_v44 = vmul.f32 %v3609_v40, %v280_v36  ;;  %v3611_v45 = vpop.eup %3610  ;;  %v3991_v21 = vld [vmem:[#allocation2 + $0x68] sm:$0xff] }
  0x43   : > { %547 = vst.msk [vmem:[#allocation2 + $0x168] sm:$0xff] %vm494_vm0, %v487_v41  ;;  %v489_v47 = vmul.f32 %v3611_v45, %v299_v42  ;;  %v4009_v25 = vld [vmem:[#allocation2 + $0x150] sm:$0xff] }
  0x44   : > { %529 = vst.msk [vmem:[#allocation2 + $0x90] sm:$0xff] %vm494_vm0, %v451_v44  ;;  %v3613_v48 = vpop.eup %3612  ;;  %v4077_v44 = vld [vmem:[#allocation2 + $0x178] sm:$0xff] }
  0x45   : > { %938 = vrot.lane.b32.xlu1 %v3913_v43, %s3636_s22  ;;  %548 = vst.msk [vmem:[#allocation2 + $0x170] sm:$0xff] %vm494_vm0, %v489_v47  ;;  %v453_v50 = vmul.f32 %v3613_v48, %v281_v46  ;;  %v4079_v47 = vld [vmem:[#allocation2 + $0xd0] sm:$0xff] }
  0x46   : > { %806 = vrot.lane.b32.xlu0 %v3890_v18, %s3635_s21  ;;  %v4015_v26 = vld [vmem:[#allocation2 + $0x78] sm:$0xff] }
  0x47   : > { %v3615_v51 = vpop.eup %3614  ;;  %530 = vst.msk [vmem:[#allocation2 + $0x98] sm:$0xff] %vm494_vm0, %v453_v50 }
  0x48   : > { %v459_v55 = vmul.f32 %v3615_v51, %v284_v49  ;;  %v3617_v57 = vpop.eup %3616  ;;  %v4021_v27 = vld [vmem:[#allocation2 + $0x158] sm:$0xff]  ;;  %v3051_v49 = vld [vmem:[%s5136_s0 + $0x28] sm:$0xff] }
  0x49   : > { %750 = vrot.lane.b32.xlu1 %v3902_v6, %s3635_s21  ;;  %v3619_v60 = vpop.eup %3618  ;;  %v461_v62 = vmul.f32 %v3617_v57, %v285_v54  ;;  %v4031_v28 = vld [vmem:[#allocation2 + $0x80] sm:$0xff]  ;;  %3388 = vmatprep.subr.mxu1 %v3051_v49 }
  0x4a   : > { %996 = vrot.lane.b32.xlu0 %v3925_v52, %s3636_s22  ;;  %533 = vst.msk [vmem:[#allocation2 + $0xc0] sm:$0xff] %vm494_vm0, %v459_v55  ;;  %v3621_v63 = vpop.eup %3620  ;;  %v491_v0 = vmul.f32 %v3619_v60, %v300_v56  ;;  %v4045_v32 = vld [vmem:[#allocation2 + $0x168] sm:$0xff]  ;;  %v4108_v60 = vld [vmem:[#allocation2 + $0xa0] sm:$0xff] }
  0x4b   : > { %534 = vst.msk [vmem:[#allocation2 + $0xc8] sm:$0xff] %vm494_vm0, %v461_v62  ;;  %v455_v5 = vmul.f32 %v3621_v63, %v282_v58  ;;  %v4057_v36 = vld [vmem:[#allocation2 + $0x90] sm:$0xff] }
  0x4c   : > { %v3623_v8 = vpop.eup %3622  ;;  %549 = vst.msk [vmem:[#allocation2 + $0x180] sm:$0xff] %vm494_vm0, %v491_v0  ;;  %v4059_v37 = vld [vmem:[#allocation2 + $0x170] sm:$0xff] }
  0x4d   : > { %942 = vrot.lane.b32.xlu1 %v3935_v61, %s3636_s22  ;;  %v3625_v10 = vpop.eup %3624  ;;  %531 = vst.msk [vmem:[#allocation2 + $0xa8] sm:$0xff] %vm494_vm0, %v455_v5  ;;  %v493_v13 = vmul.f32 %v3623_v8, %v301_v1  ;;  %v3102_v5 = vld [vmem:[%s5136_s0 + $0x40] sm:$0xff] }
  0x4e   : > { %752 = vrot.lane.b32.xlu0 %v3913_v43, %s3635_s21  ;;  %v457_v14 = vmul.f32 %v3625_v10, %v283_v7  ;;  %v4069_v41 = vld [vmem:[#allocation2 + $0x98] sm:$0xff]  ;;  %3466 = vmatprep.subr.mxu0 %v3102_v5 }
  0x4f   : > { %550 = vst.msk [vmem:[#allocation2 + $0x188] sm:$0xff] %vm494_vm0, %v493_v13 }
  0x50   : > { %532 = vst.msk [vmem:[#allocation2 + $0xb0] sm:$0xff] %vm494_vm0, %v457_v14 }
  0x51   : > { %998 = vrot.lane.b32.xlu1 %v3946_v11, %s3636_s22  ;;  %v4075_v42 = vld [vmem:[#allocation2 + $0xc0] sm:$0xff] }
  0x52   : > { %808 = vrot.lane.b32.xlu0 %v3709_v4, %s3635_s21  ;;  %v3973_v4 = vld [vmem:[#allocation2 + $0x138] sm:$0xff]  ;;  %v4093_v51 = vld [vmem:[#allocation2 + $0xc8] sm:$0xff] }
  0x53   : > { %v690_v0 = vld [vmem:[#allocation2 + $0x180] sm:$0xff] }
  0x54   : > { %v4123_v7 = vld [vmem:[#allocation2 + $0xa8] sm:$0xff] }
  0x55   : > { %754 = vrot.lane.b32.xlu1 %v3717_v9, %s3635_s21  ;;  %v3983_v9 = vld [vmem:[#allocation2 + $0x60] sm:$0xff] }
  0x56   : > { %810 = vrot.lane.b32.xlu0 %v3925_v52, %s3635_s21 }
  0x59   : > { %944 = vrot.lane.b32.xlu1 %v3959_v15, %s3636_s22 }
  0x5a   : > { %1000 = vrot.lane.b32.xlu0 %v3961_v16, %s3636_s22 }
  0x5d   : > { %946 = vrot.lane.b32.xlu1 %v3967_v19, %s3636_s22 }
  0x5e   : > { %756 = vrot.lane.b32.xlu0 %v3935_v61, %s3635_s21 }
  0x61   : > { %1002 = vrot.lane.b32.xlu1 %v3973_v4, %s3636_s22 }
  0x62   : > { %812 = vrot.lane.b32.xlu0 %v3946_v11, %s3635_s21 }
  0x65   : > { %758 = vrot.lane.b32.xlu1 %v3959_v15, %s3635_s21 }
  0x66   : > { %814 = vrot.lane.b32.xlu0 %v3961_v16, %s3635_s21 }
  0x69   : > { %948 = vrot.lane.b32.xlu1 %v3983_v9, %s3636_s22 }
  0x6a   : > { %1004 = vrot.lane.b32.xlu0 %v3985_v20, %s3636_s22 }
  0x6d   : > { %950 = vrot.lane.b32.xlu1 %v3991_v21, %s3636_s22 }
  0x6e   : > { %760 = vrot.lane.b32.xlu0 %v3967_v19, %s3635_s21 }
  0x71   : > { %1006 = vrot.lane.b32.xlu1 %v3997_v22, %s3636_s22 }
  0x72   : > { %816 = vrot.lane.b32.xlu0 %v3973_v4, %s3635_s21 }
  0x75   : > { %762 = vrot.lane.b32.xlu1 %v3983_v9, %s3635_s21 }
  0x76   : > { %818 = vrot.lane.b32.xlu0 %v3985_v20, %s3635_s21 }
  0x79   : > { %952 = vrot.lane.b32.xlu1 %v4007_v24, %s3636_s22 }
  0x7a   : > { %1008 = vrot.lane.b32.xlu0 %v4009_v25, %s3636_s22 }
  0x7d   : > { %954 = vrot.lane.b32.xlu1 %v4015_v26, %s3636_s22 }
  0x7e   : > { %764 = vrot.lane.b32.xlu0 %v3991_v21, %s3635_s21 }
  0x81   : > { %1010 = vrot.lane.b32.xlu1 %v4021_v27, %s3636_s22 }
  0x82   : > { %820 = vrot.lane.b32.xlu0 %v3997_v22, %s3635_s21 }
  0x85   : > { %766 = vrot.lane.b32.xlu1 %v4007_v24, %s3635_s21 }
  0x86   : > { %822 = vrot.lane.b32.xlu0 %v4009_v25, %s3635_s21  ;;  %v797_v30 = vpop.permute.xlu0 %796 }
  0x87   : > { %v1106_v55 = vsel %vm494_vm0, %v4079_v47, %v797_v30 }
  0x89   : > { %956 = vrot.lane.b32.xlu1 %v4031_v28, %s3636_s22 }
  0x8a   : > { %1012 = vrot.lane.b32.xlu0 %v4033_v29, %s3636_s22 }
  0x8d   : > { %958 = vrot.lane.b32.xlu1 %v4039_v31, %s3636_s22  ;;  %v989_v33 = vpop.permute.xlu0 %988 }
  0x8e   : > { %768 = vrot.lane.b32.xlu0 %v4015_v26, %s3635_s21  ;;  %v4051_v34 = vpop.permute.xlu1 %994  ;;  %v4111_v62 = vsel %vm1128_vm4, %v1106_v55, %v989_v33  ;;  %v691_v33 = vld [vmem:[#allocation2 + $0x188] sm:$0xff] }
  0x91   : > { %1014 = vrot.lane.b32.xlu1 %v4045_v32, %s3636_s22  ;;  %v803_v35 = vpop.permute.xlu0 %802 }
  0x92   : > { %824 = vrot.lane.b32.xlu0 %v4021_v27, %s3635_s21  ;;  %v4063_v38 = vpop.permute.xlu1 %940 }
  0x95   : > { %770 = vrot.lane.b32.xlu1 %v4031_v28, %s3635_s21  ;;  %v4067_v40 = vpop.permute.xlu0 %748 }
  0x96   : > { %826 = vrot.lane.b32.xlu0 %v4033_v29, %s3635_s21 }
  0x99   : > { %960 = vrot.lane.b32.xlu1 %v4057_v36, %s3636_s22 }
  0x9a   : > { %1016 = vrot.lane.b32.xlu0 %v4059_v37, %s3636_s22 }
  0x9d   : > { %962 = vrot.lane.b32.xlu1 %v4069_v41, %s3636_s22 }
  0x9e   : > { %772 = vrot.lane.b32.xlu0 %v4039_v31, %s3635_s21 }
  0x9f   : > { %v985_v45 = vpop.permute.xlu1 %984 }
  0xa0   : > { %v793_v46 = vpop.permute.xlu0 %792 }
  0xa1   : > { %v1104_v48 = vsel %vm494_vm0, %v4075_v42, %v793_v46  ;;  %1018 = vrot.lane.b32.xlu1 %v4077_v44, %s3636_s22  ;;  %v551_v46 = vld [vmem:[#allocation2] sm:$0xff] }
  0xa2   : > { %828 = vrot.lane.b32.xlu0 %v4045_v32, %s3635_s21  ;;  %v4091_v50 = vsel %vm1128_vm4, %v1104_v48, %v985_v45 }
  0xa3   : > { %3352 = vmatprep.mubr.msk.f32.mxu1 %vm1180_vm3, %v4091_v50  ;;  %v987_v54 = vpop.permute.xlu1 %986 }
  0xa4   : > { %v795_v56 = vpop.permute.xlu0 %794 }
  0xa5   : > { %v1105_v57 = vsel %vm494_vm0, %v4093_v51, %v795_v56  ;;  %774 = vrot.lane.b32.xlu1 %v4057_v36, %s3635_s21  ;;  %v552_v56 = vld [vmem:[#allocation2 + $0x8] sm:$0xff] }
  0xa6   : > { %830 = vrot.lane.b32.xlu0 %v4059_v37, %s3635_s21  ;;  %v4106_v58 = vsel %vm1128_vm4, %v1105_v57, %v987_v54  ;;  %v3050_v54 = vld [vmem:[%s5136_s0 + $0x20] sm:$0xff] }
  0xa7   : > { %3353 = vmatmul.mubr.msk.f32.vlgmr.msra.gmra.mxu1 %vm1180_vm3, %v4106_v58  ;;  %v799_v63 = vpop.permute.xlu1 %798 }
  0xa8   : > { %3355 = vmatprep.mubr.msk.f32.mxu1 %vm1180_vm3, %v4111_v62  ;;  %v745_v1 = vpop.permute.xlu0 %744  ;;  %3389 = vmatpush3.msra.mxu1 %v3051_v49  ;;  %v1107_v8 = vsel %vm494_vm0, %v3821_v2, %v799_v63  ;;  %v1109_v2 = vsel %vm494_vm0, %v3707_v3, %v803_v35  ;;  %v553_v3 = vld [vmem:[#allocation2 + $0x10] sm:$0xff] }
  0xa9   : > { %964 = vrot.lane.b32.xlu1 %v4108_v60, %s3636_s22  ;;  %v1080_v35 = vsel %vm494_vm0, %v551_v46, %v745_v1  ;;  %3390 = vmatprep.subr.mxu1 %v3050_v54  ;;  %v4168_v1 = vld [vmem:[#allocation2 + $0xb0] sm:$0xff] }
  0xaa   : > { %1020 = vrot.lane.b32.xlu0 %v690_v0, %s3636_s22  ;;  %3391 = vmatpush3.msra.mxu1 %v3050_v54 }
  0xab   : > { %v991_v10 = vpop.permute.xlu1 %990 }
  0xac   : > { %v4128_v13 = vsel %vm1128_vm4, %v1107_v8, %v991_v10  ;;  %v801_v14 = vpop.permute.xlu0 %800 }
  0xad   : > { %3356 = vmatmul.mubr.msk.f32.gmra.mxu1 %vm1180_vm3, %v4128_v13  ;;  %966 = vrot.lane.b32.xlu1 %v4123_v7, %s3636_s22  ;;  %v1108_v30 = vsel %vm494_vm0, %v3839_v23, %v801_v14  ;;  %v4149_v23 = vsel %vm1128_vm4, %v1109_v2, %v4051_v34  ;;  %v1082_v34 = vsel %vm494_vm0, %v553_v3, %v4067_v40  ;;  %v692_v14 = vld [vmem:[#allocation2 + $0x190] sm:$0xff]  ;;  %v3101_v40 = vld [vmem:[%s5136_s0 + $0x38] sm:$0xff] }
  0xae   : > { %776 = vrot.lane.b32.xlu0 %v4069_v41, %s3635_s21  ;;  %v4176_v46 = vsel %vm1128_vm4, %v1082_v34, %v4063_v38  ;;  %v4190_v38 = vld [vmem:[#allocation2 + $0xb8] sm:$0xff] }
  0xaf   : > { %v747_v45 = vpop.permute.xlu1 %746 }
  0xb0   : > { %v993_v48 = vpop.permute.xlu0 %992  ;;  %v1081_v8 = vsel %vm494_vm0, %v552_v56, %v747_v45  ;;  %v3049_v56 = vld [vmem:[%s5136_s0 + $0x18] sm:$0xff] }
  0xb1   : > { %v4141_v49 = vsel %vm1128_vm4, %v1108_v30, %v993_v48  ;;  %1022 = vrot.lane.b32.xlu1 %v691_v33, %s3636_s22  ;;  %3392 = vmatprep.subr.mxu1 %v3049_v56 }
  0xb2   : > { %832 = vrot.lane.b32.xlu0 %v4077_v44, %s3635_s21  ;;  %3358 = vmatprep.mubr.msk.f32.mxu1 %vm1180_vm3, %v4141_v49 }
  0xb3   : > { %3359 = vmatmul.mubr.msk.f32.gmra.mxu1 %vm1180_vm3, %v4149_v23  ;;  %v937_v55 = vpop.permute.xlu1 %936 }
  0xb4   : > { %v805_v57 = vpop.permute.xlu0 %804  ;;  %v4159_v63 = vsel %vm1128_vm4, %v1080_v35, %v937_v55  ;;  %3393 = vmatpush3.msra.mxu1 %v3049_v56  ;;  %v695_v56 = vld [vmem:[#allocation2 + $0x1a8] sm:$0xff] }
  0xb5   : > { %778 = vrot.lane.b32.xlu1 %v4108_v60, %s3635_s21  ;;  %3316 = vmatprep.mubr.msk.f32.mxu0 %vm1180_vm3, %v4159_v63 }
  0xb6   : > { %834 = vrot.lane.b32.xlu0 %v690_v0, %s3635_s21  ;;  %v1110_v0 = vsel %vm494_vm0, %v3807_v59, %v805_v57  ;;  %v693_v59 = vld [vmem:[#allocation2 + $0x198] sm:$0xff] }
  0xb7   : > { %v939_v10 = vpop.permute.xlu1 %938 }
  0xb8   : > { %v4172_v30 = vsel %vm1128_vm4, %v1081_v8, %v939_v10  ;;  %v807_v2 = vpop.permute.xlu0 %806  ;;  %v583_v10 = vld [vmem:[#allocation2 + $0x100] sm:$0xff] }
  0xb9   : > { %968 = vrot.lane.b32.xlu1 %v4168_v1, %s3636_s22  ;;  %3317 = vmatmul.mubr.msk.f32.vlgmr.msra.gmra.mxu0 %vm1180_vm3, %v4172_v30 }
  0xba   : > { %1024 = vrot.lane.b32.xlu0 %v692_v14, %s3636_s22  ;;  %3319 = vmatprep.mubr.msk.f32.mxu0 %vm1180_vm3, %v4176_v46 }
  0xbb   : > { %v751_v45 = vpop.permute.xlu1 %750  ;;  %3467 = vmatpush3.msra.mxu0 %v3102_v5 }
  0xbc   : > { %v997_v48 = vpop.permute.xlu0 %996  ;;  %3468 = vmatprep.subr.mxu0 %v3101_v40  ;;  %v1083_v3 = vsel %vm494_vm0, %v3856_v39, %v751_v45  ;;  %v1111_v39 = vsel %vm494_vm0, %v3833_v17, %v807_v2  ;;  %v3100_v17 = vld [vmem:[%s5136_s0 + $0x30] sm:$0xff] }
  0xbd   : > { %v4193_v54 = vsel %vm1128_vm4, %v1110_v0, %v997_v48  ;;  %970 = vrot.lane.b32.xlu1 %v4190_v38, %s3636_s22  ;;  %3469 = vmatpush3.msra.mxu0 %v3101_v40  ;;  %v694_v40 = vld [vmem:[#allocation2 + $0x1a0] sm:$0xff]  ;;  %v556_v48 = vld [vmem:[#allocation2 + $0x28] sm:$0xff] }
  0xbe   : > { %780 = vrot.lane.b32.xlu0 %v4123_v7, %s3635_s21  ;;  %3361 = vmatprep.mubr.msk.f32.mxu1 %vm1180_vm3, %v4193_v54 }
  0xbf   : > { %v943_v5 = vpop.permute.xlu1 %942  ;;  %3470 = vmatprep.subr.mxu0 %v3100_v17 }
  0xc0   : > { %v4204_v35 = vsel %vm1128_vm4, %v1083_v3, %v943_v5  ;;  %v753_v55 = vpop.permute.xlu0 %752  ;;  %3471 = vmatpush3.msra.mxu0 %v3100_v17  ;;  %v669_v17 = vld [vmem:[#allocation2 + $0xd8] sm:$0xff] }
  0xc1   : > { %1026 = vrot.lane.b32.xlu1 %v693_v59, %s3636_s22  ;;  %3320 = vmatmul.mubr.msk.f32.gmra.mxu0 %vm1180_vm3, %v4204_v35 }
  0xc2   : > { %836 = vrot.lane.b32.xlu0 %v691_v33, %s3635_s21 }
  0xc3   : > { %v999_v57 = vpop.permute.xlu1 %998 }
  0xc4   : > { %v4216_v34 = vsel %vm1128_vm4, %v1111_v39, %v999_v57  ;;  %v809_v8 = vpop.permute.xlu0 %808 }
  0xc5   : > { %782 = vrot.lane.b32.xlu1 %v4168_v1, %s3635_s21  ;;  %3362 = vmatmul.mubr.msk.f32.gmra.mxu1 %vm1180_vm3, %v4216_v34  ;;  %v1112_v2 = vsel %vm494_vm0, %v583_v10, %v809_v8 }
  0xc6   : > { %838 = vrot.lane.b32.xlu0 %v692_v14, %s3635_s21  ;;  %v1084_v14 = vsel %vm494_vm0, %v3887_v12, %v753_v55 }
  0xc7   : > { %v755_v33 = vpop.permute.xlu1 %754 }
  0xc8   : > { %v811_v0 = vpop.permute.xlu0 %810  ;;  %v1085_v12 = vsel %vm494_vm0, %v556_v48, %v755_v33 }
  0xc9   : > { %972 = vrot.lane.b32.xlu1 %v4075_v42, %s3636_s22  ;;  %v1113_v8 = vsel %vm494_vm0, %v3870_v53, %v811_v0 }
  0xca   : > { %1028 = vrot.lane.b32.xlu0 %v694_v40, %s3636_s22 }
  0xcb   : > { %v945_v45 = vpop.permute.xlu1 %944 }
  0xcc   : > { %v4233_v59 = vsel %vm1128_vm4, %v1084_v14, %v945_v45  ;;  %v1001_v3 = vpop.permute.xlu0 %1000  ;;  %v670_v14 = vld [vmem:[#allocation2 + $0xe0] sm:$0xff] }
  0xcd   : > { %v4236_v5 = vsel %vm1128_vm4, %v1112_v2, %v1001_v3  ;;  %974 = vrot.lane.b32.xlu1 %v4093_v51, %s3636_s22  ;;  %3322 = vmatprep.mubr.msk.f32.mxu0 %vm1180_vm3, %v4233_v59 }
  0xce   : > { %3364 = vmatprep.mubr.msk.f32.mxu1 %vm1180_vm3, %v4236_v5  ;;  %784 = vrot.lane.b32.xlu0 %v4190_v38, %s3635_s21 }
  0xcf   : > { %v947_v55 = vpop.permute.xlu1 %946 }
  0xd0   : > { %v4248_v39 = vsel %vm1128_vm4, %v1085_v12, %v947_v55  ;;  %v757_v57 = vpop.permute.xlu0 %756  ;;  %v586_v12 = vld [vmem:[#allocation2 + $0x118] sm:$0xff] }
  0xd1   : > { %1030 = vrot.lane.b32.xlu1 %v695_v56, %s3636_s22  ;;  %3323 = vmatmul.mubr.msk.f32.gmra.mxu0 %vm1180_vm3, %v4248_v39 }
  0xd2   : > { %976 = vrot.lane.b32.xlu0 %v4079_v47, %s3636_s22 }
  0xd3   : > { %v1003_v10 = vpop.permute.xlu1 %1002 }
  0xd4   : > { %v4258_v40 = vsel %vm1128_vm4, %v1113_v8, %v1003_v10  ;;  %v813_v33 = vpop.permute.xlu0 %812 }
  0xd5   : > { %786 = vrot.lane.b32.xlu1 %v4075_v42, %s3635_s21  ;;  %3365 = vmatmul.mubr.msk.f32.gmra.mxu1 %vm1180_vm3, %v4258_v40  ;;  %v1114_v53 = vsel %vm494_vm0, %v3890_v18, %v813_v33  ;;  %v1086_v42 = vsel %vm494_vm0, %v3902_v6, %v757_v57  ;;  %v671_v18 = vld [vmem:[#allocation2 + $0xe8] sm:$0xff] }
  0xd6   : > { %788 = vrot.lane.b32.xlu0 %v4093_v51, %s3635_s21 }
  0xd7   : > { %v759_v2 = vpop.permute.xlu1 %758 }
  0xd8   : > { %v815_v45 = vpop.permute.xlu0 %814  ;;  %v1087_v6 = vsel %vm494_vm0, %v3913_v43, %v759_v2 }
  0xd9   : > { %978 = vrot.lane.b32.xlu1 %v669_v17, %s3636_s22  ;;  %v559_v17 = vld [vmem:[#allocation2 + $0x40] sm:$0xff] }
  0xda   : > { %980 = vrot.lane.b32.xlu0 %v670_v14, %s3636_s22 }
  0xdb   : > { %v949_v0 = vpop.permute.xlu1 %948 }
  0xdc   : > { %v4273_v48 = vsel %vm1128_vm4, %v1086_v42, %v949_v0  ;;  %v1005_v3 = vpop.permute.xlu0 %1004 }
  0xdd   : > { %v4276_v51 = vsel %vm1128_vm4, %v1114_v53, %v1005_v3  ;;  %790 = vrot.lane.b32.xlu1 %v4079_v47, %s3635_s21  ;;  %3325 = vmatprep.mubr.msk.f32.mxu0 %vm1180_vm3, %v4273_v48  ;;  %v1115_v47 = vsel %vm494_vm0, %v586_v12, %v815_v45 }
  0xde   : > { %3367 = vmatprep.mubr.msk.f32.mxu1 %vm1180_vm3, %v4276_v51 }
  0xdf   : > { %v951_v56 = vpop.permute.xlu1 %950 }
  0xe0   : > { %v4287_v55 = vsel %vm1128_vm4, %v1087_v6, %v951_v56  ;;  %v761_v57 = vpop.permute.xlu0 %760 }
  0xe1   : > { %982 = vrot.lane.b32.xlu1 %v671_v18, %s3636_s22  ;;  %3326 = vmatmul.mubr.msk.f32.gmra.mxu0 %vm1180_vm3, %v4287_v55  ;;  %v1088_v53 = vsel %vm494_vm0, %v559_v17, %v761_v57  ;;  %s4856_s22 = scalar_lea.vmem %s5139_s3, %s3697_s17 }
  0xe3   : > { %v1007_v8 = vpop.permute.xlu1 %1006 }
  0xe4   : > { %v4294_v10 = vsel %vm1128_vm4, %v1115_v47, %v1007_v8  ;;  %v817_v33 = vpop.permute.xlu0 %816 }
  0xe5   : > { %3368 = vmatmul.mubr.msk.f32.gmra.mxu1 %vm1180_vm3, %v4294_v10  ;;  %v1116_v14 = vsel %vm494_vm0, %v3925_v52, %v817_v33 }
  0xe7   : > { %v763_v43 = vpop.permute.xlu1 %762 }
  0xe8   : > { %v819_v2 = vpop.permute.xlu0 %818  ;;  %v1089_v18 = vsel %vm494_vm0, %v3935_v61, %v763_v43 }
  0xe9   : > { %v1117_v12 = vsel %vm494_vm0, %v3946_v11, %v819_v2 }
  0xeb   : > { %v953_v42 = vpop.permute.xlu1 %952 }
  0xec   : > { %v4302_v0 = vsel %vm1128_vm4, %v1088_v53, %v953_v42  ;;  %v1009_v45 = vpop.permute.xlu0 %1008 }
  0xed   : > { %v4305_v3 = vsel %vm1128_vm4, %v1116_v14, %v1009_v45  ;;  %3328 = vmatprep.mubr.msk.f32.mxu0 %vm1180_vm3, %v4302_v0 }
  0xee   : > { %3370 = vmatprep.mubr.msk.f32.mxu1 %vm1180_vm3, %v4305_v3 }
  0xef   : > { %v955_v52 = vpop.permute.xlu1 %954 }
  0xf0   : > { %v4314_v6 = vsel %vm1128_vm4, %v1089_v18, %v955_v52  ;;  %v765_v56 = vpop.permute.xlu0 %764 }
  0xf1   : > { %3329 = vmatmul.mubr.msk.f32.gmra.mxu0 %vm1180_vm3, %v4314_v6  ;;  %v1090_v17 = vsel %vm494_vm0, %v3959_v15, %v765_v56 }
  0xf3   : > { %v1011_v57 = vpop.permute.xlu1 %1010 }
  0xf4   : > { %v4321_v47 = vsel %vm1128_vm4, %v1117_v12, %v1011_v57  ;;  %v821_v8 = vpop.permute.xlu0 %820 }
  0xf5   : > { %3371 = vmatmul.mubr.msk.f32.gmra.mxu1 %vm1180_vm3, %v4321_v47  ;;  %v1118_v43 = vsel %vm494_vm0, %v3961_v16, %v821_v8 }
  0xf7   : > { %v767_v61 = vpop.permute.xlu1 %766 }
  0xf8   : > { %v823_v33 = vpop.permute.xlu0 %822  ;;  %v1091_v16 = vsel %vm494_vm0, %v3967_v19, %v767_v61 }
  0xf9   : > { %v1119_v18 = vsel %vm494_vm0, %v3973_v4, %v823_v33 }
  0xfb   : > { %v957_v14 = vpop.permute.xlu1 %956 }
  0xfc   : > { %v4330_v53 = vsel %vm1128_vm4, %v1090_v17, %v957_v14  ;;  %v1013_v11 = vpop.permute.xlu0 %1012 }
  0xfd   : > { %v4333_v2 = vsel %vm1128_vm4, %v1118_v43, %v1013_v11  ;;  %3331 = vmatprep.mubr.msk.f32.mxu0 %vm1180_vm3, %v4330_v53 }
  0xfe   : > { %3373 = vmatprep.mubr.msk.f32.mxu1 %vm1180_vm3, %v4333_v2 }
  0xff   : > { %v959_v42 = vpop.permute.xlu1 %958 }
 0x100   : > { %v4342_v15 = vsel %vm1128_vm4, %v1091_v16, %v959_v42  ;;  %v769_v45 = vpop.permute.xlu0 %768 }
 0x101   : > { %3332 = vmatmul.mubr.msk.f32.gmra.mxu0 %vm1180_vm3, %v4342_v15  ;;  %v1092_v61 = vsel %vm494_vm0, %v3983_v9, %v769_v45 }
 0x103   : > { %v1015_v52 = vpop.permute.xlu1 %1014 }
 0x104   : > { %v4349_v56 = vsel %vm1128_vm4, %v1119_v18, %v1015_v52  ;;  %v825_v12 = vpop.permute.xlu0 %824 }
 0x105   : > { %3374 = vmatmul.mubr.msk.f32.gmra.mxu1 %vm1180_vm3, %v4349_v56  ;;  %v1120_v8 = vsel %vm494_vm0, %v3985_v20, %v825_v12 }
 0x107   : > { %v771_v19 = vpop.permute.xlu1 %770 }
 0x108   : > { %v827_v57 = vpop.permute.xlu0 %826  ;;  %v1093_v20 = vsel %vm494_vm0, %v3991_v21, %v771_v19 }
 0x109   : > { %v1121_v16 = vsel %vm494_vm0, %v3997_v22, %v827_v57 }
 0x10b   : > { %v961_v43 = vpop.permute.xlu1 %960 }
 0x10c   : > { %v4358_v17 = vsel %vm1128_vm4, %v1092_v61, %v961_v43  ;;  %v1017_v4 = vpop.permute.xlu0 %1016 }
 0x10d   : > { %v4361_v33 = vsel %vm1128_vm4, %v1120_v8, %v1017_v4  ;;  %3334 = vmatprep.mubr.msk.f32.mxu0 %vm1180_vm3, %v4358_v17 }
 0x10e   : > { %3376 = vmatprep.mubr.msk.f32.mxu1 %vm1180_vm3, %v4361_v33 }
 0x10f   : > { %v963_v14 = vpop.permute.xlu1 %962 }
 0x110   : > { %v4370_v9 = vsel %vm1128_vm4, %v1093_v20, %v963_v14  ;;  %v773_v11 = vpop.permute.xlu0 %772 }
 0x111   : > { %3335 = vmatmul.mubr.msk.f32.gmra.mxu0 %vm1180_vm3, %v4370_v9  ;;  %v1094_v19 = vsel %vm494_vm0, %v4007_v24, %v773_v11 }
 0x113   : > { %v1019_v42 = vpop.permute.xlu1 %1018 }
 0x114   : > { %v4377_v45 = vsel %vm1128_vm4, %v1121_v16, %v1019_v42  ;;  %v829_v18 = vpop.permute.xlu0 %828 }
 0x115   : > { %3377 = vmatmul.mubr.msk.f32.gmra.mxu1 %vm1180_vm3, %v4377_v45  ;;  %v1122_v12 = vsel %vm494_vm0, %v4009_v25, %v829_v18 }
 0x117   : > { %v775_v21 = vpop.permute.xlu1 %774 }
 0x118   : > { %v831_v52 = vpop.permute.xlu0 %830  ;;  %v1095_v25 = vsel %vm494_vm0, %v4015_v26, %v775_v21 }
 0x119   : > { %v1123_v20 = vsel %vm494_vm0, %v4021_v27, %v831_v52 }
 0x11b   : > { %v965_v8 = vpop.permute.xlu1 %964 }
 0x11c   : > { %v4386_v61 = vsel %vm1128_vm4, %v1094_v19, %v965_v8  ;;  %v1021_v22 = vpop.permute.xlu0 %1020 }
 0x11d   : > { %v4389_v57 = vsel %vm1128_vm4, %v1122_v12, %v1021_v22  ;;  %3337 = vmatprep.mubr.msk.f32.mxu0 %vm1180_vm3, %v4386_v61 }
 0x11e   : > { %3379 = vmatprep.mubr.msk.f32.mxu1 %vm1180_vm3, %v4389_v57 }
 0x11f   : > { %v967_v43 = vpop.permute.xlu1 %966 }
 0x120   : > { %v4398_v24 = vsel %vm1128_vm4, %v1095_v25, %v967_v43  ;;  %v777_v4 = vpop.permute.xlu0 %776 }
 0x121   : > { %3338 = vmatmul.mubr.msk.f32.gmra.mxu0 %vm1180_vm3, %v4398_v24  ;;  %v1096_v21 = vsel %vm494_vm0, %v4031_v28, %v777_v4 }
 0x123   : > { %v1023_v14 = vpop.permute.xlu1 %1022 }
 0x124   : > { %v4405_v11 = vsel %vm1128_vm4, %v1123_v20, %v1023_v14  ;;  %v833_v16 = vpop.permute.xlu0 %832 }
 0x125   : > { %3380 = vmatmul.mubr.msk.f32.gmra.mxu1 %vm1180_vm3, %v4405_v11  ;;  %v1124_v18 = vsel %vm494_vm0, %v4033_v29, %v833_v16 }
 0x127   : > { %v779_v26 = vpop.permute.xlu1 %778 }
 0x128   : > { %v835_v42 = vpop.permute.xlu0 %834  ;;  %v1097_v29 = vsel %vm494_vm0, %v4039_v31, %v779_v26 }
 0x129   : > { %v1125_v25 = vsel %vm494_vm0, %v4045_v32, %v835_v42 }
 0x12b   : > { %v969_v12 = vpop.permute.xlu1 %968 }
 0x12c   : > { %v4414_v19 = vsel %vm1128_vm4, %v1096_v21, %v969_v12  ;;  %v1025_v27 = vpop.permute.xlu0 %1024 }
 0x12d   : > { %v4417_v52 = vsel %vm1128_vm4, %v1124_v18, %v1025_v27  ;;  %3340 = vmatprep.mubr.msk.f32.mxu0 %vm1180_vm3, %v4414_v19 }
 0x12e   : > { %3382 = vmatprep.mubr.msk.f32.mxu1 %vm1180_vm3, %v4417_v52 }
 0x12f   : > { %v971_v8 = vpop.permute.xlu1 %970 }
 0x130   : > { %v4426_v28 = vsel %vm1128_vm4, %v1097_v29, %v971_v8  ;;  %v781_v22 = vpop.permute.xlu0 %780 }
 0x131   : > { %3341 = vmatmul.mubr.msk.f32.gmra.mxu0 %vm1180_vm3, %v4426_v28  ;;  %v1098_v26 = vsel %vm494_vm0, %v4057_v36, %v781_v22 }
 0x133   : > { %v1027_v43 = vpop.permute.xlu1 %1026 }
 0x134   : > { %v4433_v4 = vsel %vm1128_vm4, %v1125_v25, %v1027_v43  ;;  %v837_v20 = vpop.permute.xlu0 %836 }
 0x135   : > { %3383 = vmatmul.mubr.msk.f32.gmra.mxu1 %vm1180_vm3, %v4433_v4  ;;  %v1126_v16 = vsel %vm494_vm0, %v4059_v37, %v837_v20 }
 0x137   : > { %v783_v31 = vpop.permute.xlu1 %782 }
 0x138   : > { %v839_v14 = vpop.permute.xlu0 %838  ;;  %v1099_v37 = vsel %vm494_vm0, %v4069_v41, %v783_v31 }
 0x139   : > { %v1127_v8 = vsel %vm494_vm0, %v4077_v44, %v839_v14 }
 0x13b   : > { %v973_v18 = vpop.permute.xlu1 %972 }
 0x13c   : > { %v4442_v21 = vsel %vm1128_vm4, %v1098_v26, %v973_v18  ;;  %v1029_v32 = vpop.permute.xlu0 %1028 }
 0x13d   : > { %v4445_v42 = vsel %vm1128_vm4, %v1126_v16, %v1029_v32  ;;  %3343 = vmatprep.mubr.msk.f32.mxu0 %vm1180_vm3, %v4442_v21 }
 0x13e   : > { %3385 = vmatprep.mubr.msk.f32.mxu1 %vm1180_vm3, %v4445_v42 }
 0x13f   : > { %v975_v12 = vpop.permute.xlu1 %974 }
 0x140   : > { %v4454_v36 = vsel %vm1128_vm4, %v1099_v37, %v975_v12  ;;  %v785_v27 = vpop.permute.xlu0 %784 }
 0x141   : > { %3344 = vmatmul.mubr.msk.f32.gmra.mxu0 %vm1180_vm3, %v4454_v36  ;;  %v1100_v29 = vsel %vm494_vm0, %v4108_v60, %v785_v27 }
 0x143   : > { %v1031_v22 = vpop.permute.xlu1 %1030 }
 0x144   : > { %v4463_v25 = vsel %vm1128_vm4, %v1127_v8, %v1031_v22  ;;  %v977_v43 = vpop.permute.xlu0 %976 }
 0x145   : > { %3386 = vmatmul.mubr.msk.f32.gmra.mxu1 %vm1180_vm3, %v4463_v25  ;;  %v4468_v41 = vsel %vm1128_vm4, %v1100_v29, %v977_v43 }
 0x146   : > { %3394 = vmatprep.mubr.msk.f32.mxu1 %vm1180_vm3, %v4159_v63  ;;  %3346 = vmatprep.mubr.msk.f32.mxu0 %vm1180_vm3, %v4468_v41 }
 0x147   : > { %v787_v60 = vpop.permute.xlu1 %786 }
 0x148   : > { %v789_v20 = vpop.permute.xlu0 %788  ;;  %v1101_v31 = vsel %vm494_vm0, %v4123_v7, %v787_v60 }
 0x149   : > { %3395 = vmatmul.mubr.msk.f32.vlgmr.msra.gmra.mxu1 %vm1180_vm3, %v4172_v30  ;;  %v1102_v44 = vsel %vm494_vm0, %v4168_v1, %v789_v20 }
 0x14a   : > { %3397 = vmatprep.mubr.msk.f32.mxu1 %vm1180_vm3, %v4176_v46 }
 0x14b   : > { %v979_v14 = vpop.permute.xlu1 %978 }
 0x14c   : > { %v4483_v16 = vsel %vm1128_vm4, %v1101_v31, %v979_v14  ;;  %v981_v26 = vpop.permute.xlu0 %980 }
 0x14d   : > { %3347 = vmatmul.mubr.msk.f32.gmra.mxu0 %vm1180_vm3, %v4483_v16  ;;  %3398 = vmatmul.mubr.msk.f32.gmra.mxu1 %vm1180_vm3, %v4204_v35  ;;  %v4490_v18 = vsel %vm1128_vm4, %v1102_v44, %v981_v26 }
 0x14e   : > { %3400 = vmatprep.mubr.msk.f32.mxu1 %vm1180_vm3, %v4233_v59  ;;  %3349 = vmatprep.mubr.msk.f32.mxu0 %vm1180_vm3, %v4490_v18 }
 0x14f   : > { %v791_v7 = vpop.permute.xlu1 %790 }
 0x150   : > { %v1103_v1 = vsel %vm494_vm0, %v4190_v38, %v791_v7 }
 0x151   : > { %3401 = vmatmul.mubr.msk.f32.gmra.mxu1 %vm1180_vm3, %v4248_v39 }
 0x152   : > { %3403 = vmatprep.mubr.msk.f32.mxu1 %vm1180_vm3, %v4273_v48 }
 0x153   : > { %v983_v32 = vpop.permute.xlu1 %982 }
 0x154   : > { %v4503_v37 = vsel %vm1128_vm4, %v1103_v1, %v983_v32 }
 0x155   : > { %3350 = vmatmul.mubr.msk.f32.gmra.mxu0 %vm1180_vm3, %v4503_v37  ;;  %3404 = vmatmul.mubr.msk.f32.gmra.mxu1 %vm1180_vm3, %v4287_v55 }
 0x156   : > { %3406 = vmatprep.mubr.msk.f32.mxu1 %vm1180_vm3, %v4302_v0  ;;  %3472 = vmatprep.mubr.msk.f32.mxu0 %vm1180_vm3, %v4159_v63  ;;  %v1678_v63 = vlaneseq }
 0x159   : > { %3407 = vmatmul.mubr.msk.f32.gmra.mxu1 %vm1180_vm3, %v4314_v6  ;;  %3473 = vmatmul.mubr.msk.f32.vlgmr.msra.gmra.mxu0 %vm1180_vm3, %v4172_v30  ;;  %v4541_v30 = vshrl.u32 %v1678_v63, 7 }
 0x15a   : > { %3409 = vmatprep.mubr.msk.f32.mxu1 %vm1180_vm3, %v4330_v53  ;;  %3475 = vmatprep.mubr.msk.f32.mxu0 %vm1180_vm3, %v4176_v46 }
 0x15b   : > { %vm1680_vm0 = vcmp.lt.s32.totalorder %v4541_v30, 1  ;;  %vm2588_vm6 = vcmp.lt.s32.totalorder %v4541_v30, 7  ;;  %v2842_v30 = vld [vmem:[%s4856_s22 + $0xe8] sm:$0xff] }
 0x15d   : > { %3410 = vmatmul.mubr.msk.f32.gmra.mxu1 %vm1180_vm3, %v4342_v15  ;;  %3476 = vmatmul.mubr.msk.f32.gmra.mxu0 %vm1180_vm3, %v4204_v35 }
 0x15e   : > { %3412 = vmatprep.mubr.msk.f32.mxu1 %vm1180_vm3, %v4358_v17  ;;  %3478 = vmatprep.mubr.msk.f32.mxu0 %vm1180_vm3, %v4233_v59 }
 0x161   : > { %3413 = vmatmul.mubr.msk.f32.gmra.mxu1 %vm1180_vm3, %v4370_v9  ;;  %3479 = vmatmul.mubr.msk.f32.gmra.mxu0 %vm1180_vm3, %v4248_v39 }
 0x162   : > { %3415 = vmatprep.mubr.msk.f32.mxu1 %vm1180_vm3, %v4386_v61  ;;  %3481 = vmatprep.mubr.msk.f32.mxu0 %vm1180_vm3, %v4273_v48 }
 0x165   : > { %3416 = vmatmul.mubr.msk.f32.gmra.mxu1 %vm1180_vm3, %v4398_v24  ;;  %3482 = vmatmul.mubr.msk.f32.gmra.mxu0 %vm1180_vm3, %v4287_v55 }
 0x166   : > { %3418 = vmatprep.mubr.msk.f32.mxu1 %vm1180_vm3, %v4414_v19  ;;  %3484 = vmatprep.mubr.msk.f32.mxu0 %vm1180_vm3, %v4302_v0 }
 0x167   : > { %v3354_v46 = vpop.f32.mrf.mxu1 }
 0x168   : > { %v1654_v35 = vrot.slane %v3354_v46, 7 }
 0x169   : > { %v1511_v38 = vpop.f32.mrf.mxu1  ;;  %3419 = vmatmul.mubr.msk.f32.gmra.mxu1 %vm1180_vm3, %v4426_v28  ;;  %3485 = vmatmul.mubr.msk.f32.gmra.mxu0 %vm1180_vm3, %v4314_v6 }
 0x16a   : > { %v1638_v59 = vrot.slane %v1511_v38, 7  ;;  %3421 = vmatprep.mubr.msk.f32.mxu1 %vm1180_vm3, %v4442_v21  ;;  %3487 = vmatprep.mubr.msk.f32.mxu0 %vm1180_vm3, %v4330_v53 }
 0x16c   : > { %v1705_v39 = vsel %vm1680_vm0, %v1638_v59, %v1654_v35 }
 0x16d   : > { %1755 = vst.msk [vmem:[#allocation3 + $0xc8] sm:$0xff] %vm1729_vm5, %v1705_v39  ;;  %v3357_v48 = vpop.f32.mrf.mxu1  ;;  %3422 = vmatmul.mubr.msk.f32.gmra.mxu1 %vm1180_vm3, %v4454_v36  ;;  %3488 = vmatmul.mubr.msk.f32.gmra.mxu0 %vm1180_vm3, %v4342_v15 }
 0x16e   : > { %3424 = vmatprep.mubr.msk.f32.mxu1 %vm1180_vm3, %v4468_v41  ;;  %3490 = vmatprep.mubr.msk.f32.mxu0 %vm1180_vm3, %v4358_v17  ;;  %v1639_v17 = vrot.slane %v3357_v48, 7 }
 0x16f   : > { %v1521_v55 = vpop.f32.mrf.mxu1 }
 0x170   : > { %v1670_v0 = vrot.slane %v1521_v55, 7 }
 0x171   : > { %3425 = vmatmul.mubr.msk.f32.gmra.mxu1 %vm1180_vm3, %v4483_v16  ;;  %3491 = vmatmul.mubr.msk.f32.gmra.mxu0 %vm1180_vm3, %v4370_v9 }
 0x172   : > { %v1689_v6 = vsel %vm1680_vm0, %v1654_v35, %v1670_v0  ;;  %v1721_v53 = vsel %vm1680_vm0, %v1670_v0, %v1638_v59  ;;  %3427 = vmatprep.mubr.msk.f32.mxu1 %vm1180_vm3, %v4490_v18  ;;  %3493 = vmatprep.mubr.msk.f32.mxu0 %vm1180_vm3, %v4386_v61 }
 0x173   : > { %1754 = vst.msk [vmem:[#allocation3 + $0xc0] sm:$0xff] %vm1729_vm5, %v1721_v53  ;;  %1756 = vst.msk [vmem:[#allocation3 + $0xd0] sm:$0xff] %vm1729_vm5, %v1689_v6  ;;  %v3360_v15 = vpop.f32.mrf.mxu1 }
 0x174   : > { %v1671_v12 = vrot.slane %v3360_v15, 7 }
 0x175   : > { %v1531_v9 = vpop.f32.mrf.mxu1  ;;  %3428 = vmatmul.mubr.msk.f32.gmra.mxu1 %vm1180_vm3, %v4503_v37  ;;  %3494 = vmatmul.mubr.msk.f32.gmra.mxu0 %vm1180_vm3, %v4398_v24 }
 0x176   : > { %v1722_v27 = vsel %vm1680_vm0, %v1671_v12, %v1639_v17  ;;  %v1655_v29 = vrot.slane %v1531_v9, 7  ;;  %3430 = vmatprep.mubr.msk.f32.mxu1 %vm1180_vm3, %v4091_v50  ;;  %3496 = vmatprep.mubr.msk.f32.mxu0 %vm1180_vm3, %v4414_v19 }
 0x177   : > { %1757 = vst.msk [vmem:[#allocation3 + $0xd8] sm:$0xff] %vm1729_vm5, %v1722_v27 }
 0x178   : > { %v1690_v61 = vsel %vm1680_vm0, %v1655_v29, %v1671_v12  ;;  %v1706_v8 = vsel %vm1680_vm0, %v1639_v17, %v1655_v29 }
 0x179   : > { %1758 = vst.msk [vmem:[#allocation3 + $0xe0] sm:$0xff] %vm1729_vm5, %v1706_v8  ;;  %1759 = vst.msk [vmem:[#allocation3 + $0xe8] sm:$0xff] %vm1729_vm5, %v1690_v61  ;;  %v3318_v24 = vpop.f32.mrf.mxu0  ;;  %3431 = vmatmul.mubr.msk.f32.gmra.mxu1 %vm1180_vm3, %v4106_v58  ;;  %3497 = vmatmul.mubr.msk.f32.gmra.mxu0 %vm1180_vm3, %v4426_v28 }
 0x17a   : > { %3433 = vmatprep.mubr.msk.f32.mxu1 %vm1180_vm3, %v4111_v62  ;;  %3499 = vmatprep.mubr.msk.f32.mxu0 %vm1180_vm3, %v4442_v21  ;;  %v1646_v22 = vrot.slane %v3318_v24, 7 }
 0x17b   : > { %v1391_v19 = vpop.f32.mrf.mxu0 }
 0x17c   : > { %v1630_v43 = vrot.slane %v1391_v19, 7 }
 0x17d   : > { %3434 = vmatmul.mubr.msk.f32.gmra.mxu1 %vm1180_vm3, %v4128_v13  ;;  %3500 = vmatmul.mubr.msk.f32.gmra.mxu0 %vm1180_vm3, %v4454_v36 }
 0x17e   : > { %v1697_v60 = vsel %vm1680_vm0, %v1630_v43, %v1646_v22  ;;  %3436 = vmatprep.mubr.msk.f32.mxu1 %vm1180_vm3, %v4141_v49  ;;  %3502 = vmatprep.mubr.msk.f32.mxu0 %vm1180_vm3, %v4468_v41 }
 0x17f   : > { %1731 = vst.msk [vmem:[#allocation3 + $0x8] sm:$0xff] %vm1729_vm5, %v1697_v60 }
 0x181   : > { %v3321_v28 = vpop.f32.mrf.mxu0  ;;  %3437 = vmatmul.mubr.msk.f32.gmra.mxu1 %vm1180_vm3, %v4149_v23  ;;  %3503 = vmatmul.mubr.msk.f32.gmra.mxu0 %vm1180_vm3, %v4483_v16 }
 0x182   : > { %3439 = vmatprep.mubr.msk.f32.mxu1 %vm1180_vm3, %v4193_v54  ;;  %3505 = vmatprep.mubr.msk.f32.mxu0 %vm1180_vm3, %v4490_v18 }
 0x183   : > { %v1401_v21 = vpop.f32.mrf.mxu0 }
 0x184   : > { %v1662_v36 = vrot.slane %v1401_v21, 7 }
 0x185   : > { %v3363_v20 = vpop.f32.mrf.mxu1  ;;  %3440 = vmatmul.mubr.msk.f32.gmra.mxu1 %vm1180_vm3, %v4216_v34  ;;  %3506 = vmatmul.mubr.msk.f32.gmra.mxu0 %vm1180_vm3, %v4503_v37 }
 0x186   : > { %v1681_v41 = vsel %vm1680_vm0, %v1646_v22, %v1662_v36  ;;  %v1713_v44 = vsel %vm1680_vm0, %v1662_v36, %v1630_v43  ;;  %3442 = vmatprep.mubr.msk.f32.mxu1 %vm1180_vm3, %v4236_v5  ;;  %3508 = vmatprep.mubr.msk.f32.mxu0 %vm1180_vm3, %v4091_v50  ;;  %v1656_v14 = vrot.slane %v3363_v20, 7 }
 0x187   : > { %1730 = vst.msk [vmem:[#allocation3] sm:$0xff] %vm1729_vm5, %v1713_v44  ;;  %1732 = vst.msk [vmem:[#allocation3 + $0x10] sm:$0xff] %vm1729_vm5, %v1681_v41  ;;  %v1541_v31 = vpop.f32.mrf.mxu1 }
 0x188   : > { %v1640_v16 = vrot.slane %v1541_v31, 7 }
 0x189   : > { %3443 = vmatmul.mubr.msk.f32.gmra.mxu1 %vm1180_vm3, %v4258_v40  ;;  %3509 = vmatmul.mubr.msk.f32.gmra.mxu0 %vm1180_vm3, %v4106_v58  ;;  %v1631_v58 = vrot.slane %v3321_v28, 7 }
 0x18a   : > { %v1707_v26 = vsel %vm1680_vm0, %v1640_v16, %v1656_v14  ;;  %3445 = vmatprep.mubr.msk.f32.mxu1 %vm1180_vm3, %v4276_v51  ;;  %3511 = vmatprep.mubr.msk.f32.mxu0 %vm1180_vm3, %v4111_v62 }
 0x18b   : > { %1761 = vst.msk [vmem:[#allocation3 + $0xf8] sm:$0xff] %vm1729_vm5, %v1707_v26 }
 0x18d   : > { %3446 = vmatmul.mubr.msk.f32.gmra.mxu1 %vm1180_vm3, %v4294_v10  ;;  %3512 = vmatmul.mubr.msk.f32.gmra.mxu0 %vm1180_vm3, %v4128_v13 }
 0x18e   : > { %3448 = vmatprep.mubr.msk.f32.mxu1 %vm1180_vm3, %v4305_v3  ;;  %3514 = vmatprep.mubr.msk.f32.mxu0 %vm1180_vm3, %v4141_v49 }
 0x191   : > { %v3324_v50 = vpop.f32.mrf.mxu0  ;;  %3449 = vmatmul.mubr.msk.f32.gmra.mxu1 %vm1180_vm3, %v4321_v47  ;;  %3515 = vmatmul.mubr.msk.f32.gmra.mxu0 %vm1180_vm3, %v4149_v23 }
 0x192   : > { %v1663_v62 = vrot.slane %v3324_v50, 7  ;;  %3451 = vmatprep.mubr.msk.f32.mxu1 %vm1180_vm3, %v4333_v2  ;;  %3517 = vmatprep.mubr.msk.f32.mxu0 %vm1180_vm3, %v4193_v54 }
 0x193   : > { %v1411_v13 = vpop.f32.mrf.mxu0 }
 0x194   : > { %v1714_v18 = vsel %vm1680_vm0, %v1663_v62, %v1631_v58  ;;  %v1647_v49 = vrot.slane %v1411_v13, 7 }
 0x195   : > { %1733 = vst.msk [vmem:[#allocation3 + $0x18] sm:$0xff] %vm1729_vm5, %v1714_v18  ;;  %v3366_v7 = vpop.f32.mrf.mxu1  ;;  %3452 = vmatmul.mubr.msk.f32.gmra.mxu1 %vm1180_vm3, %v4349_v56  ;;  %3518 = vmatmul.mubr.msk.f32.gmra.mxu0 %vm1180_vm3, %v4216_v34 }
 0x196   : > { %v1682_v23 = vsel %vm1680_vm0, %v1647_v49, %v1663_v62  ;;  %v1698_v54 = vsel %vm1680_vm0, %v1631_v58, %v1647_v49  ;;  %3454 = vmatprep.mubr.msk.f32.mxu1 %vm1180_vm3, %v4361_v33  ;;  %3520 = vmatprep.mubr.msk.f32.mxu0 %vm1180_vm3, %v4236_v5 }
 0x197   : > { %1734 = vst.msk [vmem:[#allocation3 + $0x20] sm:$0xff] %vm1729_vm5, %v1698_v54  ;;  %1735 = vst.msk [vmem:[#allocation3 + $0x28] sm:$0xff] %vm1729_vm5, %v1682_v23  ;;  %v1551_v1 = vpop.f32.mrf.mxu1 }
 0x198   : > { %v1672_v32 = vrot.slane %v1551_v1, 7 }
 0x199   : > { %3455 = vmatmul.mubr.msk.f32.gmra.mxu1 %vm1180_vm3, %v4377_v45  ;;  %3521 = vmatmul.mubr.msk.f32.gmra.mxu0 %vm1180_vm3, %v4258_v40 }
 0x19a   : > { %v1691_v34 = vsel %vm1680_vm0, %v1656_v14, %v1672_v32  ;;  %v1723_v37 = vsel %vm1680_vm0, %v1672_v32, %v1640_v16  ;;  %3457 = vmatprep.mubr.msk.f32.mxu1 %vm1180_vm3, %v4389_v57  ;;  %3523 = vmatprep.mubr.msk.f32.mxu0 %vm1180_vm3, %v4276_v51 }
 0x19b   : > { %1760 = vst.msk [vmem:[#allocation3 + $0xf0] sm:$0xff] %vm1729_vm5, %v1723_v37  ;;  %1762 = vst.msk [vmem:[#allocation3 + $0x100] sm:$0xff] %vm1729_vm5, %v1691_v34 }
 0x19d   : > { %3458 = vmatmul.mubr.msk.f32.gmra.mxu1 %vm1180_vm3, %v4405_v11  ;;  %3524 = vmatmul.mubr.msk.f32.gmra.mxu0 %vm1180_vm3, %v4294_v10 }
 0x19e   : > { %3460 = vmatprep.mubr.msk.f32.mxu1 %vm1180_vm3, %v4417_v52  ;;  %3526 = vmatprep.mubr.msk.f32.mxu0 %vm1180_vm3, %v4305_v3  ;;  %v1641_v3 = vrot.slane %v3366_v7, 7 }
 0x1a1   : > { %v3327_v5 = vpop.f32.mrf.mxu0  ;;  %3461 = vmatmul.mubr.msk.f32.gmra.mxu1 %vm1180_vm3, %v4433_v4  ;;  %3527 = vmatmul.mubr.msk.f32.gmra.mxu0 %vm1180_vm3, %v4321_v47 }
 0x1a2   : > { %3463 = vmatprep.mubr.msk.f32.mxu1 %vm1180_vm3, %v4445_v42  ;;  %3529 = vmatprep.mubr.msk.f32.mxu0 %vm1180_vm3, %v4333_v2  ;;  %v1648_v51 = vrot.slane %v3327_v5, 7 }
 0x1a3   : > { %v1421_v40 = vpop.f32.mrf.mxu0 }
 0x1a4   : > { %v1632_v10 = vrot.slane %v1421_v40, 7 }
 0x1a5   : > { %v3369_v63 = vpop.f32.mrf.mxu1  ;;  %3464 = vmatmul.mubr.msk.f32.gmra.mxu1 %vm1180_vm3, %v4463_v25  ;;  %3530 = vmatmul.mubr.msk.f32.gmra.mxu0 %vm1180_vm3, %v4349_v56 }
 0x1a6   : > { %v1699_v47 = vsel %vm1680_vm0, %v1632_v10, %v1648_v51  ;;  %v1673_v46 = vrot.slane %v3369_v63, 7  ;;  %3532 = vmatprep.mubr.msk.f32.mxu0 %vm1180_vm3, %v4361_v33 }
 0x1a7   : > { %1737 = vst.msk [vmem:[#allocation3 + $0x38] sm:$0xff] %vm1729_vm5, %v1699_v47  ;;  %v1561_v2 = vpop.f32.mrf.mxu1 }
 0x1a8   : > { %v1724_v38 = vsel %vm1680_vm0, %v1673_v46, %v1641_v3  ;;  %v1657_v35 = vrot.slane %v1561_v2, 7 }
 0x1a9   : > { %1763 = vst.msk [vmem:[#allocation3 + $0x108] sm:$0xff] %vm1729_vm5, %v1724_v38  ;;  %3533 = vmatmul.mubr.msk.f32.gmra.mxu0 %vm1180_vm3, %v4377_v45 }
 0x1aa   : > { %v1692_v56 = vsel %vm1680_vm0, %v1657_v35, %v1673_v46  ;;  %v1708_v59 = vsel %vm1680_vm0, %v1641_v3, %v1657_v35  ;;  %3535 = vmatprep.mubr.msk.f32.mxu0 %vm1180_vm3, %v4389_v57 }
 0x1ab   : > { %1764 = vst.msk [vmem:[#allocation3 + $0x110] sm:$0xff] %vm1729_vm5, %v1708_v59  ;;  %1765 = vst.msk [vmem:[#allocation3 + $0x118] sm:$0xff] %vm1729_vm5, %v1692_v56 }
 0x1ad   : > { %3536 = vmatmul.mubr.msk.f32.gmra.mxu0 %vm1180_vm3, %v4405_v11 }
 0x1ae   : > { %3538 = vmatprep.mubr.msk.f32.mxu0 %vm1180_vm3, %v4417_v52 }
 0x1b1   : > { %v3330_v33 = vpop.f32.mrf.mxu0  ;;  %3539 = vmatmul.mubr.msk.f32.gmra.mxu0 %vm1180_vm3, %v4433_v4 }
 0x1b2   : > { %3541 = vmatprep.mubr.msk.f32.mxu0 %vm1180_vm3, %v4445_v42 }
 0x1b3   : > { %v1431_v45 = vpop.f32.mrf.mxu0 }
 0x1b4   : > { %v1664_v39 = vrot.slane %v1431_v45, 7 }
 0x1b5   : > { %v3372_v57 = vpop.f32.mrf.mxu1  ;;  %3542 = vmatmul.mubr.msk.f32.gmra.mxu0 %vm1180_vm3, %v4463_v25  ;;  %v1633_v25 = vrot.slane %v3330_v33, 7 }
 0x1b6   : > { %v1683_v48 = vsel %vm1680_vm0, %v1648_v51, %v1664_v39  ;;  %v1715_v11 = vsel %vm1680_vm0, %v1664_v39, %v1632_v10  ;;  %v1658_v4 = vrot.slane %v3372_v57, 7 }
 0x1b7   : > { %1736 = vst.msk [vmem:[#allocation3 + $0x30] sm:$0xff] %vm1729_vm5, %v1715_v11  ;;  %1738 = vst.msk [vmem:[#allocation3 + $0x40] sm:$0xff] %vm1729_vm5, %v1683_v48  ;;  %v1571_v52 = vpop.f32.mrf.mxu1 }
 0x1b8   : > { %v1642_v55 = vrot.slane %v1571_v52, 7 }
 0x1ba   : > { %v1709_v42 = vsel %vm1680_vm0, %v1642_v55, %v1658_v4 }
 0x1bb   : > { %1767 = vst.msk [vmem:[#allocation3 + $0x128] sm:$0xff] %vm1729_vm5, %v1709_v42 }
 0x1c1   : > { %v3333_v0 = vpop.f32.mrf.mxu0 }
 0x1c2   : > { %v1665_v6 = vrot.slane %v3333_v0, 7 }
 0x1c3   : > { %v1441_v53 = vpop.f32.mrf.mxu0 }
 0x1c4   : > { %v1716_v15 = vsel %vm1680_vm0, %v1665_v6, %v1633_v25  ;;  %v1649_v17 = vrot.slane %v1441_v53, 7  ;;  %v2087_v53 = vld [vmem:[#allocation3] sm:$0xff] }
 0x1c5   : > { %1739 = vst.msk [vmem:[#allocation3 + $0x48] sm:$0xff] %vm1729_vm5, %v1716_v15  ;;  %v3375_v12 = vpop.f32.mrf.mxu1 }
 0x1c6   : > { %v1684_v9 = vsel %vm1680_vm0, %v1649_v17, %v1665_v6  ;;  %v1700_v27 = vsel %vm1680_vm0, %v1633_v25, %v1649_v17  ;;  %v1643_v21 = vrot.slane %v3375_v12, 7 }
 0x1c7   : > { %1740 = vst.msk [vmem:[#allocation3 + $0x50] sm:$0xff] %vm1729_vm5, %v1700_v27  ;;  %1741 = vst.msk [vmem:[#allocation3 + $0x58] sm:$0xff] %vm1729_vm5, %v1684_v9  ;;  %v1581_v29 = vpop.f32.mrf.mxu1  ;;  %v2090_v9 = vld [vmem:[#allocation3 + $0x18] sm:$0xff] }
 0x1c8   : > { %v1674_v61 = vrot.slane %v1581_v29, 7 }
 0x1ca   : > { %v1693_v8 = vsel %vm1680_vm0, %v1658_v4, %v1674_v61  ;;  %v1725_v24 = vsel %vm1680_vm0, %v1674_v61, %v1642_v55  ;;  %v2088_v55 = vld [vmem:[#allocation3 + $0x8] sm:$0xff] }
 0x1cb   : > { %1766 = vst.msk [vmem:[#allocation3 + $0x120] sm:$0xff] %vm1729_vm5, %v1725_v24  ;;  %1768 = vst.msk [vmem:[#allocation3 + $0x130] sm:$0xff] %vm1729_vm5, %v1693_v8  ;;  %v2089_v8 = vld [vmem:[#allocation3 + $0x10] sm:$0xff] }
 0x1d1   : > { %v3336_v19 = vpop.f32.mrf.mxu0 }
 0x1d2   : > { %v1650_v43 = vrot.slane %v3336_v19, 7 }
 0x1d3   : > { %v1451_v22 = vpop.f32.mrf.mxu0 }
 0x1d4   : > { %v1634_v60 = vrot.slane %v1451_v22, 7 }
 0x1d5   : > { %v3378_v28 = vpop.f32.mrf.mxu1 }
 0x1d6   : > { %v1701_v36 = vsel %vm1680_vm0, %v1634_v60, %v1650_v43  ;;  %v1675_v20 = vrot.slane %v3378_v28, 7 }
 0x1d7   : > { %1743 = vst.msk [vmem:[#allocation3 + $0x68] sm:$0xff] %vm1729_vm5, %v1701_v36  ;;  %v1591_v41 = vpop.f32.mrf.mxu1 }
 0x1d8   : > { %v1726_v44 = vsel %vm1680_vm0, %v1675_v20, %v1643_v21  ;;  %v1659_v31 = vrot.slane %v1591_v41, 7 }
 0x1d9   : > { %1769 = vst.msk [vmem:[#allocation3 + $0x138] sm:$0xff] %vm1729_vm5, %v1726_v44 }
 0x1da   : > { %v1694_v14 = vsel %vm1680_vm0, %v1659_v31, %v1675_v20  ;;  %v1710_v16 = vsel %vm1680_vm0, %v1643_v21, %v1659_v31  ;;  %v2091_v20 = vld [vmem:[#allocation3 + $0x20] sm:$0xff] }
 0x1db   : > { %1770 = vst.msk [vmem:[#allocation3 + $0x140] sm:$0xff] %vm1729_vm5, %v1710_v16  ;;  %1771 = vst.msk [vmem:[#allocation3 + $0x148] sm:$0xff] %vm1729_vm5, %v1694_v14  ;;  %v2094_v14 = vld [vmem:[#allocation3 + $0x38] sm:$0xff] }
 0x1e1   : > { %v3339_v26 = vpop.f32.mrf.mxu0 }
 0x1e2   : > { %v1635_v32 = vrot.slane %v3339_v26, 7 }
 0x1e3   : > { %v1461_v50 = vpop.f32.mrf.mxu0 }
 0x1e4   : > { %v1666_v58 = vrot.slane %v1461_v50, 7 }
 0x1e5   : > { %v3381_v62 = vpop.f32.mrf.mxu1 }
 0x1e6   : > { %v1685_v13 = vsel %vm1680_vm0, %v1650_v43, %v1666_v58  ;;  %v1717_v18 = vsel %vm1680_vm0, %v1666_v58, %v1634_v60  ;;  %v1660_v7 = vrot.slane %v3381_v62, 7  ;;  %v2092_v43 = vld [vmem:[#allocation3 + $0x28] sm:$0xff] }
 0x1e7   : > { %1742 = vst.msk [vmem:[#allocation3 + $0x60] sm:$0xff] %vm1729_vm5, %v1717_v18  ;;  %1744 = vst.msk [vmem:[#allocation3 + $0x70] sm:$0xff] %vm1729_vm5, %v1685_v13  ;;  %v1601_v49 = vpop.f32.mrf.mxu1  ;;  %v2093_v13 = vld [vmem:[#allocation3 + $0x30] sm:$0xff] }
 0x1e8   : > { %v1644_v23 = vrot.slane %v1601_v49, 7 }
 0x1ea   : > { %v1711_v54 = vsel %vm1680_vm0, %v1644_v23, %v1660_v7 }
 0x1eb   : > { %1773 = vst.msk [vmem:[#allocation3 + $0x158] sm:$0xff] %vm1729_vm5, %v1711_v54  ;;  %v2096_v54 = vld [vmem:[#allocation3 + $0x48] sm:$0xff] }
 0x1f1   : > { %v3342_v1 = vpop.f32.mrf.mxu0 }
 0x1f2   : > { %v1667_v34 = vrot.slane %v3342_v1, 7 }
 0x1f3   : > { %v1471_v37 = vpop.f32.mrf.mxu0 }
 0x1f4   : > { %v1718_v5 = vsel %vm1680_vm0, %v1667_v34, %v1635_v32  ;;  %v1651_v40 = vrot.slane %v1471_v37, 7 }
 0x1f5   : > { %1745 = vst.msk [vmem:[#allocation3 + $0x78] sm:$0xff] %vm1729_vm5, %v1718_v5  ;;  %v3384_v51 = vpop.f32.mrf.mxu1 }
 0x1f6   : > { %v1686_v10 = vsel %vm1680_vm0, %v1651_v40, %v1667_v34  ;;  %v1702_v63 = vsel %vm1680_vm0, %v1635_v32, %v1651_v40  ;;  %v1645_v45 = vrot.slane %v3384_v51, 7  ;;  %v2095_v40 = vld [vmem:[#allocation3 + $0x40] sm:$0xff] }
 0x1f7   : > { %1746 = vst.msk [vmem:[#allocation3 + $0x80] sm:$0xff] %vm1729_vm5, %v1702_v63  ;;  %1747 = vst.msk [vmem:[#allocation3 + $0x88] sm:$0xff] %vm1729_vm5, %v1686_v10  ;;  %v1611_v3 = vpop.f32.mrf.mxu1 }
 0x1f8   : > { %v1676_v47 = vrot.slane %v1611_v3, 7 }
 0x1fa   : > { %v1695_v46 = vsel %vm1680_vm0, %v1660_v7, %v1676_v47  ;;  %v1727_v2 = vsel %vm1680_vm0, %v1676_v47, %v1644_v23 }
 0x1fb   : > { %1772 = vst.msk [vmem:[#allocation3 + $0x150] sm:$0xff] %vm1729_vm5, %v1727_v2  ;;  %1774 = vst.msk [vmem:[#allocation3 + $0x160] sm:$0xff] %vm1729_vm5, %v1695_v46  ;;  %v2098_v46 = vld [vmem:[#allocation3 + $0x58] sm:$0xff] }
 0x201   : > { %v3345_v38 = vpop.f32.mrf.mxu0 }
 0x202   : > { %v1652_v56 = vrot.slane %v3345_v38, 7 }
 0x203   : > { %v1481_v35 = vpop.f32.mrf.mxu0 }
 0x204   : > { %v1636_v59 = vrot.slane %v1481_v35, 7 }
 0x205   : > { %v3387_v33 = vpop.f32.mrf.mxu1 }
 0x206   : > { %v1703_v39 = vsel %vm1680_vm0, %v1636_v59, %v1652_v56  ;;  %v1677_v57 = vrot.slane %v3387_v33, 7 }
 0x207   : > { %1749 = vst.msk [vmem:[#allocation3 + $0x98] sm:$0xff] %vm1729_vm5, %v1703_v39  ;;  %v1621_v48 = vpop.f32.mrf.mxu1 }
 0x208   : > { %v1728_v11 = vsel %vm1680_vm0, %v1677_v57, %v1645_v45  ;;  %v1661_v52 = vrot.slane %v1621_v48, 7 }
 0x209   : > { %1775 = vst.msk [vmem:[#allocation3 + $0x168] sm:$0xff] %vm1729_vm5, %v1728_v11  ;;  %v3396_v4 = vpop.f32.mrf.mxu1 }
 0x20a   : > { %v1696_v42 = vsel %vm1680_vm0, %v1661_v52, %v1677_v57  ;;  %v1712_v0 = vsel %vm1680_vm0, %v1645_v45, %v1661_v52  ;;  %v2136_v25 = vadd.f32 %v3396_v4, %v2088_v55  ;;  %v2097_v45 = vld [vmem:[#allocation3 + $0x50] sm:$0xff]  ;;  %v2100_v4 = vld [vmem:[#allocation3 + $0x68] sm:$0xff] }
 0x20b   : > { %1776 = vst.msk [vmem:[#allocation3 + $0x170] sm:$0xff] %vm1729_vm5, %v1712_v0  ;;  %1777 = vst.msk [vmem:[#allocation3 + $0x178] sm:$0xff] %vm1729_vm5, %v1696_v42  ;;  %v1848_v6 = vpop.f32.mrf.mxu1 }
 0x20c   : > { %2184 = vst.msk [vmem:[#allocation3 + $0x8] sm:$0xff] %vm1729_vm5, %v2136_v25  ;;  %v2135_v15 = vadd.f32 %v2087_v53, %v1848_v6 }
 0x20d   : > { %v3348_v17 = vpop.f32.mrf.mxu0  ;;  %v3399_v12 = vpop.f32.mrf.mxu1 }
 0x20e   : > { %2183 = vst.msk [vmem:[#allocation3] sm:$0xff] %vm1729_vm5, %v2135_v15  ;;  %v2138_v27 = vadd.f32 %v3399_v12, %v2090_v9  ;;  %v1637_v16 = vrot.slane %v3348_v17, 7 }
 0x20f   : > { %v1491_v29 = vpop.f32.mrf.mxu0  ;;  %v1858_v61 = vpop.f32.mrf.mxu1 }
 0x210   : > { %2186 = vst.msk [vmem:[#allocation3 + $0x18] sm:$0xff] %vm1729_vm5, %v2138_v27  ;;  %v1668_v24 = vrot.slane %v1491_v29, 7  ;;  %v2137_v19 = vadd.f32 %v2089_v8, %v1858_v61  ;;  %v2099_v27 = vld [vmem:[#allocation3 + $0x60] sm:$0xff] }
 0x211   : > { %v3402_v22 = vpop.f32.mrf.mxu1 }
 0x212   : > { %v1687_v60 = vsel %vm1680_vm0, %v1652_v56, %v1668_v24  ;;  %v1719_v28 = vsel %vm1680_vm0, %v1668_v24, %v1636_v59  ;;  %2185 = vst.msk [vmem:[#allocation3 + $0x10] sm:$0xff] %vm1729_vm5, %v2137_v19  ;;  %v2140_v21 = vadd.f32 %v3402_v22, %v2092_v43 }
 0x213   : > { %1748 = vst.msk [vmem:[#allocation3 + $0x90] sm:$0xff] %vm1729_vm5, %v1719_v28  ;;  %1750 = vst.msk [vmem:[#allocation3 + $0xa0] sm:$0xff] %vm1729_vm5, %v1687_v60  ;;  %v1868_v36 = vpop.f32.mrf.mxu1  ;;  %v2638_v25 = vld [vmem:[#allocation3 + $0x8] sm:$0xff]  ;;  %v2102_v60 = vld [vmem:[#allocation3 + $0x78] sm:$0xff] }
 0x214   : > { %2188 = vst.msk [vmem:[#allocation3 + $0x28] sm:$0xff] %vm1729_vm5, %v2140_v21  ;;  %v2139_v41 = vadd.f32 %v2091_v20, %v1868_v36  ;;  %v2813_v21 = vld [vmem:[%s4856_s22] sm:$0xff] }
 0x215   : > { %v3351_v44 = vpop.f32.mrf.mxu0  ;;  %v3405_v31 = vpop.f32.mrf.mxu1  ;;  %v2637_v35 = vld [vmem:[#allocation3] sm:$0xff] }
 0x216   : > { %2187 = vst.msk [vmem:[#allocation3 + $0x20] sm:$0xff] %vm1729_vm5, %v2139_v41  ;;  %v1669_v26 = vrot.slane %v3351_v44, 7  ;;  %v2142_v50 = vadd.f32 %v3405_v31, %v2094_v14 }
 0x217   : > { %v1501_v58 = vpop.f32.mrf.mxu0  ;;  %v1878_v62 = vpop.f32.mrf.mxu1  ;;  %v2640_v41 = vld [vmem:[#allocation3 + $0x18] sm:$0xff] }
 0x218   : > { %v1720_v18 = vsel %vm1680_vm0, %v1669_v26, %v1637_v16  ;;  %2190 = vst.msk [vmem:[#allocation3 + $0x38] sm:$0xff] %vm1729_vm5, %v2142_v50  ;;  %v1653_v49 = vrot.slane %v1501_v58, 7  ;;  %v2141_v7 = vadd.f32 %v2093_v13, %v1878_v62  ;;  %v2101_v50 = vld [vmem:[#allocation3 + $0x70] sm:$0xff] }
 0x219   : > { %1751 = vst.msk [vmem:[#allocation3 + $0xa8] sm:$0xff] %vm1729_vm5, %v1720_v18  ;;  %v3408_v23 = vpop.f32.mrf.mxu1  ;;  %v3474_v1 = vpop.f32.mrf.mxu0  ;;  %v2639_v6 = vld [vmem:[#allocation3 + $0x10] sm:$0xff] }
 0x21a   : > { %v1688_v32 = vsel %vm1680_vm0, %v1653_v49, %v1669_v26  ;;  %v1704_v34 = vsel %vm1680_vm0, %v1637_v16, %v1653_v49  ;;  %2189 = vst.msk [vmem:[#allocation3 + $0x30] sm:$0xff] %vm1729_vm5, %v2141_v7  ;;  %v2144_v37 = vadd.f32 %v3408_v23, %v2096_v54  ;;  %v2556_v10 = vrot.slane %v3474_v1, 1  ;;  %v2104_v54 = vld [vmem:[#allocation3 + $0x88] sm:$0xff] }
 0x21b   : > { %1752 = vst.msk [vmem:[#allocation3 + $0xb0] sm:$0xff] %vm1729_vm5, %v1704_v34  ;;  %1753 = vst.msk [vmem:[#allocation3 + $0xb8] sm:$0xff] %vm1729_vm5, %v1688_v32  ;;  %v1888_v5 = vpop.f32.mrf.mxu1  ;;  %v2301_v51 = vpop.f32.mrf.mxu0  ;;  %v2642_v8 = vld [vmem:[#allocation3 + $0x28] sm:$0xff]  ;;  %v2814_v32 = vld [vmem:[%s4856_s22 + $0x8] sm:$0xff] }
 0x21c   : > { %2192 = vst.msk [vmem:[#allocation3 + $0x48] sm:$0xff] %vm1729_vm5, %v2144_v37  ;;  %v2143_v63 = vadd.f32 %v2095_v40, %v1888_v5  ;;  %v2540_v3 = vrot.slane %v2301_v51, 1 }
 0x21d   : > { %v3411_v47 = vpop.f32.mrf.mxu1  ;;  %v3477_v2 = vpop.f32.mrf.mxu0  ;;  %v2641_v44 = vld [vmem:[#allocation3 + $0x20] sm:$0xff] }
 0x21e   : > { %2191 = vst.msk [vmem:[#allocation3 + $0x40] sm:$0xff] %vm1729_vm5, %v2143_v63  ;;  %v2605_v38 = vsel %vm2588_vm6, %v2540_v3, %v2556_v10  ;;  %v2146_v56 = vadd.f32 %v3411_v47, %v2098_v46  ;;  %v2541_v11 = vrot.slane %v3477_v2, 1 }
 0x21f   : > { %v2685_v59 = vadd.f32 %v2637_v35, %v2605_v38  ;;  %v1898_v33 = vpop.f32.mrf.mxu1  ;;  %v2311_v39 = vpop.f32.mrf.mxu0  ;;  %v2815_v38 = vld [vmem:[%s4856_s22 + $0x10] sm:$0xff] }
 0x220   : > { %2194 = vst.msk [vmem:[#allocation3 + $0x58] sm:$0xff] %vm1729_vm5, %v2146_v56  ;;  %v2145_v57 = vadd.f32 %v2097_v45, %v1898_v33  ;;  %v2572_v48 = vrot.slane %v2311_v39, 1  ;;  %v2816_v45 = vld [vmem:[%s4856_s22 + $0x18] sm:$0xff] }
 0x221   : > { %2733 = vst.msk [vmem:[#allocation3] sm:$0xff] %vm1729_vm5, %v2685_v59  ;;  %v3414_v52 = vpop.f32.mrf.mxu1  ;;  %v3480_v55 = vpop.f32.mrf.mxu0  ;;  %v2643_v37 = vld [vmem:[#allocation3 + $0x30] sm:$0xff]  ;;  %v2106_v59 = vld [vmem:[#allocation3 + $0x98] sm:$0xff] }
 0x222   : > { %2193 = vst.msk [vmem:[#allocation3 + $0x50] sm:$0xff] %vm1729_vm5, %v2145_v57  ;;  %v2589_v42 = vsel %vm2588_vm6, %v2556_v10, %v2572_v48  ;;  %v2621_v0 = vsel %vm2588_vm6, %v2572_v48, %v2540_v3  ;;  %v2148_v53 = vadd.f32 %v3414_v52, %v2100_v4  ;;  %v2573_v15 = vrot.slane %v3480_v55, 1  ;;  %v2103_v10 = vld [vmem:[#allocation3 + $0x80] sm:$0xff]  ;;  %v2644_v48 = vld [vmem:[#allocation3 + $0x38] sm:$0xff] }
 0x223   : > { %v2686_v17 = vadd.f32 %v2638_v25, %v2589_v42  ;;  %v2687_v12 = vadd.f32 %v2639_v6, %v2621_v0  ;;  %v1908_v9 = vpop.f32.mrf.mxu1  ;;  %v2321_v29 = vpop.f32.mrf.mxu0  ;;  %v2105_v25 = vld [vmem:[#allocation3 + $0x90] sm:$0xff] }
 0x224   : > { %2196 = vst.msk [vmem:[#allocation3 + $0x68] sm:$0xff] %vm1729_vm5, %v2148_v53  ;;  %v2622_v61 = vsel %vm2588_vm6, %v2573_v15, %v2541_v11  ;;  %v2147_v24 = vadd.f32 %v2099_v27, %v1908_v9  ;;  %v2557_v19 = vrot.slane %v2321_v29, 1 }
 0x225   : > { %2734 = vst.msk [vmem:[#allocation3 + $0x8] sm:$0xff] %vm1729_vm5, %v2686_v17  ;;  %2735 = vst.msk [vmem:[#allocation3 + $0x10] sm:$0xff] %vm1729_vm5, %v2687_v12  ;;  %v2690_v22 = vadd.f32 %v2642_v8, %v2622_v61  ;;  %v3417_v43 = vpop.f32.mrf.mxu1  ;;  %v3483_v28 = vpop.f32.mrf.mxu0 }
 0x226   : > { %2195 = vst.msk [vmem:[#allocation3 + $0x60] sm:$0xff] %vm1729_vm5, %v2147_v24  ;;  %v2590_v36 = vsel %vm2588_vm6, %v2557_v19, %v2573_v15  ;;  %v2606_v20 = vsel %vm2588_vm6, %v2541_v11, %v2557_v19  ;;  %v2150_v31 = vadd.f32 %v3417_v43, %v2102_v60  ;;  %v2558_v13 = vrot.slane %v3483_v28, 1  ;;  %v2645_v11 = vld [vmem:[#allocation3 + $0x40] sm:$0xff]  ;;  %v2108_v19 = vld [vmem:[#allocation3 + $0xa8] sm:$0xff]  ;;  %v2817_v43 = vld [vmem:[%s4856_s22 + $0x20] sm:$0xff] }
 0x227   : > { %2738 = vst.msk [vmem:[#allocation3 + $0x28] sm:$0xff] %vm1729_vm5, %v2690_v22  ;;  %v2688_v14 = vadd.f32 %v2640_v41, %v2606_v20  ;;  %v2689_v16 = vadd.f32 %v2641_v44, %v2590_v36  ;;  %v1918_v26 = vpop.f32.mrf.mxu1  ;;  %v2331_v58 = vpop.f32.mrf.mxu0  ;;  %v2648_v12 = vld [vmem:[#allocation3 + $0x58] sm:$0xff] }
 0x228   : > { %v2781_v62 = vld [vmem:[#allocation3] sm:$0xff]  ;;  %2198 = vst.msk [vmem:[#allocation3 + $0x78] sm:$0xff] %vm1729_vm5, %v2150_v31  ;;  %v2149_v18 = vadd.f32 %v2101_v50, %v1918_v26  ;;  %v2542_v49 = vrot.slane %v2331_v58, 1 }
 0x229   : > { %v2845_v7 = vmul.f32 %v2813_v21, %v2781_v62  ;;  %2736 = vst.msk [vmem:[#allocation3 + $0x18] sm:$0xff] %vm1729_vm5, %v2688_v14  ;;  %2737 = vst.msk [vmem:[#allocation3 + $0x20] sm:$0xff] %vm1729_vm5, %v2689_v16  ;;  %v3420_v23 = vpop.f32.mrf.mxu1  ;;  %v3486_v1 = vpop.f32.mrf.mxu0  ;;  %v2646_v21 = vld [vmem:[#allocation3 + $0x48] sm:$0xff]  ;;  %v2647_v36 = vld [vmem:[#allocation3 + $0x50] sm:$0xff] }
 0x22a   : > { %2197 = vst.msk [vmem:[#allocation3 + $0x70] sm:$0xff] %vm1729_vm5, %v2149_v18  ;;  %v2607_v34 = vsel %vm2588_vm6, %v2542_v49, %v2558_v13  ;;  %v2152_v5 = vadd.f32 %v3420_v23, %v2104_v54  ;;  %v2543_v35 = vrot.slane %v3486_v1, 1  ;;  %v2107_v14 = vld [vmem:[#allocation3 + $0xa0] sm:$0xff]  ;;  %v2818_v23 = vld [vmem:[%s4856_s22 + $0x28] sm:$0xff] }
 0x22b   : > { %2877 = vst.msk [vmem:[%s4874_s25] sm:$0xff] %vm1729_vm5, %v2845_v7  ;;  %v2691_v40 = vadd.f32 %v2643_v37, %v2607_v34  ;;  %v1928_v51 = vpop.f32.mrf.mxu1  ;;  %v2341_v63 = vpop.f32.mrf.mxu0 }
 0x22c   : > { %v2782_v3 = vld [vmem:[#allocation3 + $0x8] sm:$0xff]  ;;  %2200 = vst.msk [vmem:[#allocation3 + $0x88] sm:$0xff] %vm1729_vm5, %v2152_v5  ;;  %v2151_v47 = vadd.f32 %v2103_v10, %v1928_v51  ;;  %v2574_v46 = vrot.slane %v2341_v63, 1  ;;  %v2109_v5 = vld [vmem:[#allocation3 + $0xb0] sm:$0xff] }
 0x22d   : > { %v2846_v2 = vmul.f32 %v2814_v32, %v2782_v3  ;;  %2739 = vst.msk [vmem:[#allocation3 + $0x30] sm:$0xff] %vm1729_vm5, %v2691_v40  ;;  %v3423_v56 = vpop.f32.mrf.mxu1  ;;  %v3489_v33 = vpop.f32.mrf.mxu0  ;;  %v2649_v1 = vld [vmem:[#allocation3 + $0x60] sm:$0xff] }
 0x22e   : > { %2199 = vst.msk [vmem:[#allocation3 + $0x80] sm:$0xff] %vm1729_vm5, %v2151_v47  ;;  %v2591_v39 = vsel %vm2588_vm6, %v2558_v13, %v2574_v46  ;;  %v2623_v57 = vsel %vm2588_vm6, %v2574_v46, %v2542_v49  ;;  %v2154_v52 = vadd.f32 %v3423_v56, %v2106_v59  ;;  %v2575_v4 = vrot.slane %v3489_v33, 1  ;;  %v2110_v49 = vld [vmem:[#allocation3 + $0xb8] sm:$0xff]  ;;  %v2819_v47 = vld [vmem:[%s4856_s22 + $0x30] sm:$0xff]  ;;  %v2820_v56 = vld [vmem:[%s4856_s22 + $0x38] sm:$0xff] }
 0x22f   : > { %2878 = vst.msk [vmem:[%s4874_s25 + $0x8] sm:$0xff] %vm1729_vm5, %v2846_v2  ;;  %v2692_v55 = vadd.f32 %v2644_v48, %v2591_v39  ;;  %v2693_v42 = vadd.f32 %v2645_v11, %v2623_v57  ;;  %v1938_v0 = vpop.f32.mrf.mxu1  ;;  %v2351_v6 = vpop.f32.mrf.mxu0 }
 0x230   : > { %v2783_v53 = vld [vmem:[#allocation3 + $0x18] sm:$0xff]  ;;  %v2784_v15 = vld [vmem:[#allocation3 + $0x20] sm:$0xff]  ;;  %2202 = vst.msk [vmem:[#allocation3 + $0x98] sm:$0xff] %vm1729_vm5, %v2154_v52  ;;  %v2624_v17 = vsel %vm2588_vm6, %v2575_v4, %v2543_v35  ;;  %v2153_v9 = vadd.f32 %v2105_v25, %v1938_v0  ;;  %v2559_v27 = vrot.slane %v2351_v6, 1 }
 0x231   : > { %v2847_v29 = vmul.f32 %v2815_v38, %v2783_v53  ;;  %v2848_v61 = vmul.f32 %v2816_v45, %v2784_v15  ;;  %2740 = vst.msk [vmem:[#allocation3 + $0x38] sm:$0xff] %vm1729_vm5, %v2692_v55  ;;  %2741 = vst.msk [vmem:[#allocation3 + $0x40] sm:$0xff] %vm1729_vm5, %v2693_v42  ;;  %v2696_v8 = vadd.f32 %v2648_v12, %v2624_v17  ;;  %v3426_v24 = vpop.f32.mrf.mxu1  ;;  %v3492_v22 = vpop.f32.mrf.mxu0  ;;  %v2112_v38 = vld [vmem:[#allocation3 + $0xc8] sm:$0xff]  ;;  %v2651_v39 = vld [vmem:[#allocation3 + $0x70] sm:$0xff] }
 0x232   : > { %2201 = vst.msk [vmem:[#allocation3 + $0x90] sm:$0xff] %vm1729_vm5, %v2153_v9  ;;  %v2592_v60 = vsel %vm2588_vm6, %v2559_v27, %v2575_v4  ;;  %v2608_v28 = vsel %vm2588_vm6, %v2543_v35, %v2559_v27  ;;  %v2156_v20 = vadd.f32 %v3426_v24, %v2108_v19  ;;  %v2560_v50 = vrot.slane %v3492_v22, 1  ;;  %v2650_v45 = vld [vmem:[#allocation3 + $0x68] sm:$0xff]  ;;  %v2111_v55 = vld [vmem:[#allocation3 + $0xc0] sm:$0xff]  ;;  %v2821_v24 = vld [vmem:[%s4856_s22 + $0x40] sm:$0xff] }
 0x233   : > { %2879 = vst.msk [vmem:[%s4874_s25 + $0x10] sm:$0xff] %vm1729_vm5, %v2847_v29  ;;  %2880 = vst.msk [vmem:[%s4874_s25 + $0x18] sm:$0xff] %vm1729_vm5, %v2848_v61  ;;  %v2694_v41 = vadd.f32 %v2646_v21, %v2608_v28  ;;  %v2695_v44 = vadd.f32 %v2647_v36, %v2592_v60  ;;  %v1948_v31 = vpop.f32.mrf.mxu1  ;;  %v2361_v16 = vpop.f32.mrf.mxu0  ;;  %v2654_v53 = vld [vmem:[#allocation3 + $0x88] sm:$0xff]  ;;  %v2114_v61 = vld [vmem:[#allocation3 + $0xd8] sm:$0xff] }
 0x234   : > { %2744 = vst.msk [vmem:[#allocation3 + $0x58] sm:$0xff] %vm1729_vm5, %v2696_v8  ;;  %v2785_v26 = vld [vmem:[#allocation3 + $0x30] sm:$0xff]  ;;  %2204 = vst.msk [vmem:[#allocation3 + $0xa8] sm:$0xff] %vm1729_vm5, %v2156_v20  ;;  %v2155_v58 = vadd.f32 %v2107_v14, %v1948_v31  ;;  %v2544_v62 = vrot.slane %v2361_v16, 1 }
 0x235   : > { %v2849_v13 = vmul.f32 %v2817_v43, %v2785_v26  ;;  %2742 = vst.msk [vmem:[#allocation3 + $0x48] sm:$0xff] %vm1729_vm5, %v2694_v41  ;;  %2743 = vst.msk [vmem:[#allocation3 + $0x50] sm:$0xff] %vm1729_vm5, %v2695_v44  ;;  %v3429_v18 = vpop.f32.mrf.mxu1  ;;  %v3495_v7 = vpop.f32.mrf.mxu0  ;;  %v2652_v43 = vld [vmem:[#allocation3 + $0x78] sm:$0xff]  ;;  %v2653_v60 = vld [vmem:[#allocation3 + $0x80] sm:$0xff] }
 0x236   : > { %2203 = vst.msk [vmem:[#allocation3 + $0xa0] sm:$0xff] %vm1729_vm5, %v2155_v58  ;;  %v2609_v54 = vsel %vm2588_vm6, %v2544_v62, %v2560_v50  ;;  %v2158_v32 = vadd.f32 %v3429_v18, %v2110_v49  ;;  %v2545_v46 = vrot.slane %v3495_v7, 1  ;;  %v2113_v41 = vld [vmem:[#allocation3 + $0xd0] sm:$0xff]  ;;  %v2822_v18 = vld [vmem:[%s4856_s22 + $0x48] sm:$0xff] }
 0x237   : > { %2881 = vst.msk [vmem:[%s4874_s25 + $0x20] sm:$0xff] %vm1729_vm5, %v2849_v13  ;;  %v2697_v34 = vadd.f32 %v2649_v1, %v2609_v54  ;;  %v1958_v37 = vpop.f32.mrf.mxu1  ;;  %v2371_v40 = vpop.f32.mrf.mxu0 }
 0x238   : > { %v2786_v51 = vld [vmem:[#allocation3 + $0x38] sm:$0xff]  ;;  %2206 = vst.msk [vmem:[#allocation3 + $0xb8] sm:$0xff] %vm1729_vm5, %v2158_v32  ;;  %v2157_v10 = vadd.f32 %v2109_v5, %v1958_v37  ;;  %v2576_v63 = vrot.slane %v2371_v40, 1  ;;  %v2115_v32 = vld [vmem:[#allocation3 + $0xe0] sm:$0xff] }
 0x239   : > { %v2850_v3 = vmul.f32 %v2818_v23, %v2786_v51  ;;  %2745 = vst.msk [vmem:[#allocation3 + $0x60] sm:$0xff] %vm1729_vm5, %v2697_v34  ;;  %v3432_v2 = vpop.f32.mrf.mxu1  ;;  %v3498_v35 = vpop.f32.mrf.mxu0  ;;  %v2655_v7 = vld [vmem:[#allocation3 + $0x90] sm:$0xff] }
 0x23a   : > { %2205 = vst.msk [vmem:[#allocation3 + $0xb0] sm:$0xff] %vm1729_vm5, %v2157_v10  ;;  %v2593_v59 = vsel %vm2588_vm6, %v2560_v50, %v2576_v63  ;;  %v2625_v33 = vsel %vm2588_vm6, %v2576_v63, %v2544_v62  ;;  %v2160_v57 = vadd.f32 %v3432_v2, %v2112_v38  ;;  %v2577_v48 = vrot.slane %v3498_v35, 1  ;;  %v2116_v62 = vld [vmem:[#allocation3 + $0xe8] sm:$0xff]  ;;  %v2823_v10 = vld [vmem:[%s4856_s22 + $0x50] sm:$0xff] }
 0x23b   : > { %2882 = vst.msk [vmem:[%s4874_s25 + $0x28] sm:$0xff] %vm1729_vm5, %v2850_v3  ;;  %v2698_v11 = vadd.f32 %v2650_v45, %v2593_v59  ;;  %v2699_v52 = vadd.f32 %v2651_v39, %v2625_v33  ;;  %v1968_v4 = vpop.f32.mrf.mxu1  ;;  %v2381_v42 = vpop.f32.mrf.mxu0  ;;  %v2824_v2 = vld [vmem:[%s4856_s22 + $0x58] sm:$0xff] }
 0x23c   : > { %v2787_v0 = vld [vmem:[#allocation3 + $0x48] sm:$0xff]  ;;  %v2788_v25 = vld [vmem:[#allocation3 + $0x50] sm:$0xff]  ;;  %2208 = vst.msk [vmem:[#allocation3 + $0xc8] sm:$0xff] %vm1729_vm5, %v2160_v57  ;;  %v2626_v6 = vsel %vm2588_vm6, %v2577_v48, %v2545_v46  ;;  %v2159_v15 = vadd.f32 %v2111_v55, %v1968_v4  ;;  %v2561_v17 = vrot.slane %v2381_v42, 1 }
 0x23d   : > { %v2851_v12 = vmul.f32 %v2819_v47, %v2787_v0  ;;  %v2852_v9 = vmul.f32 %v2820_v56, %v2788_v25  ;;  %2746 = vst.msk [vmem:[#allocation3 + $0x68] sm:$0xff] %vm1729_vm5, %v2698_v11  ;;  %2747 = vst.msk [vmem:[#allocation3 + $0x70] sm:$0xff] %vm1729_vm5, %v2699_v52  ;;  %v2702_v27 = vadd.f32 %v2654_v53, %v2626_v6  ;;  %v3435_v29 = vpop.f32.mrf.mxu1  ;;  %v3501_v8 = vpop.f32.mrf.mxu0  ;;  %v2118_v47 = vld [vmem:[#allocation3 + $0xf8] sm:$0xff]  ;;  %v2657_v59 = vld [vmem:[#allocation3 + $0xa0] sm:$0xff] }
 0x23e   : > { %2207 = vst.msk [vmem:[#allocation3 + $0xc0] sm:$0xff] %vm1729_vm5, %v2159_v15  ;;  %v2594_v19 = vsel %vm2588_vm6, %v2561_v17, %v2577_v48  ;;  %v2610_v22 = vsel %vm2588_vm6, %v2545_v46, %v2561_v17  ;;  %v2162_v28 = vadd.f32 %v3435_v29, %v2114_v61  ;;  %v2562_v14 = vrot.slane %v3501_v8, 1  ;;  %v2656_v56 = vld [vmem:[#allocation3 + $0x98] sm:$0xff]  ;;  %v2117_v11 = vld [vmem:[#allocation3 + $0xf0] sm:$0xff] }
 0x23f   : > { %2883 = vst.msk [vmem:[%s4874_s25 + $0x30] sm:$0xff] %vm1729_vm5, %v2851_v12  ;;  %2884 = vst.msk [vmem:[%s4874_s25 + $0x38] sm:$0xff] %vm1729_vm5, %v2852_v9  ;;  %v2700_v21 = vadd.f32 %v2652_v43, %v2610_v22  ;;  %v2701_v36 = vadd.f32 %v2653_v60, %v2594_v19  ;;  %v1978_v20 = vpop.f32.mrf.mxu1  ;;  %v2391_v44 = vpop.f32.mrf.mxu0  ;;  %v2660_v0 = vld [vmem:[#allocation3 + $0xb8] sm:$0xff]  ;;  %v2120_v9 = vld [vmem:[#allocation3 + $0x108] sm:$0xff] }
 0x240   : > { %2750 = vst.msk [vmem:[#allocation3 + $0x88] sm:$0xff] %vm1729_vm5, %v2702_v27  ;;  %v2789_v31 = vld [vmem:[#allocation3 + $0x60] sm:$0xff]  ;;  %2210 = vst.msk [vmem:[#allocation3 + $0xd8] sm:$0xff] %vm1729_vm5, %v2162_v28  ;;  %v2161_v16 = vadd.f32 %v2113_v41, %v1978_v20  ;;  %v2546_v26 = vrot.slane %v2391_v44, 1  ;;  %v2825_v29 = vld [vmem:[%s4856_s22 + $0x60] sm:$0xff] }
 0x241   : > { %v2853_v50 = vmul.f32 %v2821_v24, %v2789_v31  ;;  %2748 = vst.msk [vmem:[#allocation3 + $0x78] sm:$0xff] %vm1729_vm5, %v2700_v21  ;;  %2749 = vst.msk [vmem:[#allocation3 + $0x80] sm:$0xff] %vm1729_vm5, %v2701_v36  ;;  %v3438_v58 = vpop.f32.mrf.mxu1  ;;  %v3504_v13 = vpop.f32.mrf.mxu0  ;;  %v2658_v24 = vld [vmem:[#allocation3 + $0xa8] sm:$0xff]  ;;  %v2659_v19 = vld [vmem:[#allocation3 + $0xb0] sm:$0xff] }
 0x242   : > { %2209 = vst.msk [vmem:[#allocation3 + $0xd0] sm:$0xff] %vm1729_vm5, %v2161_v16  ;;  %v2611_v49 = vsel %vm2588_vm6, %v2546_v26, %v2562_v14  ;;  %v2164_v23 = vadd.f32 %v3438_v58, %v2116_v62  ;;  %v2547_v63 = vrot.slane %v3504_v13, 1  ;;  %v2119_v21 = vld [vmem:[#allocation3 + $0x100] sm:$0xff]  ;;  %v2826_v58 = vld [vmem:[%s4856_s22 + $0x68] sm:$0xff] }
 0x243   : > { %2885 = vst.msk [vmem:[%s4874_s25 + $0x40] sm:$0xff] %vm1729_vm5, %v2853_v50  ;;  %v2703_v54 = vadd.f32 %v2655_v7, %v2611_v49  ;;  %v1988_v1 = vpop.f32.mrf.mxu1  ;;  %v2401_v34 = vpop.f32.mrf.mxu0 }
 0x244   : > { %v2790_v37 = vld [vmem:[#allocation3 + $0x68] sm:$0xff]  ;;  %2212 = vst.msk [vmem:[#allocation3 + $0xe8] sm:$0xff] %vm1729_vm5, %v2164_v23  ;;  %v2163_v5 = vadd.f32 %v2115_v32, %v1988_v1  ;;  %v2578_v40 = vrot.slane %v2401_v34, 1  ;;  %v2121_v23 = vld [vmem:[#allocation3 + $0x110] sm:$0xff] }
 0x245   : > { %v2854_v51 = vmul.f32 %v2822_v18, %v2790_v37  ;;  %2751 = vst.msk [vmem:[#allocation3 + $0x90] sm:$0xff] %vm1729_vm5, %v2703_v54  ;;  %v3441_v3 = vpop.f32.mrf.mxu1  ;;  %v3507_v46 = vpop.f32.mrf.mxu0  ;;  %v2661_v13 = vld [vmem:[#allocation3 + $0xc0] sm:$0xff] }
 0x246   : > { %2211 = vst.msk [vmem:[#allocation3 + $0xe0] sm:$0xff] %vm1729_vm5, %v2163_v5  ;;  %v2595_v38 = vsel %vm2588_vm6, %v2562_v14, %v2578_v40  ;;  %v2627_v35 = vsel %vm2588_vm6, %v2578_v40, %v2546_v26  ;;  %v2166_v33 = vadd.f32 %v3441_v3, %v2118_v47  ;;  %v2579_v45 = vrot.slane %v3507_v46, 1  ;;  %v2122_v26 = vld [vmem:[#allocation3 + $0x118] sm:$0xff]  ;;  %v2827_v5 = vld [vmem:[%s4856_s22 + $0x70] sm:$0xff]  ;;  %v2828_v3 = vld [vmem:[%s4856_s22 + $0x78] sm:$0xff] }
 0x247   : > { %2886 = vst.msk [vmem:[%s4874_s25 + $0x48] sm:$0xff] %vm1729_vm5, %v2854_v51  ;;  %v2704_v39 = vadd.f32 %v2656_v56, %v2595_v38  ;;  %v2705_v57 = vadd.f32 %v2657_v59, %v2627_v35  ;;  %v1998_v48 = vpop.f32.mrf.mxu1  ;;  %v2411_v52 = vpop.f32.mrf.mxu0 }
 0x248   : > { %v2791_v4 = vld [vmem:[#allocation3 + $0x78] sm:$0xff]  ;;  %v2792_v55 = vld [vmem:[#allocation3 + $0x80] sm:$0xff]  ;;  %2214 = vst.msk [vmem:[#allocation3 + $0xf8] sm:$0xff] %vm1729_vm5, %v2166_v33  ;;  %v2628_v42 = vsel %vm2588_vm6, %v2579_v45, %v2547_v63  ;;  %v2165_v25 = vadd.f32 %v2117_v11, %v1998_v48  ;;  %v2563_v6 = vrot.slane %v2411_v52, 1 }
 0x249   : > { %v2855_v53 = vmul.f32 %v2823_v10, %v2791_v4  ;;  %v2856_v15 = vmul.f32 %v2824_v2, %v2792_v55  ;;  %2752 = vst.msk [vmem:[#allocation3 + $0x98] sm:$0xff] %vm1729_vm5, %v2704_v39  ;;  %2753 = vst.msk [vmem:[#allocation3 + $0xa0] sm:$0xff] %vm1729_vm5, %v2705_v57  ;;  %v2708_v17 = vadd.f32 %v2660_v0, %v2628_v42  ;;  %v3444_v12 = vpop.f32.mrf.mxu1  ;;  %v3510_v27 = vpop.f32.mrf.mxu0  ;;  %v2124_v10 = vld [vmem:[#allocation3 + $0x128] sm:$0xff]  ;;  %v2663_v38 = vld [vmem:[#allocation3 + $0xd0] sm:$0xff] }
 0x24a   : > { %2213 = vst.msk [vmem:[#allocation3 + $0xf0] sm:$0xff] %vm1729_vm5, %v2165_v25  ;;  %v2596_v61 = vsel %vm2588_vm6, %v2563_v6, %v2579_v45  ;;  %v2612_v8 = vsel %vm2588_vm6, %v2547_v63, %v2563_v6  ;;  %v2168_v22 = vadd.f32 %v3444_v12, %v2120_v9  ;;  %v2564_v41 = vrot.slane %v3510_v27, 1  ;;  %v2662_v2 = vld [vmem:[#allocation3 + $0xc8] sm:$0xff]  ;;  %v2123_v39 = vld [vmem:[#allocation3 + $0x120] sm:$0xff]  ;;  %v2829_v12 = vld [vmem:[%s4856_s22 + $0x80] sm:$0xff] }
 0x24b   : > { %2887 = vst.msk [vmem:[%s4874_s25 + $0x50] sm:$0xff] %vm1729_vm5, %v2855_v53  ;;  %2888 = vst.msk [vmem:[%s4874_s25 + $0x58] sm:$0xff] %vm1729_vm5, %v2856_v15  ;;  %v2706_v43 = vadd.f32 %v2658_v24, %v2612_v8  ;;  %v2707_v60 = vadd.f32 %v2659_v19, %v2596_v61  ;;  %v2008_v28 = vpop.f32.mrf.mxu1  ;;  %v2421_v36 = vpop.f32.mrf.mxu0  ;;  %v2666_v4 = vld [vmem:[#allocation3 + $0xe8] sm:$0xff]  ;;  %v2126_v15 = vld [vmem:[#allocation3 + $0x138] sm:$0xff] }
 0x24c   : > { %2756 = vst.msk [vmem:[#allocation3 + $0xb8] sm:$0xff] %vm1729_vm5, %v2708_v17  ;;  %v2793_v20 = vld [vmem:[#allocation3 + $0x90] sm:$0xff]  ;;  %2216 = vst.msk [vmem:[#allocation3 + $0x108] sm:$0xff] %vm1729_vm5, %v2168_v22  ;;  %v2167_v44 = vadd.f32 %v2119_v21, %v2008_v28  ;;  %v2548_v31 = vrot.slane %v2421_v36, 1 }
 0x24d   : > { %v2857_v14 = vmul.f32 %v2825_v29, %v2793_v20  ;;  %2754 = vst.msk [vmem:[#allocation3 + $0xa8] sm:$0xff] %vm1729_vm5, %v2706_v43  ;;  %2755 = vst.msk [vmem:[#allocation3 + $0xb0] sm:$0xff] %vm1729_vm5, %v2707_v60  ;;  %v3447_v16 = vpop.f32.mrf.mxu1  ;;  %v3513_v50 = vpop.f32.mrf.mxu0  ;;  %v2664_v29 = vld [vmem:[#allocation3 + $0xd8] sm:$0xff]  ;;  %v2665_v61 = vld [vmem:[#allocation3 + $0xe0] sm:$0xff] }
 0x24e   : > { %2215 = vst.msk [vmem:[#allocation3 + $0x100] sm:$0xff] %vm1729_vm5, %v2167_v44  ;;  %v2613_v62 = vsel %vm2588_vm6, %v2548_v31, %v2564_v41  ;;  %v2170_v18 = vadd.f32 %v3447_v16, %v2122_v26  ;;  %v2549_v40 = vrot.slane %v3513_v50, 1  ;;  %v2125_v43 = vld [vmem:[#allocation3 + $0x130] sm:$0xff]  ;;  %v2830_v16 = vld [vmem:[%s4856_s22 + $0x88] sm:$0xff] }
 0x24f   : > { %2889 = vst.msk [vmem:[%s4874_s25 + $0x60] sm:$0xff] %vm1729_vm5, %v2857_v14  ;;  %v2709_v49 = vadd.f32 %v2661_v13, %v2613_v62  ;;  %v2018_v7 = vpop.f32.mrf.mxu1  ;;  %v2431_v54 = vpop.f32.mrf.mxu0 }
 0x250   : > { %v2794_v1 = vld [vmem:[#allocation3 + $0x98] sm:$0xff]  ;;  %2218 = vst.msk [vmem:[#allocation3 + $0x118] sm:$0xff] %vm1729_vm5, %v2170_v18  ;;  %v2169_v32 = vadd.f32 %v2121_v23, %v2018_v7  ;;  %v2580_v34 = vrot.slane %v2431_v54, 1  ;;  %v2127_v18 = vld [vmem:[#allocation3 + $0x140] sm:$0xff] }
 0x251   : > { %v2858_v37 = vmul.f32 %v2826_v58, %v2794_v1  ;;  %2757 = vst.msk [vmem:[#allocation3 + $0xc0] sm:$0xff] %vm1729_vm5, %v2709_v49  ;;  %v3450_v51 = vpop.f32.mrf.mxu1  ;;  %v3516_v63 = vpop.f32.mrf.mxu0  ;;  %v2667_v50 = vld [vmem:[#allocation3 + $0xf0] sm:$0xff] }
 0x252   : > { %2217 = vst.msk [vmem:[#allocation3 + $0x110] sm:$0xff] %vm1729_vm5, %v2169_v32  ;;  %v2597_v47 = vsel %vm2588_vm6, %v2564_v41, %v2580_v34  ;;  %v2629_v46 = vsel %vm2588_vm6, %v2580_v34, %v2548_v31  ;;  %v2172_v35 = vadd.f32 %v3450_v51, %v2124_v10  ;;  %v2581_v56 = vrot.slane %v3516_v63, 1  ;;  %v2128_v31 = vld [vmem:[#allocation3 + $0x148] sm:$0xff]  ;;  %v2831_v32 = vld [vmem:[%s4856_s22 + $0x90] sm:$0xff] }
 0x253   : > { %2890 = vst.msk [vmem:[%s4874_s25 + $0x68] sm:$0xff] %vm1729_vm5, %v2858_v37  ;;  %v2710_v59 = vadd.f32 %v2662_v2, %v2597_v47  ;;  %v2711_v33 = vadd.f32 %v2663_v38, %v2629_v46  ;;  %v2028_v45 = vpop.f32.mrf.mxu1  ;;  %v2441_v57 = vpop.f32.mrf.mxu0  ;;  %v2832_v51 = vld [vmem:[%s4856_s22 + $0x98] sm:$0xff] }
 0x254   : > { %v2795_v48 = vld [vmem:[#allocation3 + $0xa8] sm:$0xff]  ;;  %v2796_v11 = vld [vmem:[#allocation3 + $0xb0] sm:$0xff]  ;;  %2220 = vst.msk [vmem:[#allocation3 + $0x128] sm:$0xff] %vm1729_vm5, %v2172_v35  ;;  %v2630_v52 = vsel %vm2588_vm6, %v2581_v56, %v2549_v40  ;;  %v2171_v55 = vadd.f32 %v2123_v39, %v2028_v45  ;;  %v2565_v42 = vrot.slane %v2441_v57, 1 }
 0x255   : > { %v2859_v0 = vmul.f32 %v2827_v5, %v2795_v48  ;;  %v2860_v25 = vmul.f32 %v2828_v3, %v2796_v11  ;;  %2758 = vst.msk [vmem:[#allocation3 + $0xc8] sm:$0xff] %vm1729_vm5, %v2710_v59  ;;  %2759 = vst.msk [vmem:[#allocation3 + $0xd0] sm:$0xff] %vm1729_vm5, %v2711_v33  ;;  %v2714_v6 = vadd.f32 %v2666_v4, %v2630_v52  ;;  %v3453_v53 = vpop.f32.mrf.mxu1  ;;  %v3519_v17 = vpop.f32.mrf.mxu0  ;;  %v2130_v5 = vld [vmem:[#allocation3 + $0x158] sm:$0xff]  ;;  %v2669_v47 = vld [vmem:[#allocation3 + $0x100] sm:$0xff] }
 0x256   : > { %2219 = vst.msk [vmem:[#allocation3 + $0x120] sm:$0xff] %vm1729_vm5, %v2171_v55  ;;  %v2598_v9 = vsel %vm2588_vm6, %v2565_v42, %v2581_v56  ;;  %v2614_v27 = vsel %vm2588_vm6, %v2549_v40, %v2565_v42  ;;  %v2174_v8 = vadd.f32 %v3453_v53, %v2126_v15  ;;  %v2566_v21 = vrot.slane %v3519_v17, 1  ;;  %v2668_v3 = vld [vmem:[#allocation3 + $0xf8] sm:$0xff]  ;;  %v2129_v59 = vld [vmem:[#allocation3 + $0x150] sm:$0xff] }
 0x257   : > { %2891 = vst.msk [vmem:[%s4874_s25 + $0x70] sm:$0xff] %vm1729_vm5, %v2859_v0  ;;  %2892 = vst.msk [vmem:[%s4874_s25 + $0x78] sm:$0xff] %vm1729_vm5, %v2860_v25  ;;  %v2712_v24 = vadd.f32 %v2664_v29, %v2614_v27  ;;  %v2713_v19 = vadd.f32 %v2665_v61, %v2598_v9  ;;  %v2038_v22 = vpop.f32.mrf.mxu1  ;;  %v2451_v60 = vpop.f32.mrf.mxu0  ;;  %v2672_v48 = vld [vmem:[#allocation3 + $0x118] sm:$0xff]  ;;  %v2132_v25 = vld [vmem:[#allocation3 + $0x168] sm:$0xff] }
 0x258   : > { %2762 = vst.msk [vmem:[#allocation3 + $0xe8] sm:$0xff] %vm1729_vm5, %v2714_v6  ;;  %v2797_v28 = vld [vmem:[#allocation3 + $0xc0] sm:$0xff]  ;;  %2222 = vst.msk [vmem:[#allocation3 + $0x138] sm:$0xff] %vm1729_vm5, %v2174_v8  ;;  %v2173_v36 = vadd.f32 %v2125_v43, %v2038_v22  ;;  %v2550_v20 = vrot.slane %v2451_v60, 1  ;;  %v2833_v53 = vld [vmem:[%s4856_s22 + $0xa0] sm:$0xff] }
 0x259   : > { %v2861_v41 = vmul.f32 %v2829_v12, %v2797_v28  ;;  %2760 = vst.msk [vmem:[#allocation3 + $0xd8] sm:$0xff] %vm1729_vm5, %v2712_v24  ;;  %2761 = vst.msk [vmem:[#allocation3 + $0xe0] sm:$0xff] %vm1729_vm5, %v2713_v19  ;;  %v3456_v44 = vpop.f32.mrf.mxu1  ;;  %v3522_v14 = vpop.f32.mrf.mxu0  ;;  %v2670_v12 = vld [vmem:[#allocation3 + $0x108] sm:$0xff]  ;;  %v2671_v9 = vld [vmem:[#allocation3 + $0x110] sm:$0xff] }
 0x25a   : > { %2221 = vst.msk [vmem:[#allocation3 + $0x130] sm:$0xff] %vm1729_vm5, %v2173_v36  ;;  %v2615_v26 = vsel %vm2588_vm6, %v2550_v20, %v2566_v21  ;;  %v2176_v58 = vadd.f32 %v3456_v44, %v2128_v31  ;;  %v2551_v34 = vrot.slane %v3522_v14, 1  ;;  %v2131_v24 = vld [vmem:[#allocation3 + $0x160] sm:$0xff]  ;;  %v2834_v44 = vld [vmem:[%s4856_s22 + $0xa8] sm:$0xff] }
 0x25b   : > { %2893 = vst.msk [vmem:[%s4874_s25 + $0x80] sm:$0xff] %vm1729_vm5, %v2861_v41  ;;  %v2715_v62 = vadd.f32 %v2667_v50, %v2615_v26  ;;  %v2048_v13 = vpop.f32.mrf.mxu1  ;;  %v2461_v49 = vpop.f32.mrf.mxu0 }
 0x25c   : > { %v2798_v7 = vld [vmem:[#allocation3 + $0xc8] sm:$0xff]  ;;  %2224 = vst.msk [vmem:[#allocation3 + $0x148] sm:$0xff] %vm1729_vm5, %v2176_v58  ;;  %v2175_v23 = vadd.f32 %v2127_v18, %v2048_v13  ;;  %v2582_v54 = vrot.slane %v2461_v49, 1  ;;  %v2133_v58 = vld [vmem:[#allocation3 + $0x170] sm:$0xff] }
 0x25d   : > { %v2862_v1 = vmul.f32 %v2830_v16, %v2798_v7  ;;  %2763 = vst.msk [vmem:[#allocation3 + $0xf0] sm:$0xff] %vm1729_vm5, %v2715_v62  ;;  %v3459_v37 = vpop.f32.mrf.mxu1  ;;  %v3525_v40 = vpop.f32.mrf.mxu0  ;;  %v2673_v14 = vld [vmem:[#allocation3 + $0x120] sm:$0xff] }
 0x25e   : > { %2223 = vst.msk [vmem:[#allocation3 + $0x140] sm:$0xff] %vm1729_vm5, %v2175_v23  ;;  %v2599_v10 = vsel %vm2588_vm6, %v2566_v21, %v2582_v54  ;;  %v2631_v63 = vsel %vm2588_vm6, %v2582_v54, %v2550_v20  ;;  %v2178_v46 = vadd.f32 %v3459_v37, %v2130_v5  ;;  %v2583_v2 = vrot.slane %v3525_v40, 1  ;;  %v2134_v20 = vld [vmem:[#allocation3 + $0x178] sm:$0xff]  ;;  %v2835_v23 = vld [vmem:[%s4856_s22 + $0xb0] sm:$0xff]  ;;  %v2674_v5 = vld [vmem:[#allocation3 + $0x128] sm:$0xff] }
 0x25f   : > { %2894 = vst.msk [vmem:[%s4874_s25 + $0x88] sm:$0xff] %vm1729_vm5, %v2862_v1  ;;  %v2716_v38 = vadd.f32 %v2668_v3, %v2599_v10  ;;  %v2717_v35 = vadd.f32 %v2669_v47, %v2631_v63  ;;  %v2058_v56 = vpop.f32.mrf.mxu1  ;;  %v2471_v33 = vpop.f32.mrf.mxu0  ;;  %v2836_v1 = vld [vmem:[%s4856_s22 + $0xb8] sm:$0xff] }
 0x260   : > { %v2799_v45 = vld [vmem:[#allocation3 + $0xd8] sm:$0xff]  ;;  %v2800_v39 = vld [vmem:[#allocation3 + $0xe0] sm:$0xff]  ;;  %2226 = vst.msk [vmem:[#allocation3 + $0x158] sm:$0xff] %vm1729_vm5, %v2178_v46  ;;  %v2632_v57 = vsel %vm2588_vm6, %v2583_v2, %v2551_v34  ;;  %v2177_v11 = vadd.f32 %v2129_v59, %v2058_v56  ;;  %v2567_v52 = vrot.slane %v2471_v33, 1 }
 0x261   : > { %v2863_v4 = vmul.f32 %v2831_v32, %v2799_v45  ;;  %v2864_v55 = vmul.f32 %v2832_v51, %v2800_v39  ;;  %2764 = vst.msk [vmem:[#allocation3 + $0xf8] sm:$0xff] %vm1729_vm5, %v2716_v38  ;;  %2765 = vst.msk [vmem:[#allocation3 + $0x100] sm:$0xff] %vm1729_vm5, %v2717_v35  ;;  %v2720_v42 = vadd.f32 %v2672_v48, %v2632_v57  ;;  %v3462_v0 = vpop.f32.mrf.mxu1  ;;  %v3528_v6 = vpop.f32.mrf.mxu0  ;;  %v2675_v40 = vld [vmem:[#allocation3 + $0x130] sm:$0xff] }
 0x262   : > { %2225 = vst.msk [vmem:[#allocation3 + $0x150] sm:$0xff] %vm1729_vm5, %v2177_v11  ;;  %v2600_v15 = vsel %vm2588_vm6, %v2567_v52, %v2583_v2  ;;  %v2616_v17 = vsel %vm2588_vm6, %v2551_v34, %v2567_v52  ;;  %v2180_v27 = vadd.f32 %v3462_v0, %v2132_v25  ;;  %v2568_v43 = vrot.slane %v3528_v6, 1  ;;  %v2837_v39 = vld [vmem:[%s4856_s22 + $0xc0] sm:$0xff]  ;;  %v2676_v11 = vld [vmem:[#allocation3 + $0x138] sm:$0xff] }
 0x263   : > { %2895 = vst.msk [vmem:[%s4874_s25 + $0x90] sm:$0xff] %vm1729_vm5, %v2863_v4  ;;  %2896 = vst.msk [vmem:[%s4874_s25 + $0x98] sm:$0xff] %vm1729_vm5, %v2864_v55  ;;  %v2718_v29 = vadd.f32 %v2670_v12, %v2616_v17  ;;  %v2719_v61 = vadd.f32 %v2671_v9, %v2600_v15  ;;  %v2068_v8 = vpop.f32.mrf.mxu1  ;;  %v2481_v19 = vpop.f32.mrf.mxu0  ;;  %v2678_v38 = vld [vmem:[#allocation3 + $0x148] sm:$0xff]  ;;  %v2838_v17 = vld [vmem:[%s4856_s22 + $0xc8] sm:$0xff] }
 0x264   : > { %2768 = vst.msk [vmem:[#allocation3 + $0x118] sm:$0xff] %vm1729_vm5, %v2720_v42  ;;  %v2801_v22 = vld [vmem:[#allocation3 + $0xf0] sm:$0xff]  ;;  %2228 = vst.msk [vmem:[#allocation3 + $0x168] sm:$0xff] %vm1729_vm5, %v2180_v27  ;;  %v2179_v60 = vadd.f32 %v2131_v24, %v2068_v8  ;;  %v2552_v28 = vrot.slane %v2481_v19, 1  ;;  %v2839_v19 = vld [vmem:[%s4856_s22 + $0xd0] sm:$0xff] }
 0x265   : > { %v2865_v21 = vmul.f32 %v2833_v53, %v2801_v22  ;;  %2766 = vst.msk [vmem:[#allocation3 + $0x108] sm:$0xff] %vm1729_vm5, %v2718_v29  ;;  %2767 = vst.msk [vmem:[#allocation3 + $0x110] sm:$0xff] %vm1729_vm5, %v2719_v61  ;;  %v3465_v36 = vpop.f32.mrf.mxu1  ;;  %v3531_v41 = vpop.f32.mrf.mxu0  ;;  %v2677_v52 = vld [vmem:[#allocation3 + $0x140] sm:$0xff] }
 0x266   : > { %2227 = vst.msk [vmem:[#allocation3 + $0x160] sm:$0xff] %vm1729_vm5, %v2179_v60  ;;  %v2617_v31 = vsel %vm2588_vm6, %v2552_v28, %v2568_v43  ;;  %v2182_v16 = vadd.f32 %v3465_v36, %v2134_v20  ;;  %v2553_v32 = vrot.slane %v3531_v41, 1 }
 0x267   : > { %2897 = vst.msk [vmem:[%s4874_s25 + $0xa0] sm:$0xff] %vm1729_vm5, %v2865_v21  ;;  %v2721_v26 = vadd.f32 %v2673_v14, %v2617_v31  ;;  %v2078_v50 = vpop.f32.mrf.mxu1  ;;  %v2491_v62 = vpop.f32.mrf.mxu0  ;;  %v2680_v36 = vld [vmem:[#allocation3 + $0x158] sm:$0xff] }
 0x268   : > { %v2802_v13 = vld [vmem:[#allocation3 + $0xf8] sm:$0xff]  ;;  %2230 = vst.msk [vmem:[#allocation3 + $0x178] sm:$0xff] %vm1729_vm5, %v2182_v16  ;;  %v2181_v18 = vadd.f32 %v2133_v58, %v2078_v50  ;;  %v2584_v49 = vrot.slane %v2491_v62, 1 }
 0x269   : > { %v2866_v7 = vmul.f32 %v2834_v44, %v2802_v13  ;;  %2769 = vst.msk [vmem:[#allocation3 + $0x120] sm:$0xff] %vm1729_vm5, %v2721_v26  ;;  %v3534_v54 = vpop.f32.mrf.mxu0  ;;  %v2679_v9 = vld [vmem:[#allocation3 + $0x150] sm:$0xff] }
 0x26a   : > { %2229 = vst.msk [vmem:[#allocation3 + $0x170] sm:$0xff] %vm1729_vm5, %v2181_v18  ;;  %v2601_v34 = vsel %vm2588_vm6, %v2568_v43, %v2584_v49  ;;  %v2633_v37 = vsel %vm2588_vm6, %v2584_v49, %v2552_v28  ;;  %v2585_v51 = vrot.slane %v3534_v54, 1  ;;  %v2840_v43 = vld [vmem:[%s4856_s22 + $0xd8] sm:$0xff] }
 0x26b   : > { %2898 = vst.msk [vmem:[%s4874_s25 + $0xa8] sm:$0xff] %vm1729_vm5, %v2866_v7  ;;  %v2722_v10 = vadd.f32 %v2674_v5, %v2601_v34  ;;  %v2723_v63 = vadd.f32 %v2675_v40, %v2633_v37  ;;  %v2501_v3 = vpop.f32.mrf.mxu0  ;;  %v2841_v7 = vld [vmem:[%s4856_s22 + $0xe0] sm:$0xff] }
 0x26c   : > { %v2803_v47 = vld [vmem:[#allocation3 + $0x108] sm:$0xff]  ;;  %v2804_v46 = vld [vmem:[#allocation3 + $0x110] sm:$0xff]  ;;  %v2634_v2 = vsel %vm2588_vm6, %v2585_v51, %v2553_v32  ;;  %v2569_v35 = vrot.slane %v2501_v3, 1 }
 0x26d   : > { %v2867_v56 = vmul.f32 %v2835_v23, %v2803_v47  ;;  %v2868_v59 = vmul.f32 %v2836_v1, %v2804_v46  ;;  %2770 = vst.msk [vmem:[#allocation3 + $0x128] sm:$0xff] %vm1729_vm5, %v2722_v10  ;;  %2771 = vst.msk [vmem:[#allocation3 + $0x130] sm:$0xff] %vm1729_vm5, %v2723_v63  ;;  %v2726_v33 = vadd.f32 %v2678_v38, %v2634_v2  ;;  %v3537_v45 = vpop.f32.mrf.mxu0  ;;  %v2681_v20 = vld [vmem:[#allocation3 + $0x160] sm:$0xff]  ;;  %v2682_v1 = vld [vmem:[#allocation3 + $0x168] sm:$0xff] }
 0x26e   : > { %v2602_v57 = vsel %vm2588_vm6, %v2569_v35, %v2585_v51  ;;  %v2618_v48 = vsel %vm2588_vm6, %v2553_v32, %v2569_v35  ;;  %v2570_v25 = vrot.slane %v3537_v45, 1  ;;  %v2843_v63 = vld [vmem:[%s4856_s22 + $0xf0] sm:$0xff]  ;;  %v2844_v3 = vld [vmem:[%s4856_s22 + $0xf8] sm:$0xff] }
 0x26f   : > { %2899 = vst.msk [vmem:[%s4874_s25 + $0xb0] sm:$0xff] %vm1729_vm5, %v2867_v56  ;;  %2900 = vst.msk [vmem:[%s4874_s25 + $0xb8] sm:$0xff] %vm1729_vm5, %v2868_v59  ;;  %v2724_v4 = vadd.f32 %v2676_v11, %v2618_v48  ;;  %v2725_v55 = vadd.f32 %v2677_v52, %v2602_v57  ;;  %v2511_v42 = vpop.f32.mrf.mxu0  ;;  %v2684_v58 = vld [vmem:[#allocation3 + $0x178] sm:$0xff] }
 0x270   : > { %2774 = vst.msk [vmem:[#allocation3 + $0x148] sm:$0xff] %vm1729_vm5, %v2726_v33  ;;  %v2805_v0 = vld [vmem:[#allocation3 + $0x120] sm:$0xff]  ;;  %v2554_v6 = vrot.slane %v2511_v42, 1 }
 0x271   : > { %v2869_v53 = vmul.f32 %v2837_v39, %v2805_v0  ;;  %2772 = vst.msk [vmem:[#allocation3 + $0x138] sm:$0xff] %vm1729_vm5, %v2724_v4  ;;  %2773 = vst.msk [vmem:[#allocation3 + $0x140] sm:$0xff] %vm1729_vm5, %v2725_v55  ;;  %v3540_v15 = vpop.f32.mrf.mxu0  ;;  %v2683_v32 = vld [vmem:[#allocation3 + $0x170] sm:$0xff] }
 0x272   : > { %v2619_v12 = vsel %vm2588_vm6, %v2554_v6, %v2570_v25  ;;  %v2555_v60 = vrot.slane %v3540_v15, 1 }
 0x273   : > { %2901 = vst.msk [vmem:[%s4874_s25 + $0xc0] sm:$0xff] %vm1729_vm5, %v2869_v53  ;;  %v2727_v27 = vadd.f32 %v2679_v9, %v2619_v12  ;;  %v2521_v29 = vpop.f32.mrf.mxu0 }
 0x274   : > { %v2806_v61 = vld [vmem:[#allocation3 + $0x128] sm:$0xff]  ;;  %v2586_v8 = vrot.slane %v2521_v29, 1 }
 0x275   : > { %v2870_v24 = vmul.f32 %v2838_v17, %v2806_v61  ;;  %2775 = vst.msk [vmem:[#allocation3 + $0x150] sm:$0xff] %vm1729_vm5, %v2727_v27  ;;  %v3543_v22 = vpop.f32.mrf.mxu0 }
 0x276   : > { %v2603_v28 = vsel %vm2588_vm6, %v2570_v25, %v2586_v8  ;;  %v2635_v21 = vsel %vm2588_vm6, %v2586_v8, %v2554_v6  ;;  %v2587_v41 = vrot.slane %v3543_v22, 1 }
 0x277   : > { %2902 = vst.msk [vmem:[%s4874_s25 + $0xc8] sm:$0xff] %vm1729_vm5, %v2870_v24  ;;  %v2728_v44 = vadd.f32 %v2680_v36, %v2603_v28  ;;  %v2729_v31 = vadd.f32 %v2681_v20, %v2635_v21  ;;  %v2531_v14 = vpop.f32.mrf.mxu0 }
 0x278   : > { %v2807_v16 = vld [vmem:[#allocation3 + $0x138] sm:$0xff]  ;;  %v2808_v26 = vld [vmem:[#allocation3 + $0x140] sm:$0xff]  ;;  %v2636_v50 = vsel %vm2588_vm6, %v2587_v41, %v2555_v60  ;;  %v2571_v62 = vrot.slane %v2531_v14, 1 }
 0x279   : > { %v2871_v13 = vmul.f32 %v2839_v19, %v2807_v16  ;;  %v2872_v18 = vmul.f32 %v2840_v43, %v2808_v26  ;;  %2776 = vst.msk [vmem:[#allocation3 + $0x158] sm:$0xff] %vm1729_vm5, %v2728_v44  ;;  %2777 = vst.msk [vmem:[#allocation3 + $0x160] sm:$0xff] %vm1729_vm5, %v2729_v31  ;;  %v2732_v49 = vadd.f32 %v2684_v58, %v2636_v50 }
 0x27a   : > { %v2604_v23 = vsel %vm2588_vm6, %v2571_v62, %v2587_v41  ;;  %v2620_v54 = vsel %vm2588_vm6, %v2555_v60, %v2571_v62 }
 0x27b   : > { %2903 = vst.msk [vmem:[%s4874_s25 + $0xd0] sm:$0xff] %vm1729_vm5, %v2871_v13  ;;  %2904 = vst.msk [vmem:[%s4874_s25 + $0xd8] sm:$0xff] %vm1729_vm5, %v2872_v18  ;;  %v2730_v34 = vadd.f32 %v2682_v1, %v2620_v54  ;;  %v2731_v37 = vadd.f32 %v2683_v32, %v2604_v23 }
 0x27c   : > { %2780 = vst.msk [vmem:[#allocation3 + $0x178] sm:$0xff] %vm1729_vm5, %v2732_v49  ;;  %v2809_v5 = vld [vmem:[#allocation3 + $0x150] sm:$0xff] }
 0x27d   : > { %v2873_v40 = vmul.f32 %v2841_v7, %v2809_v5  ;;  %2778 = vst.msk [vmem:[#allocation3 + $0x168] sm:$0xff] %vm1729_vm5, %v2730_v34  ;;  %2779 = vst.msk [vmem:[#allocation3 + $0x170] sm:$0xff] %vm1729_vm5, %v2731_v37 }
 0x27f   : > { %2905 = vst.msk [vmem:[%s4874_s25 + $0xe0] sm:$0xff] %vm1729_vm5, %v2873_v40 }
 0x280   : > { %v2810_v51 = vld [vmem:[#allocation3 + $0x158] sm:$0xff] }
 0x281   : > { %v2874_v10 = vmul.f32 %v2842_v30, %v2810_v51 }
 0x283   : > { %2906 = vst.msk [vmem:[%s4874_s25 + $0xe8] sm:$0xff] %vm1729_vm5, %v2874_v10 }
 0x284   : > { %v2811_v47 = vld [vmem:[#allocation3 + $0x168] sm:$0xff]  ;;  %v2812_v46 = vld [vmem:[#allocation3 + $0x170] sm:$0xff] }
 0x285   : > { %v2875_v2 = vmul.f32 %v2843_v63, %v2811_v47  ;;  %v2876_v38 = vmul.f32 %v2844_v3, %v2812_v46 }
 0x287   : > { %2907 = vst.msk [vmem:[%s4874_s25 + $0xf0] sm:$0xff] %vm1729_vm5, %v2875_v2  ;;  %2908 = vst.msk [vmem:[%s4874_s25 + $0xf8] sm:$0xff] %vm1729_vm5, %v2876_v38 }
 0x288 PF: > { %s14_s15 = sadd.s32 1, %s3632_s15  }
 0x289   : > { %p11_p4 = scmp.ge.s32.totalorder %s14_s15, 4  }
 0x28b   :  { %13 = sbr.rel (!%p11_p4) target bundleno = 1 (0x1), region = 77 }

// kernel: tpu_custom_call.1
= control target key start
LH: loop header
LB: loop body
LE: loop exit
PB: predicated region body
PF: predicated region fallthrough
CT: control target
= control target key end

     0   :  { %s3663_s15 = smov 0   ;;  %s5136_s0 = inlined_call_operand.vmem [shape: f32[3,24,4], index: 0, kind: input, shape index: {}]   ;;  %s5137_s1 = inlined_call_operand.vmem [shape: f32[2,16,16,8], index: 1, kind: input, shape index: {}]   ;;  %s5138_s2 = inlined_call_operand.vmem [shape: f32[2,16,16,8], index: 2, kind: input, shape index: {}]   ;;  %s5139_s3 = inlined_call_operand.vmem [shape: f32[2,16,16,4], index: 3, kind: input, shape index: {}]   ;;  %s5140_s4 = inlined_call_operand.vmem [shape: f32[2,16,16,4], index: 4, kind: output, shape index: {}]  }
   0x1 LB: > { %s2988_s16 = sadd.s32 4294967295, %s3632_s15   ;;  %p2992_p0 = scmp.ge.s32.totalorder %s3632_s15, 1  ;;  %s3632_s15 = sphi %s3663_s15, %s14_s15  }
   0x2   : > { %p182_p1 = scmp.lt.s32.totalorder %s3632_s15, 3 }
   0x4   : > { %p183_p2 = pnand %p2992_p0, %p182_p1 }
   0x5   : > { %p218_p3 = scmp.lt.s32.totalorder (!%p183_p2), %s2988_s16, 1  ;;  %s3635_s21 = smov (!%p183_p2), 8  }
   0x6   : > { %186 = sbr.rel (%p183_p2) target bundleno = 648 (0x288), region = 36  ;;  %s3636_s22 = smov (!%p183_p2), 16  }
   0xb   : > { %vm494_vm0 = vcmask 64512   ;;  %v3634_v0 = vmov 0.0   ;;  %s5142_s16 = smov (!%p218_p3, %s2988_s16), 1  ;;  %v3637_v6 = vmov -1.0  }
   0xc   : > { %511 = vst.msk [vmem:[#allocation2 + $0xe8] sm:$0xff] %vm494_vm0, %v3634_v0  ;;  %495 = vst.msk [vmem:[#allocation2] sm:$0xff] %vm494_vm0, %v3634_v0  ;;  %s3697_s17 = sshll.u32 %s5142_s16, 8 }
   0xd   : > { %496 = vst.msk [vmem:[#allocation2 + $0x8] sm:$0xff] %vm494_vm0, %v3634_v0  ;;  %497 = vst.msk [vmem:[#allocation2 + $0x10] sm:$0xff] %vm494_vm0, %v3634_v0  ;;  %s3703_s20 = scalar_lea.vmem %s5138_s2, %s3697_s17  ;;  %s3749_s25 = scalar_lea.vmem %s5137_s1, %s3697_s17 }
   0xe   : > { %499 = vst.msk [vmem:[#allocation2 + $0x198] sm:$0xff] %vm494_vm0, %v3634_v0  ;;  %500 = vst.msk [vmem:[#allocation2 + $0x1a0] sm:$0xff] %vm494_vm0, %v3634_v0  ;;  %v256_v1 = vld [vmem:[%s3703_s20 + $0x90] sm:$0xff]  ;;  %v254_v2 = vld [vmem:[%s3703_s20 + $0x80] sm:$0xff] }
   0xf   : > { %501 = vst.msk [vmem:[#allocation2 + $0x1a8] sm:$0xff] %vm494_vm0, %v3634_v0  ;;  %503 = vst.msk [vmem:[#allocation2 + $0x28] sm:$0xff] %vm494_vm0, %v3634_v0  ;;  %vm320_vm1 = vcmp.ge.f32.partialorder %v256_v1, 0.0  ;;  %vm318_vm2 = vcmp.ge.f32.partialorder %v254_v2, 0.0  ;;  %v257_v12 = vld [vmem:[%s3703_s20 + $0x98] sm:$0xff]  ;;  %v255_v13 = vld [vmem:[%s3703_s20 + $0x88] sm:$0xff] }
  0x10   : > { %504 = vst.msk [vmem:[#allocation2 + $0x40] sm:$0xff] %vm494_vm0, %v3634_v0  ;;  %505 = vst.msk [vmem:[#allocation2 + $0x58] sm:$0xff] %vm494_vm0, %v3634_v0  ;;  %v352_v7 = vsel %vm320_vm1, 1.0, %v3637_v6  ;;  %v350_v8 = vsel %vm318_vm2, 1.0, %v3637_v6  ;;  %vm321_vm3 = vcmp.ge.f32.partialorder %v257_v12, 0.0  ;;  %v238_v14 = vld [vmem:[%s3703_s20] sm:$0xff] }
  0x11   : > { %506 = vst.msk [vmem:[#allocation2 + $0x70] sm:$0xff] %vm494_vm0, %v3634_v0  ;;  %507 = vst.msk [vmem:[#allocation2 + $0x88] sm:$0xff] %vm494_vm0, %v3634_v0  ;;  %v384_v10 = vmul.f32 0.01, %v352_v7  ;;  %v382_v11 = vmul.f32 0.01, %v350_v8 }
  0x12   : > { %508 = vst.msk [vmem:[#allocation2 + $0xa0] sm:$0xff] %vm494_vm0, %v3634_v0  ;;  %509 = vst.msk [vmem:[#allocation2 + $0xb8] sm:$0xff] %vm494_vm0, %v3634_v0  ;;  %v353_v17 = vsel %vm321_vm3, 1.0, %v3637_v6  ;;  %vm319_vm4 = vcmp.ge.f32.partialorder %v255_v13, 0.0  ;;  %v258_v18 = vld [vmem:[%s3703_s20 + $0xa0] sm:$0xff]  ;;  %vm302_vm5 = vcmp.ge.f32.partialorder %v238_v14, 0.0 }
  0x13   : > { %510 = vst.msk [vmem:[#allocation2 + $0xd0] sm:$0xff] %vm494_vm0, %v3634_v0  ;;  %512 = vst.msk [vmem:[#allocation2 + $0x100] sm:$0xff] %vm494_vm0, %v3634_v0  ;;  %v3707_v3 = vld [vmem:[#allocation2 + $0xe8] sm:$0xff]  ;;  %v416_v15 = vadd.f32 %v384_v10, %v256_v1  ;;  %v414_v16 = vadd.f32 %v382_v11, %v254_v2  ;;  %v385_v19 = vmul.f32 0.01, %v353_v17  ;;  %v351_v20 = vsel %vm319_vm4, 1.0, %v3637_v6 }
  0x14   : > { %513 = vst.msk [vmem:[#allocation2 + $0x118] sm:$0xff] %vm494_vm0, %v3634_v0  ;;  %514 = vst.msk [vmem:[#allocation2 + $0x130] sm:$0xff] %vm494_vm0, %v3634_v0  ;;  %796 = vrot.lane.b32.xlu0 %v3707_v3, %s3635_s21  ;;  %vm322_vm6 = vcmp.ge.f32.partialorder %v258_v18, 0.0  ;;  %v239_v21 = vld [vmem:[%s3703_s20 + $0x8] sm:$0xff]  ;;  %v383_v22 = vmul.f32 0.01, %v351_v20 }
  0x15   : > { %515 = vst.msk [vmem:[#allocation2 + $0x148] sm:$0xff] %vm494_vm0, %v3634_v0  ;;  %516 = vst.msk [vmem:[#allocation2 + $0x160] sm:$0xff] %vm494_vm0, %v3634_v0  ;;  %3562 = vrcp.f32 %v416_v15  ;;  %v334_v23 = vsel %vm302_vm5, 1.0, %v3637_v6  ;;  %v354_v24 = vsel %vm322_vm6, 1.0, %v3637_v6  ;;  %v259_v25 = vld [vmem:[%s3703_s20 + $0xa8] sm:$0xff]  ;;  %v417_v26 = vadd.f32 %v385_v19, %v257_v12  ;;  %v240_v29 = vld [vmem:[%s3703_s20 + $0x10] sm:$0xff] }
  0x16   : > { %517 = vst.msk [vmem:[#allocation2 + $0x178] sm:$0xff] %vm494_vm0, %v3634_v0  ;;  %518 = vst.msk [vmem:[#allocation2 + $0x190] sm:$0xff] %vm494_vm0, %v3634_v0  ;;  %3564 = vrcp.f32 %v414_v16  ;;  %v366_v27 = vmul.f32 0.01, %v334_v23  ;;  %v386_v28 = vmul.f32 0.01, %v354_v24  ;;  %v415_v30 = vadd.f32 %v383_v22, %v255_v13 }
  0x17   : > { %v3717_v9 = vld [vmem:[#allocation2 + $0x40] sm:$0xff]  ;;  %vm303_vm7 = vcmp.ge.f32.partialorder %v239_v21, 0.0  ;;  %vm323_vm8 = vcmp.ge.f32.partialorder %v259_v25, 0.0  ;;  %vm304_vm9 = vcmp.ge.f32.partialorder %v240_v29, 0.0  ;;  %v241_v31 = vld [vmem:[%s3703_s20 + $0x18] sm:$0xff]  ;;  %3566 = vrcp.f32 %v417_v26  ;;  %v260_v35 = vld [vmem:[%s3703_s20 + $0xb0] sm:$0xff] }
  0x18   : > { %v398_v32 = vadd.f32 %v366_v27, %v238_v14  ;;  %v418_v33 = vadd.f32 %v386_v28, %v258_v18  ;;  %v335_v34 = vsel %vm303_vm7, 1.0, %v3637_v6  ;;  %v601_v36 = vld [vmem:[#allocation2 + $0x28] sm:$0xff]  ;;  %3568 = vrcp.f32 %v415_v30  ;;  %v242_v40 = vld [vmem:[%s3703_s20 + $0x20] sm:$0xff]  ;;  %v261_v43 = vld [vmem:[%s3703_s20 + $0xb8] sm:$0xff] }
  0x19   : > { %v367_v37 = vmul.f32 0.01, %v335_v34  ;;  %v355_v38 = vsel %vm323_vm8, 1.0, %v3637_v6  ;;  %v336_v39 = vsel %vm304_vm9, 1.0, %v3637_v6  ;;  %vm305_vm10 = vcmp.ge.f32.partialorder %v241_v31, 0.0  ;;  %v243_v50 = vld [vmem:[%s3703_s20 + $0x28] sm:$0xff] }
  0x1a   : > { %v674_v5 = vld [vmem:[#allocation2 + $0x100] sm:$0xff]  ;;  %3570 = vrcp.f32 %v398_v32  ;;  %v387_v41 = vmul.f32 0.01, %v355_v38  ;;  %v368_v42 = vmul.f32 0.01, %v336_v39  ;;  %v337_v45 = vsel %vm305_vm10, 1.0, %v3637_v6 }
  0x1b   : > { %v3709_v4 = vld [vmem:[#allocation2 + $0x118] sm:$0xff]  ;;  %988 = vrot.lane.b32.xlu0 %v674_v5, %s3636_s22  ;;  %3572 = vrcp.f32 %v418_v33  ;;  %v399_v44 = vadd.f32 %v367_v37, %v239_v21  ;;  %vm324_vm11 = vcmp.ge.f32.partialorder %v260_v35, 0.0  ;;  %v369_v48 = vmul.f32 0.01, %v337_v45  ;;  %v262_v52 = vld [vmem:[%s3703_s20 + $0xc0] sm:$0xff]  ;;  %v244_v53 = vld [vmem:[%s3703_s20 + $0x30] sm:$0xff] }
  0x1c   : > { %994 = vrot.lane.b32.xlu1 %v3709_v4, %s3636_s22  ;;  %v419_v46 = vadd.f32 %v387_v41, %v259_v25  ;;  %v400_v47 = vadd.f32 %v368_v42, %v240_v29  ;;  %v356_v49 = vsel %vm324_vm11, 1.0, %v3637_v6  ;;  %vm306_vm12 = vcmp.ge.f32.partialorder %v242_v40, 0.0  ;;  %v263_v60 = vld [vmem:[%s3703_s20 + $0xc8] sm:$0xff]  ;;  %v288_v61 = vld [vmem:[%s3749_s25 + $0x90] sm:$0xff]  ;;  %v286_v62 = vld [vmem:[%s3749_s25 + $0x80] sm:$0xff] }
  0x1d   : > { %3574 = vrcp.f32 %v399_v44  ;;  %v388_v51 = vmul.f32 0.01, %v356_v49  ;;  %vm325_vm13 = vcmp.ge.f32.partialorder %v261_v43, 0.0  ;;  %v401_v54 = vadd.f32 %v369_v48, %v241_v31  ;;  %v245_v10 = vld [vmem:[%s3703_s20 + $0x38] sm:$0xff]  ;;  %v264_v16 = vld [vmem:[%s3703_s20 + $0xd0] sm:$0xff]  ;;  %v287_v18 = vld [vmem:[%s3749_s25 + $0x88] sm:$0xff] }
  0x1e   : > { %3576 = vrcp.f32 %v419_v46  ;;  %v338_v55 = vsel %vm306_vm12, 1.0, %v3637_v6  ;;  %v357_v56 = vsel %vm325_vm13, 1.0, %v3637_v6  ;;  %vm307_vm14 = vcmp.ge.f32.partialorder %v243_v50, 0.0  ;;  %v289_v13 = vld [vmem:[%s3749_s25 + $0x98] sm:$0xff]  ;;  %v270_v22 = vld [vmem:[%s3749_s25] sm:$0xff]  ;;  %v1179_v42 = vld [vmem:[%s5136_s0 + $0x10] sm:$0xff] }
  0x1f   : > { %802 = vrot.lane.b32.xlu0 %v674_v5, %s3635_s21  ;;  %3578 = vrcp.f32 %v400_v47  ;;  %v420_v57 = vadd.f32 %v388_v51, %v260_v35  ;;  %v370_v58 = vmul.f32 0.01, %v338_v55  ;;  %v389_v59 = vmul.f32 0.01, %v357_v56  ;;  %v3769_v26 = vld [vmem:[%s3703_s20 + $0x40] sm:$0xff]  ;;  %v3775_v35 = vld [vmem:[%s3703_s20 + $0xd8] sm:$0xff]  ;;  %3544 = vmatprep.subr.mxu1 %v1179_v42 }
  0x20   : > { %940 = vrot.lane.b32.xlu1 %v3717_v9, %s3636_s22  ;;  %3580 = vrcp.f32 %v401_v54  ;;  %vm326_vm15 = vcmp.ge.f32.partialorder %v262_v52, 0.0  ;;  %vm308_vm1 = vcmp.ge.f32.partialorder %v244_v53, 0.0  ;;  %v339_v1 = vsel %vm307_vm14, 1.0, %v3637_v6  ;;  %v290_v29 = vld [vmem:[%s3749_s25 + $0xa0] sm:$0xff]  ;;  %v291_v44 = vld [vmem:[%s3749_s25 + $0xa8] sm:$0xff]  ;;  %3310 = vmatprep.subr.mxu0 %v1179_v42  ;;  %v272_v49 = vld [vmem:[%s3749_s25 + $0x10] sm:$0xff] }
  0x21   : > { %3582 = vrcp.f32 %v420_v57  ;;  %v402_v63 = vadd.f32 %v370_v58, %v242_v40  ;;  %v421_v0 = vadd.f32 %v389_v59, %v261_v43  ;;  %v371_v5 = vmul.f32 0.01, %v339_v1  ;;  %v3781_v37 = vld [vmem:[%s3703_s20 + $0xe0] sm:$0xff]  ;;  %v271_v40 = vld [vmem:[%s3749_s25 + $0x8] sm:$0xff]  ;;  %3547 = vmatpush3.msra.mxu1 %v1179_v42  ;;  %3311 = vmatpush3.msra.mxu0 %v1179_v42  ;;  %v273_v54 = vld [vmem:[%s3749_s25 + $0x18] sm:$0xff] }
  0x22   : > { %v3563_v2 = vpop.eup %3562  ;;  %v358_v7 = vsel %vm326_vm15, 1.0, %v3637_v6  ;;  %v340_v8 = vsel %vm308_vm1, 1.0, %v3637_v6  ;;  %vm327_vm2 = vcmp.ge.f32.partialorder %v263_v60, 0.0  ;;  %vm309_vm3 = vcmp.ge.f32.partialorder %v245_v10, 0.0  ;;  %v1178_v47 = vld [vmem:[%s5136_s0 + $0x8] sm:$0xff]  ;;  %v1177_v51 = vld [vmem:[%s5136_s0] sm:$0xff] }
  0x23   : > { %748 = vrot.lane.b32.xlu0 %v601_v36, %s3635_s21  ;;  %v3565_v11 = vpop.eup %3564  ;;  %v467_v12 = vmul.f32 %v3563_v2, %v288_v61  ;;  %3584 = vrcp.f32 %v402_v63  ;;  %v390_v14 = vmul.f32 0.01, %v358_v7  ;;  %v372_v15 = vmul.f32 0.01, %v340_v8  ;;  %v3778_v36 = vld [vmem:[%s3703_s20 + $0x48] sm:$0xff]  ;;  %v248_v57 = vld [vmem:[%s3703_s20 + $0x50] sm:$0xff]  ;;  %3545 = vmatprep.subr.mxu1 %v1178_v47 }
  0x24   : > { %v463_v17 = vmul.f32 %v3565_v11, %v286_v62  ;;  %3586 = vrcp.f32 %v421_v0  ;;  %v403_v19 = vadd.f32 %v371_v5, %v243_v50  ;;  %v359_v20 = vsel %vm327_vm2, 1.0, %v3637_v6  ;;  %v3567_v21 = vpop.eup %3566  ;;  %3312 = vmatprep.subr.mxu0 %v1178_v47  ;;  %v292_v61 = vld [vmem:[%s3749_s25 + $0xb0] sm:$0xff]  ;;  %3548 = vmatpush3.msra.mxu1 %v1178_v47  ;;  %v274_v7 = vld [vmem:[%s3749_s25 + $0x20] sm:$0xff]  ;;  %v267_v11 = vld [vmem:[%s3703_s20 + $0xe8] sm:$0xff] }
  0x25   : > { %537 = vst.msk [vmem:[#allocation2 + $0xf0] sm:$0xff] %vm494_vm0, %v467_v12  ;;  %v422_v23 = vadd.f32 %v390_v14, %v262_v52  ;;  %v404_v24 = vadd.f32 %v372_v15, %v244_v53  ;;  %v391_v25 = vmul.f32 0.01, %v359_v20  ;;  %v3569_v27 = vpop.eup %3568  ;;  %v469_v28 = vmul.f32 %v3567_v21, %v289_v13  ;;  %3313 = vmatpush3.msra.mxu0 %v1178_v47  ;;  %v250_v47 = vld [vmem:[%s3703_s20 + $0x60] sm:$0xff] }
  0x26   : > { %535 = vst.msk [vmem:[#allocation2 + $0xd8] sm:$0xff] %vm494_vm0, %v463_v17  ;;  %3588 = vrcp.f32 %v403_v19  ;;  %v341_v30 = vsel %vm309_vm3, 1.0, %v3637_v6  ;;  %vm328_vm4 = vcmp.ge.f32.partialorder %v264_v16, 0.0  ;;  %v465_v32 = vmul.f32 %v3569_v27, %v287_v18  ;;  %3546 = vmatprep.subr.mxu1 %v1177_v51  ;;  %v293_v19 = vld [vmem:[%s3749_s25 + $0xb8] sm:$0xff]  ;;  %3314 = vmatprep.subr.mxu0 %v1177_v51  ;;  %v252_v27 = vld [vmem:[%s3703_s20 + $0x70] sm:$0xff] }
  0x27   : > { %v3571_v31 = vpop.eup %3570  ;;  %3590 = vrcp.f32 %v422_v23  ;;  %v423_v33 = vadd.f32 %v391_v25, %v263_v60  ;;  %v373_v34 = vmul.f32 0.01, %v341_v30  ;;  %538 = vst.msk [vmem:[#allocation2 + $0xf8] sm:$0xff] %vm494_vm0, %v469_v28  ;;  %v360_v41 = vsel %vm328_vm4, 1.0, %v3637_v6  ;;  %3549 = vmatpush3.msra.mxu1 %v1177_v51  ;;  %3315 = vmatpush3.msra.mxu0 %v1177_v51  ;;  %v275_v30 = vld [vmem:[%s3749_s25 + $0x28] sm:$0xff] }
  0x28   : > { %v3573_v38 = vpop.eup %3572  ;;  %v431_v39 = vmul.f32 %v3571_v31, %v270_v22  ;;  %3592 = vrcp.f32 %v404_v24  ;;  %vm310_vm5 = vcmp.ge.f32.partialorder %v3769_v26, 0.0  ;;  %536 = vst.msk [vmem:[#allocation2 + $0xe0] sm:$0xff] %vm494_vm0, %v465_v32  ;;  %v392_v46 = vmul.f32 0.01, %v360_v41 }
  0x29   : > { %v471_v43 = vmul.f32 %v3573_v38, %v290_v29  ;;  %3594 = vrcp.f32 %v423_v33  ;;  %v405_v45 = vadd.f32 %v373_v34, %v245_v10  ;;  %v342_v50 = vsel %vm310_vm5, 1.0, %v3637_v6  ;;  %v294_v33 = vld [vmem:[%s3749_s25 + $0xc0] sm:$0xff] }
  0x2a   : > { %v3575_v48 = vpop.eup %3574  ;;  %519 = vst.msk [vmem:[#allocation2 + $0x18] sm:$0xff] %vm494_vm0, %v431_v39  ;;  %vm329_vm6 = vcmp.ge.f32.partialorder %v3775_v35, 0.0  ;;  %vm311_vm7 = vcmp.ge.f32.partialorder %v3778_v36, 0.0  ;;  %vm330_vm8 = vcmp.ge.f32.partialorder %v3781_v37, 0.0  ;;  %v424_v55 = vadd.f32 %v392_v46, %v264_v16  ;;  %v3831_v16 = vld [vmem:[%s3703_s20 + $0x58] sm:$0xff] }
  0x2b   : > { %v3577_v52 = vpop.eup %3576  ;;  %539 = vst.msk [vmem:[#allocation2 + $0x108] sm:$0xff] %vm494_vm0, %v471_v43  ;;  %v433_v53 = vmul.f32 %v3575_v48, %v271_v40  ;;  %3596 = vrcp.f32 %v405_v45  ;;  %v374_v56 = vmul.f32 0.01, %v342_v50  ;;  %v361_v62 = vsel %vm329_vm6, 1.0, %v3637_v6  ;;  %v276_v40 = vld [vmem:[%s3749_s25 + $0x30] sm:$0xff]  ;;  %v277_v50 = vld [vmem:[%s3749_s25 + $0x38] sm:$0xff] }
  0x2c   : > { %v3579_v58 = vpop.eup %3578  ;;  %v3807_v59 = vld [vmem:[#allocation2 + $0xf0] sm:$0xff]  ;;  %v473_v60 = vmul.f32 %v3577_v52, %v291_v44  ;;  %v343_v63 = vsel %vm311_vm7, 1.0, %v3637_v6  ;;  %v362_v0 = vsel %vm330_vm8, 1.0, %v3637_v6  ;;  %3598 = vrcp.f32 %v424_v55  ;;  %v295_v44 = vld [vmem:[%s3749_s25 + $0xc8] sm:$0xff] }
  0x2d   : > { %v3581_v1 = vpop.eup %3580  ;;  %984 = vrot.lane.b32.xlu1 %v3807_v59, %s3636_s22  ;;  %v3821_v2 = vld [vmem:[#allocation2 + $0xd8] sm:$0xff]  ;;  %520 = vst.msk [vmem:[#allocation2 + $0x20] sm:$0xff] %vm494_vm0, %v433_v53  ;;  %v435_v5 = vmul.f32 %v3579_v58, %v272_v49  ;;  %v406_v8 = vadd.f32 %v374_v56, %v3769_v26  ;;  %v393_v10 = vmul.f32 0.01, %v361_v62  ;;  %v375_v14 = vmul.f32 0.01, %v343_v63 }
  0x2e   : > { %v3583_v12 = vpop.eup %3582  ;;  %792 = vrot.lane.b32.xlu0 %v3821_v2, %s3635_s21  ;;  %540 = vst.msk [vmem:[#allocation2 + $0x110] sm:$0xff] %vm494_vm0, %v473_v60  ;;  %v437_v13 = vmul.f32 %v3581_v1, %v273_v54  ;;  %v394_v15 = vmul.f32 0.01, %v362_v0  ;;  %vm312_vm9 = vcmp.ge.f32.partialorder %v248_v57, 0.0  ;;  %v3833_v17 = vld [vmem:[#allocation2 + $0xf8] sm:$0xff]  ;;  %vm331_vm10 = vcmp.ge.f32.partialorder %v267_v11, 0.0 }
  0x2f   : > { %521 = vst.msk [vmem:[#allocation2 + $0x30] sm:$0xff] %vm494_vm0, %v435_v5  ;;  %v475_v18 = vmul.f32 %v3583_v12, %v292_v61  ;;  %3600 = vrcp.f32 %v406_v8  ;;  %v425_v20 = vadd.f32 %v393_v10, %v3775_v35  ;;  %v344_v21 = vsel %vm312_vm9, 1.0, %v3637_v6  ;;  %v3839_v23 = vld [vmem:[#allocation2 + $0xe0] sm:$0xff]  ;;  %v251_v58 = vld [vmem:[%s3703_s20 + $0x68] sm:$0xff]  ;;  %v296_v0 = vld [vmem:[%s3749_s25 + $0xd0] sm:$0xff] }
  0x30   : > { %v3585_v22 = vpop.eup %3584  ;;  %522 = vst.msk [vmem:[#allocation2 + $0x38] sm:$0xff] %vm494_vm0, %v437_v13  ;;  %v407_v24 = vadd.f32 %v375_v14, %v3778_v36  ;;  %v426_v25 = vadd.f32 %v394_v15, %v3781_v37  ;;  %v376_v26 = vmul.f32 0.01, %v344_v21  ;;  %v363_v31 = vsel %vm331_vm10, 1.0, %v3637_v6  ;;  %v253_v36 = vld [vmem:[%s3703_s20 + $0x78] sm:$0xff]  ;;  %v268_v37 = vld [vmem:[%s3703_s20 + $0xf0] sm:$0xff] }
  0x31   : > { %v3587_v28 = vpop.eup %3586  ;;  %986 = vrot.lane.b32.xlu1 %v3833_v17, %s3636_s22  ;;  %541 = vst.msk [vmem:[#allocation2 + $0x120] sm:$0xff] %vm494_vm0, %v475_v18  ;;  %v439_v29 = vmul.f32 %v3585_v22, %v274_v7  ;;  %3602 = vrcp.f32 %v425_v20  ;;  %vm313_vm11 = vcmp.ge.f32.partialorder %v3831_v16, 0.0  ;;  %v395_v35 = vmul.f32 0.01, %v363_v31  ;;  %v3856_v39 = vld [vmem:[#allocation2 + $0x18] sm:$0xff]  ;;  %v278_v13 = vld [vmem:[%s3749_s25 + $0x40] sm:$0xff] }
  0x32   : > { %794 = vrot.lane.b32.xlu0 %v3839_v23, %s3635_s21  ;;  %v477_v32 = vmul.f32 %v3587_v28, %v293_v19  ;;  %3604 = vrcp.f32 %v407_v24  ;;  %v408_v34 = vadd.f32 %v376_v26, %v248_v57  ;;  %v345_v41 = vsel %vm313_vm11, 1.0, %v3637_v6  ;;  %v3870_v53 = vld [vmem:[#allocation2 + $0x108] sm:$0xff]  ;;  %v269_v57 = vld [vmem:[%s3703_s20 + $0xf8] sm:$0xff]  ;;  %v298_v31 = vld [vmem:[%s3749_s25 + $0xe0] sm:$0xff] }
  0x33   : > { %v3589_v38 = vpop.eup %3588  ;;  %523 = vst.msk [vmem:[#allocation2 + $0x48] sm:$0xff] %vm494_vm0, %v439_v29  ;;  %3606 = vrcp.f32 %v426_v25  ;;  %vm316_vm12 = vcmp.ge.f32.partialorder %v252_v27, 0.0  ;;  %v427_v45 = vadd.f32 %v395_v35, %v267_v11  ;;  %v377_v46 = vmul.f32 0.01, %v345_v41  ;;  %v297_v24 = vld [vmem:[%s3749_s25 + $0xd8] sm:$0xff]  ;;  %v279_v29 = vld [vmem:[%s3749_s25 + $0x48] sm:$0xff] }
  0x34   : > { %v3591_v42 = vpop.eup %3590  ;;  %542 = vst.msk [vmem:[#allocation2 + $0x128] sm:$0xff] %vm494_vm0, %v477_v32  ;;  %v441_v43 = vmul.f32 %v3589_v38, %v275_v30  ;;  %3608 = vrcp.f32 %v408_v34  ;;  %v348_v51 = vsel %vm316_vm12, 1.0, %v3637_v6  ;;  %vm317_vm13 = vcmp.ge.f32.partialorder %v253_v36, 0.0  ;;  %v3887_v12 = vld [vmem:[#allocation2 + $0x20] sm:$0xff] }
  0x35   : > { %v3593_v48 = vpop.eup %3592  ;;  %798 = vrot.lane.b32.xlu1 %v3807_v59, %s3635_s21  ;;  %v479_v49 = vmul.f32 %v3591_v42, %v294_v33  ;;  %vm332_vm14 = vcmp.ge.f32.partialorder %v268_v37, 0.0  ;;  %3610 = vrcp.f32 %v427_v45  ;;  %v409_v55 = vadd.f32 %v377_v46, %v3831_v16  ;;  %v3890_v18 = vld [vmem:[#allocation2 + $0x110] sm:$0xff]  ;;  %v299_v42 = vld [vmem:[%s3749_s25 + $0xe8] sm:$0xff]  ;;  %v281_v46 = vld [vmem:[%s3749_s25 + $0x58] sm:$0xff] }
  0x36   : > { %v3595_v52 = vpop.eup %3594  ;;  %744 = vrot.lane.b32.xlu0 %v3856_v39, %s3635_s21  ;;  %524 = vst.msk [vmem:[#allocation2 + $0x50] sm:$0xff] %vm494_vm0, %v441_v43  ;;  %v443_v54 = vmul.f32 %v3593_v48, %v276_v40  ;;  %v380_v56 = vmul.f32 0.01, %v348_v51  ;;  %v349_v61 = vsel %vm317_vm13, 1.0, %v3637_v6  ;;  %v364_v62 = vsel %vm332_vm14, 1.0, %v3637_v6 }
  0x37   : > { %543 = vst.msk [vmem:[#allocation2 + $0x138] sm:$0xff] %vm494_vm0, %v479_v49  ;;  %v481_v60 = vmul.f32 %v3595_v52, %v295_v44  ;;  %vm314_vm15 = vcmp.ge.f32.partialorder %v250_v47, 0.0  ;;  %3612 = vrcp.f32 %v409_v55  ;;  %v381_v5 = vmul.f32 0.01, %v349_v61  ;;  %v3913_v43 = vld [vmem:[#allocation2 + $0x38] sm:$0xff]  ;;  %v284_v49 = vld [vmem:[%s3749_s25 + $0x70] sm:$0xff] }
  0x38   : > { %v3597_v63 = vpop.eup %3596  ;;  %525 = vst.msk [vmem:[#allocation2 + $0x60] sm:$0xff] %vm494_vm0, %v443_v54  ;;  %v412_v1 = vadd.f32 %v380_v56, %v252_v27  ;;  %v396_v7 = vmul.f32 0.01, %v364_v62  ;;  %v346_v10 = vsel %vm314_vm15, 1.0, %v3637_v6  ;;  %vm333_vm1 = vcmp.ge.f32.partialorder %v269_v57, 0.0  ;;  %v3925_v52 = vld [vmem:[#allocation2 + $0x120] sm:$0xff] }
  0x39   : > { %990 = vrot.lane.b32.xlu1 %v3870_v53, %s3636_s22  ;;  %544 = vst.msk [vmem:[#allocation2 + $0x140] sm:$0xff] %vm494_vm0, %v481_v60  ;;  %v445_v8 = vmul.f32 %v3597_v63, %v277_v50  ;;  %vm315_vm2 = vcmp.ge.f32.partialorder %v251_v58, 0.0  ;;  %v3599_v11 = vpop.eup %3598  ;;  %v413_v14 = vadd.f32 %v381_v5, %v253_v36  ;;  %v378_v16 = vmul.f32 0.01, %v346_v10  ;;  %v280_v36 = vld [vmem:[%s3749_s25 + $0x50] sm:$0xff]  ;;  %v285_v54 = vld [vmem:[%s3749_s25 + $0x78] sm:$0xff] }
  0x3a   : > { %800 = vrot.lane.b32.xlu0 %v3833_v17, %s3635_s21  ;;  %3614 = vrcp.f32 %v412_v1  ;;  %v428_v15 = vadd.f32 %v396_v7, %v268_v37  ;;  %v483_v19 = vmul.f32 %v3599_v11, %v296_v0  ;;  %v365_v20 = vsel %vm333_vm1, 1.0, %v3637_v6  ;;  %v300_v56 = vld [vmem:[%s3749_s25 + $0xf0] sm:$0xff]  ;;  %v3935_v61 = vld [vmem:[#allocation2 + $0x48] sm:$0xff]  ;;  %v301_v1 = vld [vmem:[%s3749_s25 + $0xf8] sm:$0xff] }
  0x3b   : > { %526 = vst.msk [vmem:[#allocation2 + $0x68] sm:$0xff] %vm494_vm0, %v445_v8  ;;  %v347_v21 = vsel %vm315_vm2, 1.0, %v3637_v6  ;;  %3616 = vrcp.f32 %v413_v14  ;;  %v410_v25 = vadd.f32 %v378_v16, %v250_v47  ;;  %v397_v26 = vmul.f32 0.01, %v365_v20  ;;  %v3902_v6 = vld [vmem:[#allocation2 + $0x30] sm:$0xff]  ;;  %v283_v7 = vld [vmem:[%s3749_s25 + $0x68] sm:$0xff] }
  0x3c   : > { %v3601_v22 = vpop.eup %3600  ;;  %v379_v27 = vmul.f32 0.01, %v347_v21  ;;  %545 = vst.msk [vmem:[#allocation2 + $0x150] sm:$0xff] %vm494_vm0, %v483_v19  ;;  %3618 = vrcp.f32 %v428_v15  ;;  %v3946_v11 = vld [vmem:[#allocation2 + $0x128] sm:$0xff]  ;;  %v3961_v16 = vld [vmem:[#allocation2 + $0x130] sm:$0xff]  ;;  %v3967_v19 = vld [vmem:[#allocation2 + $0x58] sm:$0xff] }
  0x3d   : > { %746 = vrot.lane.b32.xlu1 %v3887_v12, %s3635_s21  ;;  %v447_v28 = vmul.f32 %v3601_v22, %v278_v13  ;;  %3620 = vrcp.f32 %v410_v25  ;;  %v429_v32 = vadd.f32 %v397_v26, %v269_v57  ;;  %v3959_v15 = vld [vmem:[#allocation2 + $0x50] sm:$0xff]  ;;  %v3997_v22 = vld [vmem:[#allocation2 + $0x148] sm:$0xff]  ;;  %vm1180_vm3 = vcmask 195584  }
  0x3e   : > { %v3603_v30 = vpop.eup %3602  ;;  %992 = vrot.lane.b32.xlu0 %v3890_v18, %s3636_s22  ;;  %v411_v33 = vadd.f32 %v379_v27, %v251_v58  ;;  %v282_v58 = vld [vmem:[%s3749_s25 + $0x60] sm:$0xff]  ;;  %vm1128_vm4 = vcmask 130048   ;;  %vm1729_vm5 = vcmask 31744   ;;  %s4874_s25 = scalar_lea.vmem %s5140_s4, %s3697_s17 }
  0x3f   : > { %v3605_v34 = vpop.eup %3604  ;;  %527 = vst.msk [vmem:[#allocation2 + $0x78] sm:$0xff] %vm494_vm0, %v447_v28  ;;  %v485_v35 = vmul.f32 %v3603_v30, %v297_v24  ;;  %3622 = vrcp.f32 %v429_v32  ;;  %v4007_v24 = vld [vmem:[#allocation2 + $0x70] sm:$0xff] }
  0x40   : > { %v3607_v37 = vpop.eup %3606  ;;  %v449_v38 = vmul.f32 %v3605_v34, %v279_v29  ;;  %3624 = vrcp.f32 %v411_v33  ;;  %v3985_v20 = vld [vmem:[#allocation2 + $0x140] sm:$0xff] }
  0x41   : > { %v3609_v40 = vpop.eup %3608  ;;  %936 = vrot.lane.b32.xlu1 %v3902_v6, %s3636_s22  ;;  %546 = vst.msk [vmem:[#allocation2 + $0x158] sm:$0xff] %vm494_vm0, %v485_v35  ;;  %v487_v41 = vmul.f32 %v3607_v37, %v298_v31  ;;  %v4033_v29 = vld [vmem:[#allocation2 + $0x160] sm:$0xff]  ;;  %v4039_v31 = vld [vmem:[#allocation2 + $0x88] sm:$0xff] }
  0x42   : > { %804 = vrot.lane.b32.xlu0 %v3870_v53, %s3635_s21  ;;  %528 = vst.msk [vmem:[#allocation2 + $0x80] sm:$0xff] %vm494_vm0, %v449_v38  ;;  %v451_v44 = vmul.f32 %v3609_v40, %v280_v36  ;;  %v3611_v45 = vpop.eup %3610  ;;  %v3991_v21 = vld [vmem:[#allocation2 + $0x68] sm:$0xff] }
  0x43   : > { %547 = vst.msk [vmem:[#allocation2 + $0x168] sm:$0xff] %vm494_vm0, %v487_v41  ;;  %v489_v47 = vmul.f32 %v3611_v45, %v299_v42  ;;  %v4009_v25 = vld [vmem:[#allocation2 + $0x150] sm:$0xff] }
  0x44   : > { %529 = vst.msk [vmem:[#allocation2 + $0x90] sm:$0xff] %vm494_vm0, %v451_v44  ;;  %v3613_v48 = vpop.eup %3612  ;;  %v4077_v44 = vld [vmem:[#allocation2 + $0x178] sm:$0xff] }
  0x45   : > { %938 = vrot.lane.b32.xlu1 %v3913_v43, %s3636_s22  ;;  %548 = vst.msk [vmem:[#allocation2 + $0x170] sm:$0xff] %vm494_vm0, %v489_v47  ;;  %v453_v50 = vmul.f32 %v3613_v48, %v281_v46  ;;  %v4079_v47 = vld [vmem:[#allocation2 + $0xd0] sm:$0xff] }
  0x46   : > { %806 = vrot.lane.b32.xlu0 %v3890_v18, %s3635_s21  ;;  %v4015_v26 = vld [vmem:[#allocation2 + $0x78] sm:$0xff] }
  0x47   : > { %v3615_v51 = vpop.eup %3614  ;;  %530 = vst.msk [vmem:[#allocation2 + $0x98] sm:$0xff] %vm494_vm0, %v453_v50 }
  0x48   : > { %v459_v55 = vmul.f32 %v3615_v51, %v284_v49  ;;  %v3617_v57 = vpop.eup %3616  ;;  %v4021_v27 = vld [vmem:[#allocation2 + $0x158] sm:$0xff]  ;;  %v3051_v49 = vld [vmem:[%s5136_s0 + $0x28] sm:$0xff] }
  0x49   : > { %750 = vrot.lane.b32.xlu1 %v3902_v6, %s3635_s21  ;;  %v3619_v60 = vpop.eup %3618  ;;  %v461_v62 = vmul.f32 %v3617_v57, %v285_v54  ;;  %v4031_v28 = vld [vmem:[#allocation2 + $0x80] sm:$0xff]  ;;  %3388 = vmatprep.subr.mxu1 %v3051_v49 }
  0x4a   : > { %996 = vrot.lane.b32.xlu0 %v3925_v52, %s3636_s22  ;;  %533 = vst.msk [vmem:[#allocation2 + $0xc0] sm:$0xff] %vm494_vm0, %v459_v55  ;;  %v3621_v63 = vpop.eup %3620  ;;  %v491_v0 = vmul.f32 %v3619_v60, %v300_v56  ;;  %v4045_v32 = vld [vmem:[#allocation2 + $0x168] sm:$0xff]  ;;  %v4108_v60 = vld [vmem:[#allocation2 + $0xa0] sm:$0xff] }
  0x4b   : > { %534 = vst.msk [vmem:[#allocation2 + $0xc8] sm:$0xff] %vm494_vm0, %v461_v62  ;;  %v455_v5 = vmul.f32 %v3621_v63, %v282_v58  ;;  %v4057_v36 = vld [vmem:[#allocation2 + $0x90] sm:$0xff] }
  0x4c   : > { %v3623_v8 = vpop.eup %3622  ;;  %549 = vst.msk [vmem:[#allocation2 + $0x180] sm:$0xff] %vm494_vm0, %v491_v0  ;;  %v4059_v37 = vld [vmem:[#allocation2 + $0x170] sm:$0xff] }
  0x4d   : > { %942 = vrot.lane.b32.xlu1 %v3935_v61, %s3636_s22  ;;  %v3625_v10 = vpop.eup %3624  ;;  %531 = vst.msk [vmem:[#allocation2 + $0xa8] sm:$0xff] %vm494_vm0, %v455_v5  ;;  %v493_v13 = vmul.f32 %v3623_v8, %v301_v1  ;;  %v3102_v5 = vld [vmem:[%s5136_s0 + $0x40] sm:$0xff] }
  0x4e   : > { %752 = vrot.lane.b32.xlu0 %v3913_v43, %s3635_s21  ;;  %v457_v14 = vmul.f32 %v3625_v10, %v283_v7  ;;  %v4069_v41 = vld [vmem:[#allocation2 + $0x98] sm:$0xff]  ;;  %3466 = vmatprep.subr.mxu0 %v3102_v5 }
  0x4f   : > { %550 = vst.msk [vmem:[#allocation2 + $0x188] sm:$0xff] %vm494_vm0, %v493_v13 }
  0x50   : > { %532 = vst.msk [vmem:[#allocation2 + $0xb0] sm:$0xff] %vm494_vm0, %v457_v14 }
  0x51   : > { %998 = vrot.lane.b32.xlu1 %v3946_v11, %s3636_s22  ;;  %v4075_v42 = vld [vmem:[#allocation2 + $0xc0] sm:$0xff] }
  0x52   : > { %808 = vrot.lane.b32.xlu0 %v3709_v4, %s3635_s21  ;;  %v3973_v4 = vld [vmem:[#allocation2 + $0x138] sm:$0xff]  ;;  %v4093_v51 = vld [vmem:[#allocation2 + $0xc8] sm:$0xff] }
  0x53   : > { %v690_v0 = vld [vmem:[#allocation2 + $0x180] sm:$0xff] }
  0x54   : > { %v4123_v7 = vld [vmem:[#allocation2 + $0xa8] sm:$0xff] }
  0x55   : > { %754 = vrot.lane.b32.xlu1 %v3717_v9, %s3635_s21  ;;  %v3983_v9 = vld [vmem:[#allocation2 + $0x60] sm:$0xff] }
  0x56   : > { %810 = vrot.lane.b32.xlu0 %v3925_v52, %s3635_s21 }
  0x59   : > { %944 = vrot.lane.b32.xlu1 %v3959_v15, %s3636_s22 }
  0x5a   : > { %1000 = vrot.lane.b32.xlu0 %v3961_v16, %s3636_s22 }
  0x5d   : > { %946 = vrot.lane.b32.xlu1 %v3967_v19, %s3636_s22 }
  0x5e   : > { %756 = vrot.lane.b32.xlu0 %v3935_v61, %s3635_s21 }
  0x61   : > { %1002 = vrot.lane.b32.xlu1 %v3973_v4, %s3636_s22 }
  0x62   : > { %812 = vrot.lane.b32.xlu0 %v3946_v11, %s3635_s21 }
  0x65   : > { %758 = vrot.lane.b32.xlu1 %v3959_v15, %s3635_s21 }
  0x66   : > { %814 = vrot.lane.b32.xlu0 %v3961_v16, %s3635_s21 }
  0x69   : > { %948 = vrot.lane.b32.xlu1 %v3983_v9, %s3636_s22 }
  0x6a   : > { %1004 = vrot.lane.b32.xlu0 %v3985_v20, %s3636_s22 }
  0x6d   : > { %950 = vrot.lane.b32.xlu1 %v3991_v21, %s3636_s22 }
  0x6e   : > { %760 = vrot.lane.b32.xlu0 %v3967_v19, %s3635_s21 }
  0x71   : > { %1006 = vrot.lane.b32.xlu1 %v3997_v22, %s3636_s22 }
  0x72   : > { %816 = vrot.lane.b32.xlu0 %v3973_v4, %s3635_s21 }
  0x75   : > { %762 = vrot.lane.b32.xlu1 %v3983_v9, %s3635_s21 }
  0x76   : > { %818 = vrot.lane.b32.xlu0 %v3985_v20, %s3635_s21 }
  0x79   : > { %952 = vrot.lane.b32.xlu1 %v4007_v24, %s3636_s22 }
  0x7a   : > { %1008 = vrot.lane.b32.xlu0 %v4009_v25, %s3636_s22 }
  0x7d   : > { %954 = vrot.lane.b32.xlu1 %v4015_v26, %s3636_s22 }
  0x7e   : > { %764 = vrot.lane.b32.xlu0 %v3991_v21, %s3635_s21 }
  0x81   : > { %1010 = vrot.lane.b32.xlu1 %v4021_v27, %s3636_s22 }
  0x82   : > { %820 = vrot.lane.b32.xlu0 %v3997_v22, %s3635_s21 }
  0x85   : > { %766 = vrot.lane.b32.xlu1 %v4007_v24, %s3635_s21 }
  0x86   : > { %822 = vrot.lane.b32.xlu0 %v4009_v25, %s3635_s21  ;;  %v797_v30 = vpop.permute.xlu0 %796 }
  0x87   : > { %v1106_v55 = vsel %vm494_vm0, %v4079_v47, %v797_v30 }
  0x89   : > { %956 = vrot.lane.b32.xlu1 %v4031_v28, %s3636_s22 }
  0x8a   : > { %1012 = vrot.lane.b32.xlu0 %v4033_v29, %s3636_s22 }
  0x8d   : > { %958 = vrot.lane.b32.xlu1 %v4039_v31, %s3636_s22  ;;  %v989_v33 = vpop.permute.xlu0 %988 }
  0x8e   : > { %768 = vrot.lane.b32.xlu0 %v4015_v26, %s3635_s21  ;;  %v4051_v34 = vpop.permute.xlu1 %994  ;;  %v4111_v62 = vsel %vm1128_vm4, %v1106_v55, %v989_v33  ;;  %v691_v33 = vld [vmem:[#allocation2 + $0x188] sm:$0xff] }
  0x91   : > { %1014 = vrot.lane.b32.xlu1 %v4045_v32, %s3636_s22  ;;  %v803_v35 = vpop.permute.xlu0 %802 }
  0x92   : > { %824 = vrot.lane.b32.xlu0 %v4021_v27, %s3635_s21  ;;  %v4063_v38 = vpop.permute.xlu1 %940 }
  0x95   : > { %770 = vrot.lane.b32.xlu1 %v4031_v28, %s3635_s21  ;;  %v4067_v40 = vpop.permute.xlu0 %748 }
  0x96   : > { %826 = vrot.lane.b32.xlu0 %v4033_v29, %s3635_s21 }
  0x99   : > { %960 = vrot.lane.b32.xlu1 %v4057_v36, %s3636_s22 }
  0x9a   : > { %1016 = vrot.lane.b32.xlu0 %v4059_v37, %s3636_s22 }
  0x9d   : > { %962 = vrot.lane.b32.xlu1 %v4069_v41, %s3636_s22 }
  0x9e   : > { %772 = vrot.lane.b32.xlu0 %v4039_v31, %s3635_s21 }
  0x9f   : > { %v985_v45 = vpop.permute.xlu1 %984 }
  0xa0   : > { %v793_v46 = vpop.permute.xlu0 %792 }
  0xa1   : > { %v1104_v48 = vsel %vm494_vm0, %v4075_v42, %v793_v46  ;;  %1018 = vrot.lane.b32.xlu1 %v4077_v44, %s3636_s22  ;;  %v551_v46 = vld [vmem:[#allocation2] sm:$0xff] }
  0xa2   : > { %828 = vrot.lane.b32.xlu0 %v4045_v32, %s3635_s21  ;;  %v4091_v50 = vsel %vm1128_vm4, %v1104_v48, %v985_v45 }
  0xa3   : > { %3352 = vmatprep.mubr.msk.f32.mxu1 %vm1180_vm3, %v4091_v50  ;;  %v987_v54 = vpop.permute.xlu1 %986 }
  0xa4   : > { %v795_v56 = vpop.permute.xlu0 %794 }
  0xa5   : > { %v1105_v57 = vsel %vm494_vm0, %v4093_v51, %v795_v56  ;;  %774 = vrot.lane.b32.xlu1 %v4057_v36, %s3635_s21  ;;  %v552_v56 = vld [vmem:[#allocation2 + $0x8] sm:$0xff] }
  0xa6   : > { %830 = vrot.lane.b32.xlu0 %v4059_v37, %s3635_s21  ;;  %v4106_v58 = vsel %vm1128_vm4, %v1105_v57, %v987_v54  ;;  %v3050_v54 = vld [vmem:[%s5136_s0 + $0x20] sm:$0xff] }
  0xa7   : > { %3353 = vmatmul.mubr.msk.f32.vlgmr.msra.gmra.mxu1 %vm1180_vm3, %v4106_v58  ;;  %v799_v63 = vpop.permute.xlu1 %798 }
  0xa8   : > { %3355 = vmatprep.mubr.msk.f32.mxu1 %vm1180_vm3, %v4111_v62  ;;  %v745_v1 = vpop.permute.xlu0 %744  ;;  %3389 = vmatpush3.msra.mxu1 %v3051_v49  ;;  %v1107_v8 = vsel %vm494_vm0, %v3821_v2, %v799_v63  ;;  %v1109_v2 = vsel %vm494_vm0, %v3707_v3, %v803_v35  ;;  %v553_v3 = vld [vmem:[#allocation2 + $0x10] sm:$0xff] }
  0xa9   : > { %964 = vrot.lane.b32.xlu1 %v4108_v60, %s3636_s22  ;;  %v1080_v35 = vsel %vm494_vm0, %v551_v46, %v745_v1  ;;  %3390 = vmatprep.subr.mxu1 %v3050_v54  ;;  %v4168_v1 = vld [vmem:[#allocation2 + $0xb0] sm:$0xff] }
  0xaa   : > { %1020 = vrot.lane.b32.xlu0 %v690_v0, %s3636_s22  ;;  %3391 = vmatpush3.msra.mxu1 %v3050_v54 }
  0xab   : > { %v991_v10 = vpop.permute.xlu1 %990 }
  0xac   : > { %v4128_v13 = vsel %vm1128_vm4, %v1107_v8, %v991_v10  ;;  %v801_v14 = vpop.permute.xlu0 %800 }
  0xad   : > { %3356 = vmatmul.mubr.msk.f32.gmra.mxu1 %vm1180_vm3, %v4128_v13  ;;  %966 = vrot.lane.b32.xlu1 %v4123_v7, %s3636_s22  ;;  %v1108_v30 = vsel %vm494_vm0, %v3839_v23, %v801_v14  ;;  %v4149_v23 = vsel %vm1128_vm4, %v1109_v2, %v4051_v34  ;;  %v1082_v34 = vsel %vm494_vm0, %v553_v3, %v4067_v40  ;;  %v692_v14 = vld [vmem:[#allocation2 + $0x190] sm:$0xff]  ;;  %v3101_v40 = vld [vmem:[%s5136_s0 + $0x38] sm:$0xff] }
  0xae   : > { %776 = vrot.lane.b32.xlu0 %v4069_v41, %s3635_s21  ;;  %v4176_v46 = vsel %vm1128_vm4, %v1082_v34, %v4063_v38  ;;  %v4190_v38 = vld [vmem:[#allocation2 + $0xb8] sm:$0xff] }
  0xaf   : > { %v747_v45 = vpop.permute.xlu1 %746 }
  0xb0   : > { %v993_v48 = vpop.permute.xlu0 %992  ;;  %v1081_v8 = vsel %vm494_vm0, %v552_v56, %v747_v45  ;;  %v3049_v56 = vld [vmem:[%s5136_s0 + $0x18] sm:$0xff] }
  0xb1   : > { %v4141_v49 = vsel %vm1128_vm4, %v1108_v30, %v993_v48  ;;  %1022 = vrot.lane.b32.xlu1 %v691_v33, %s3636_s22  ;;  %3392 = vmatprep.subr.mxu1 %v3049_v56 }
  0xb2   : > { %832 = vrot.lane.b32.xlu0 %v4077_v44, %s3635_s21  ;;  %3358 = vmatprep.mubr.msk.f32.mxu1 %vm1180_vm3, %v4141_v49 }
  0xb3   : > { %3359 = vmatmul.mubr.msk.f32.gmra.mxu1 %vm1180_vm3, %v4149_v23  ;;  %v937_v55 = vpop.permute.xlu1 %936 }
  0xb4   : > { %v805_v57 = vpop.permute.xlu0 %804  ;;  %v4159_v63 = vsel %vm1128_vm4, %v1080_v35, %v937_v55  ;;  %3393 = vmatpush3.msra.mxu1 %v3049_v56  ;;  %v695_v56 = vld [vmem:[#allocation2 + $0x1a8] sm:$0xff] }
  0xb5   : > { %778 = vrot.lane.b32.xlu1 %v4108_v60, %s3635_s21  ;;  %3316 = vmatprep.mubr.msk.f32.mxu0 %vm1180_vm3, %v4159_v63 }
  0xb6   : > { %834 = vrot.lane.b32.xlu0 %v690_v0, %s3635_s21  ;;  %v1110_v0 = vsel %vm494_vm0, %v3807_v59, %v805_v57  ;;  %v693_v59 = vld [vmem:[#allocation2 + $0x198] sm:$0xff] }
  0xb7   : > { %v939_v10 = vpop.permute.xlu1 %938 }
  0xb8   : > { %v4172_v30 = vsel %vm1128_vm4, %v1081_v8, %v939_v10  ;;  %v807_v2 = vpop.permute.xlu0 %806  ;;  %v583_v10 = vld [vmem:[#allocation2 + $0x100] sm:$0xff] }
  0xb9   : > { %968 = vrot.lane.b32.xlu1 %v4168_v1, %s3636_s22  ;;  %3317 = vmatmul.mubr.msk.f32.vlgmr.msra.gmra.mxu0 %vm1180_vm3, %v4172_v30 }
  0xba   : > { %1024 = vrot.lane.b32.xlu0 %v692_v14, %s3636_s22  ;;  %3319 = vmatprep.mubr.msk.f32.mxu0 %vm1180_vm3, %v4176_v46 }
  0xbb   : > { %v751_v45 = vpop.permute.xlu1 %750  ;;  %3467 = vmatpush3.msra.mxu0 %v3102_v5 }
  0xbc   : > { %v997_v48 = vpop.permute.xlu0 %996  ;;  %3468 = vmatprep.subr.mxu0 %v3101_v40  ;;  %v1083_v3 = vsel %vm494_vm0, %v3856_v39, %v751_v45  ;;  %v1111_v39 = vsel %vm494_vm0, %v3833_v17, %v807_v2  ;;  %v3100_v17 = vld [vmem:[%s5136_s0 + $0x30] sm:$0xff] }
  0xbd   : > { %v4193_v54 = vsel %vm1128_vm4, %v1110_v0, %v997_v48  ;;  %970 = vrot.lane.b32.xlu1 %v4190_v38, %s3636_s22  ;;  %3469 = vmatpush3.msra.mxu0 %v3101_v40  ;;  %v694_v40 = vld [vmem:[#allocation2 + $0x1a0] sm:$0xff]  ;;  %v556_v48 = vld [vmem:[#allocation2 + $0x28] sm:$0xff] }
  0xbe   : > { %780 = vrot.lane.b32.xlu0 %v4123_v7, %s3635_s21  ;;  %3361 = vmatprep.mubr.msk.f32.mxu1 %vm1180_vm3, %v4193_v54 }
  0xbf   : > { %v943_v5 = vpop.permute.xlu1 %942  ;;  %3470 = vmatprep.subr.mxu0 %v3100_v17 }
  0xc0   : > { %v4204_v35 = vsel %vm1128_vm4, %v1083_v3, %v943_v5  ;;  %v753_v55 = vpop.permute.xlu0 %752  ;;  %3471 = vmatpush3.msra.mxu0 %v3100_v17  ;;  %v669_v17 = vld [vmem:[#allocation2 + $0xd8] sm:$0xff] }
  0xc1   : > { %1026 = vrot.lane.b32.xlu1 %v693_v59, %s3636_s22  ;;  %3320 = vmatmul.mubr.msk.f32.gmra.mxu0 %vm1180_vm3, %v4204_v35 }
  0xc2   : > { %836 = vrot.lane.b32.xlu0 %v691_v33, %s3635_s21 }
  0xc3   : > { %v999_v57 = vpop.permute.xlu1 %998 }
  0xc4   : > { %v4216_v34 = vsel %vm1128_vm4, %v1111_v39, %v999_v57  ;;  %v809_v8 = vpop.permute.xlu0 %808 }
  0xc5   : > { %782 = vrot.lane.b32.xlu1 %v4168_v1, %s3635_s21  ;;  %3362 = vmatmul.mubr.msk.f32.gmra.mxu1 %vm1180_vm3, %v4216_v34  ;;  %v1112_v2 = vsel %vm494_vm0, %v583_v10, %v809_v8 }
  0xc6   : > { %838 = vrot.lane.b32.xlu0 %v692_v14, %s3635_s21  ;;  %v1084_v14 = vsel %vm494_vm0, %v3887_v12, %v753_v55 }
  0xc7   : > { %v755_v33 = vpop.permute.xlu1 %754 }
  0xc8   : > { %v811_v0 = vpop.permute.xlu0 %810  ;;  %v1085_v12 = vsel %vm494_vm0, %v556_v48, %v755_v33 }
  0xc9   : > { %972 = vrot.lane.b32.xlu1 %v4075_v42, %s3636_s22  ;;  %v1113_v8 = vsel %vm494_vm0, %v3870_v53, %v811_v0 }
  0xca   : > { %1028 = vrot.lane.b32.xlu0 %v694_v40, %s3636_s22 }
  0xcb   : > { %v945_v45 = vpop.permute.xlu1 %944 }
  0xcc   : > { %v4233_v59 = vsel %vm1128_vm4, %v1084_v14, %v945_v45  ;;  %v1001_v3 = vpop.permute.xlu0 %1000  ;;  %v670_v14 = vld [vmem:[#allocation2 + $0xe0] sm:$0xff] }
  0xcd   : > { %v4236_v5 = vsel %vm1128_vm4, %v1112_v2, %v1001_v3  ;;  %974 = vrot.lane.b32.xlu1 %v4093_v51, %s3636_s22  ;;  %3322 = vmatprep.mubr.msk.f32.mxu0 %vm1180_vm3, %v4233_v59 }
  0xce   : > { %3364 = vmatprep.mubr.msk.f32.mxu1 %vm1180_vm3, %v4236_v5  ;;  %784 = vrot.lane.b32.xlu0 %v4190_v38, %s3635_s21 }
  0xcf   : > { %v947_v55 = vpop.permute.xlu1 %946 }
  0xd0   : > { %v4248_v39 = vsel %vm1128_vm4, %v1085_v12, %v947_v55  ;;  %v757_v57 = vpop.permute.xlu0 %756  ;;  %v586_v12 = vld [vmem:[#allocation2 + $0x118] sm:$0xff] }
  0xd1   : > { %1030 = vrot.lane.b32.xlu1 %v695_v56, %s3636_s22  ;;  %3323 = vmatmul.mubr.msk.f32.gmra.mxu0 %vm1180_vm3, %v4248_v39 }
  0xd2   : > { %976 = vrot.lane.b32.xlu0 %v4079_v47, %s3636_s22 }
  0xd3   : > { %v1003_v10 = vpop.permute.xlu1 %1002 }
  0xd4   : > { %v4258_v40 = vsel %vm1128_vm4, %v1113_v8, %v1003_v10  ;;  %v813_v33 = vpop.permute.xlu0 %812 }
  0xd5   : > { %786 = vrot.lane.b32.xlu1 %v4075_v42, %s3635_s21  ;;  %3365 = vmatmul.mubr.msk.f32.gmra.mxu1 %vm1180_vm3, %v4258_v40  ;;  %v1114_v53 = vsel %vm494_vm0, %v3890_v18, %v813_v33  ;;  %v1086_v42 = vsel %vm494_vm0, %v3902_v6, %v757_v57  ;;  %v671_v18 = vld [vmem:[#allocation2 + $0xe8] sm:$0xff] }
  0xd6   : > { %788 = vrot.lane.b32.xlu0 %v4093_v51, %s3635_s21 }
  0xd7   : > { %v759_v2 = vpop.permute.xlu1 %758 }
  0xd8   : > { %v815_v45 = vpop.permute.xlu0 %814  ;;  %v1087_v6 = vsel %vm494_vm0, %v3913_v43, %v759_v2 }
  0xd9   : > { %978 = vrot.lane.b32.xlu1 %v669_v17, %s3636_s22  ;;  %v559_v17 = vld [vmem:[#allocation2 + $0x40] sm:$0xff] }
  0xda   : > { %980 = vrot.lane.b32.xlu0 %v670_v14, %s3636_s22 }
  0xdb   : > { %v949_v0 = vpop.permute.xlu1 %948 }
  0xdc   : > { %v4273_v48 = vsel %vm1128_vm4, %v1086_v42, %v949_v0  ;;  %v1005_v3 = vpop.permute.xlu0 %1004 }
  0xdd   : > { %v4276_v51 = vsel %vm1128_vm4, %v1114_v53, %v1005_v3  ;;  %790 = vrot.lane.b32.xlu1 %v4079_v47, %s3635_s21  ;;  %3325 = vmatprep.mubr.msk.f32.mxu0 %vm1180_vm3, %v4273_v48  ;;  %v1115_v47 = vsel %vm494_vm0, %v586_v12, %v815_v45 }
  0xde   : > { %3367 = vmatprep.mubr.msk.f32.mxu1 %vm1180_vm3, %v4276_v51 }
  0xdf   : > { %v951_v56 = vpop.permute.xlu1 %950 }
  0xe0   : > { %v4287_v55 = vsel %vm1128_vm4, %v1087_v6, %v951_v56  ;;  %v761_v57 = vpop.permute.xlu0 %760 }
  0xe1   : > { %982 = vrot.lane.b32.xlu1 %v671_v18, %s3636_s22  ;;  %3326 = vmatmul.mubr.msk.f32.gmra.mxu0 %vm1180_vm3, %v4287_v55  ;;  %v1088_v53 = vsel %vm494_vm0, %v559_v17, %v761_v57  ;;  %s4856_s22 = scalar_lea.vmem %s5139_s3, %s3697_s17 }
  0xe3   : > { %v1007_v8 = vpop.permute.xlu1 %1006 }
  0xe4   : > { %v4294_v10 = vsel %vm1128_vm4, %v1115_v47, %v1007_v8  ;;  %v817_v33 = vpop.permute.xlu0 %816 }
  0xe5   : > { %3368 = vmatmul.mubr.msk.f32.gmra.mxu1 %vm1180_vm3, %v4294_v10  ;;  %v1116_v14 = vsel %vm494_vm0, %v3925_v52, %v817_v33 }
  0xe7   : > { %v763_v43 = vpop.permute.xlu1 %762 }
  0xe8   : > { %v819_v2 = vpop.permute.xlu0 %818  ;;  %v1089_v18 = vsel %vm494_vm0, %v3935_v61, %v763_v43 }
  0xe9   : > { %v1117_v12 = vsel %vm494_vm0, %v3946_v11, %v819_v2 }
  0xeb   : > { %v953_v42 = vpop.permute.xlu1 %952 }
  0xec   : > { %v4302_v0 = vsel %vm1128_vm4, %v1088_v53, %v953_v42  ;;  %v1009_v45 = vpop.permute.xlu0 %1008 }
  0xed   : > { %v4305_v3 = vsel %vm1128_vm4, %v1116_v14, %v1009_v45  ;;  %3328 = vmatprep.mubr.msk.f32.mxu0 %vm1180_vm3, %v4302_v0 }
  0xee   : > { %3370 = vmatprep.mubr.msk.f32.mxu1 %vm1180_vm3, %v4305_v3 }
  0xef   : > { %v955_v52 = vpop.permute.xlu1 %954 }
  0xf0   : > { %v4314_v6 = vsel %vm1128_vm4, %v1089_v18, %v955_v52  ;;  %v765_v56 = vpop.permute.xlu0 %764 }
  0xf1   : > { %3329 = vmatmul.mubr.msk.f32.gmra.mxu0 %vm1180_vm3, %v4314_v6  ;;  %v1090_v17 = vsel %vm494_vm0, %v3959_v15, %v765_v56 }
  0xf3   : > { %v1011_v57 = vpop.permute.xlu1 %1010 }
  0xf4   : > { %v4321_v47 = vsel %vm1128_vm4, %v1117_v12, %v1011_v57  ;;  %v821_v8 = vpop.permute.xlu0 %820 }
  0xf5   : > { %3371 = vmatmul.mubr.msk.f32.gmra.mxu1 %vm1180_vm3, %v4321_v47  ;;  %v1118_v43 = vsel %vm494_vm0, %v3961_v16, %v821_v8 }
  0xf7   : > { %v767_v61 = vpop.permute.xlu1 %766 }
  0xf8   : > { %v823_v33 = vpop.permute.xlu0 %822  ;;  %v1091_v16 = vsel %vm494_vm0, %v3967_v19, %v767_v61 }
  0xf9   : > { %v1119_v18 = vsel %vm494_vm0, %v3973_v4, %v823_v33 }
  0xfb   : > { %v957_v14 = vpop.permute.xlu1 %956 }
  0xfc   : > { %v4330_v53 = vsel %vm1128_vm4, %v1090_v17, %v957_v14  ;;  %v1013_v11 = vpop.permute.xlu0 %1012 }
  0xfd   : > { %v4333_v2 = vsel %vm1128_vm4, %v1118_v43, %v1013_v11  ;;  %3331 = vmatprep.mubr.msk.f32.mxu0 %vm1180_vm3, %v4330_v53 }
  0xfe   : > { %3373 = vmatprep.mubr.msk.f32.mxu1 %vm1180_vm3, %v4333_v2 }
  0xff   : > { %v959_v42 = vpop.permute.xlu1 %958 }
 0x100   : > { %v4342_v15 = vsel %vm1128_vm4, %v1091_v16, %v959_v42  ;;  %v769_v45 = vpop.permute.xlu0 %768 }
 0x101   : > { %3332 = vmatmul.mubr.msk.f32.gmra.mxu0 %vm1180_vm3, %v4342_v15  ;;  %v1092_v61 = vsel %vm494_vm0, %v3983_v9, %v769_v45 }
 0x103   : > { %v1015_v52 = vpop.permute.xlu1 %1014 }
 0x104   : > { %v4349_v56 = vsel %vm1128_vm4, %v1119_v18, %v1015_v52  ;;  %v825_v12 = vpop.permute.xlu0 %824 }
 0x105   : > { %3374 = vmatmul.mubr.msk.f32.gmra.mxu1 %vm1180_vm3, %v4349_v56  ;;  %v1120_v8 = vsel %vm494_vm0, %v3985_v20, %v825_v12 }
 0x107   : > { %v771_v19 = vpop.permute.xlu1 %770 }
 0x108   : > { %v827_v57 = vpop.permute.xlu0 %826  ;;  %v1093_v20 = vsel %vm494_vm0, %v3991_v21, %v771_v19 }
 0x109   : > { %v1121_v16 = vsel %vm494_vm0, %v3997_v22, %v827_v57 }
 0x10b   : > { %v961_v43 = vpop.permute.xlu1 %960 }
 0x10c   : > { %v4358_v17 = vsel %vm1128_vm4, %v1092_v61, %v961_v43  ;;  %v1017_v4 = vpop.permute.xlu0 %1016 }
 0x10d   : > { %v4361_v33 = vsel %vm1128_vm4, %v1120_v8, %v1017_v4  ;;  %3334 = vmatprep.mubr.msk.f32.mxu0 %vm1180_vm3, %v4358_v17 }
 0x10e   : > { %3376 = vmatprep.mubr.msk.f32.mxu1 %vm1180_vm3, %v4361_v33 }
 0x10f   : > { %v963_v14 = vpop.permute.xlu1 %962 }
 0x110   : > { %v4370_v9 = vsel %vm1128_vm4, %v1093_v20, %v963_v14  ;;  %v773_v11 = vpop.permute.xlu0 %772 }
 0x111   : > { %3335 = vmatmul.mubr.msk.f32.gmra.mxu0 %vm1180_vm3, %v4370_v9  ;;  %v1094_v19 = vsel %vm494_vm0, %v4007_v24, %v773_v11 }
 0x113   : > { %v1019_v42 = vpop.permute.xlu1 %1018 }
 0x114   : > { %v4377_v45 = vsel %vm1128_vm4, %v1121_v16, %v1019_v42  ;;  %v829_v18 = vpop.permute.xlu0 %828 }
 0x115   : > { %3377 = vmatmul.mubr.msk.f32.gmra.mxu1 %vm1180_vm3, %v4377_v45  ;;  %v1122_v12 = vsel %vm494_vm0, %v4009_v25, %v829_v18 }
 0x117   : > { %v775_v21 = vpop.permute.xlu1 %774 }
 0x118   : > { %v831_v52 = vpop.permute.xlu0 %830  ;;  %v1095_v25 = vsel %vm494_vm0, %v4015_v26, %v775_v21 }
 0x119   : > { %v1123_v20 = vsel %vm494_vm0, %v4021_v27, %v831_v52 }
 0x11b   : > { %v965_v8 = vpop.permute.xlu1 %964 }
 0x11c   : > { %v4386_v61 = vsel %vm1128_vm4, %v1094_v19, %v965_v8  ;;  %v1021_v22 = vpop.permute.xlu0 %1020 }
 0x11d   : > { %v4389_v57 = vsel %vm1128_vm4, %v1122_v12, %v1021_v22  ;;  %3337 = vmatprep.mubr.msk.f32.mxu0 %vm1180_vm3, %v4386_v61 }
 0x11e   : > { %3379 = vmatprep.mubr.msk.f32.mxu1 %vm1180_vm3, %v4389_v57 }
 0x11f   : > { %v967_v43 = vpop.permute.xlu1 %966 }
 0x120   : > { %v4398_v24 = vsel %vm1128_vm4, %v1095_v25, %v967_v43  ;;  %v777_v4 = vpop.permute.xlu0 %776 }
 0x121   : > { %3338 = vmatmul.mubr.msk.f32.gmra.mxu0 %vm1180_vm3, %v4398_v24  ;;  %v1096_v21 = vsel %vm494_vm0, %v4031_v28, %v777_v4 }
 0x123   : > { %v1023_v14 = vpop.permute.xlu1 %1022 }
 0x124   : > { %v4405_v11 = vsel %vm1128_vm4, %v1123_v20, %v1023_v14  ;;  %v833_v16 = vpop.permute.xlu0 %832 }
 0x125   : > { %3380 = vmatmul.mubr.msk.f32.gmra.mxu1 %vm1180_vm3, %v4405_v11  ;;  %v1124_v18 = vsel %vm494_vm0, %v4033_v29, %v833_v16 }
 0x127   : > { %v779_v26 = vpop.permute.xlu1 %778 }
 0x128   : > { %v835_v42 = vpop.permute.xlu0 %834  ;;  %v1097_v29 = vsel %vm494_vm0, %v4039_v31, %v779_v26 }
 0x129   : > { %v1125_v25 = vsel %vm494_vm0, %v4045_v32, %v835_v42 }
 0x12b   : > { %v969_v12 = vpop.permute.xlu1 %968 }
 0x12c   : > { %v4414_v19 = vsel %vm1128_vm4, %v1096_v21, %v969_v12  ;;  %v1025_v27 = vpop.permute.xlu0 %1024 }
 0x12d   : > { %v4417_v52 = vsel %vm1128_vm4, %v1124_v18, %v1025_v27  ;;  %3340 = vmatprep.mubr.msk.f32.mxu0 %vm1180_vm3, %v4414_v19 }
 0x12e   : > { %3382 = vmatprep.mubr.msk.f32.mxu1 %vm1180_vm3, %v4417_v52 }
 0x12f   : > { %v971_v8 = vpop.permute.xlu1 %970 }
 0x130   : > { %v4426_v28 = vsel %vm1128_vm4, %v1097_v29, %v971_v8  ;;  %v781_v22 = vpop.permute.xlu0 %780 }
 0x131   : > { %3341 = vmatmul.mubr.msk.f32.gmra.mxu0 %vm1180_vm3, %v4426_v28  ;;  %v1098_v26 = vsel %vm494_vm0, %v4057_v36, %v781_v22 }
 0x133   : > { %v1027_v43 = vpop.permute.xlu1 %1026 }
 0x134   : > { %v4433_v4 = vsel %vm1128_vm4, %v1125_v25, %v1027_v43  ;;  %v837_v20 = vpop.permute.xlu0 %836 }
 0x135   : > { %3383 = vmatmul.mubr.msk.f32.gmra.mxu1 %vm1180_vm3, %v4433_v4  ;;  %v1126_v16 = vsel %vm494_vm0, %v4059_v37, %v837_v20 }
 0x137   : > { %v783_v31 = vpop.permute.xlu1 %782 }
 0x138   : > { %v839_v14 = vpop.permute.xlu0 %838  ;;  %v1099_v37 = vsel %vm494_vm0, %v4069_v41, %v783_v31 }
 0x139   : > { %v1127_v8 = vsel %vm494_vm0, %v4077_v44, %v839_v14 }
 0x13b   : > { %v973_v18 = vpop.permute.xlu1 %972 }
 0x13c   : > { %v4442_v21 = vsel %vm1128_vm4, %v1098_v26, %v973_v18  ;;  %v1029_v32 = vpop.permute.xlu0 %1028 }
 0x13d   : > { %v4445_v42 = vsel %vm1128_vm4, %v1126_v16, %v1029_v32  ;;  %3343 = vmatprep.mubr.msk.f32.mxu0 %vm1180_vm3, %v4442_v21 }
 0x13e   : > { %3385 = vmatprep.mubr.msk.f32.mxu1 %vm1180_vm3, %v4445_v42 }
 0x13f   : > { %v975_v12 = vpop.permute.xlu1 %974 }
 0x140   : > { %v4454_v36 = vsel %vm1128_vm4, %v1099_v37, %v975_v12  ;;  %v785_v27 = vpop.permute.xlu0 %784 }
 0x141   : > { %3344 = vmatmul.mubr.msk.f32.gmra.mxu0 %vm1180_vm3, %v4454_v36  ;;  %v1100_v29 = vsel %vm494_vm0, %v4108_v60, %v785_v27 }
 0x143   : > { %v1031_v22 = vpop.permute.xlu1 %1030 }
 0x144   : > { %v4463_v25 = vsel %vm1128_vm4, %v1127_v8, %v1031_v22  ;;  %v977_v43 = vpop.permute.xlu0 %976 }
 0x145   : > { %3386 = vmatmul.mubr.msk.f32.gmra.mxu1 %vm1180_vm3, %v4463_v25  ;;  %v4468_v41 = vsel %vm1128_vm4, %v1100_v29, %v977_v43 }
 0x146   : > { %3394 = vmatprep.mubr.msk.f32.mxu1 %vm1180_vm3, %v4159_v63  ;;  %3346 = vmatprep.mubr.msk.f32.mxu0 %vm1180_vm3, %v4468_v41 }
 0x147   : > { %v787_v60 = vpop.permute.xlu1 %786 }
 0x148   : > { %v789_v20 = vpop.permute.xlu0 %788  ;;  %v1101_v31 = vsel %vm494_vm0, %v4123_v7, %v787_v60 }
 0x149   : > { %3395 = vmatmul.mubr.msk.f32.vlgmr.msra.gmra.mxu1 %vm1180_vm3, %v4172_v30  ;;  %v1102_v44 = vsel %vm494_vm0, %v4168_v1, %v789_v20 }
 0x14a   : > { %3397 = vmatprep.mubr.msk.f32.mxu1 %vm1180_vm3, %v4176_v46 }
 0x14b   : > { %v979_v14 = vpop.permute.xlu1 %978 }
 0x14c   : > { %v4483_v16 = vsel %vm1128_vm4, %v1101_v31, %v979_v14  ;;  %v981_v26 = vpop.permute.xlu0 %980 }
 0x14d   : > { %3347 = vmatmul.mubr.msk.f32.gmra.mxu0 %vm1180_vm3, %v4483_v16  ;;  %3398 = vmatmul.mubr.msk.f32.gmra.mxu1 %vm1180_vm3, %v4204_v35  ;;  %v4490_v18 = vsel %vm1128_vm4, %v1102_v44, %v981_v26 }
 0x14e   : > { %3400 = vmatprep.mubr.msk.f32.mxu1 %vm1180_vm3, %v4233_v59  ;;  %3349 = vmatprep.mubr.msk.f32.mxu0 %vm1180_vm3, %v4490_v18 }
 0x14f   : > { %v791_v7 = vpop.permute.xlu1 %790 }
 0x150   : > { %v1103_v1 = vsel %vm494_vm0, %v4190_v38, %v791_v7 }
 0x151   : > { %3401 = vmatmul.mubr.msk.f32.gmra.mxu1 %vm1180_vm3, %v4248_v39 }
 0x152   : > { %3403 = vmatprep.mubr.msk.f32.mxu1 %vm1180_vm3, %v4273_v48 }
 0x153   : > { %v983_v32 = vpop.permute.xlu1 %982 }
 0x154   : > { %v4503_v37 = vsel %vm1128_vm4, %v1103_v1, %v983_v32 }
 0x155   : > { %3350 = vmatmul.mubr.msk.f32.gmra.mxu0 %vm1180_vm3, %v4503_v37  ;;  %3404 = vmatmul.mubr.msk.f32.gmra.mxu1 %vm1180_vm3, %v4287_v55 }
 0x156   : > { %3406 = vmatprep.mubr.msk.f32.mxu1 %vm1180_vm3, %v4302_v0  ;;  %3472 = vmatprep.mubr.msk.f32.mxu0 %vm1180_vm3, %v4159_v63  ;;  %v1678_v63 = vlaneseq }
 0x159   : > { %3407 = vmatmul.mubr.msk.f32.gmra.mxu1 %vm1180_vm3, %v4314_v6  ;;  %3473 = vmatmul.mubr.msk.f32.vlgmr.msra.gmra.mxu0 %vm1180_vm3, %v4172_v30  ;;  %v4541_v30 = vshrl.u32 %v1678_v63, 7 }
 0x15a   : > { %3409 = vmatprep.mubr.msk.f32.mxu1 %vm1180_vm3, %v4330_v53  ;;  %3475 = vmatprep.mubr.msk.f32.mxu0 %vm1180_vm3, %v4176_v46 }
 0x15b   : > { %vm1680_vm0 = vcmp.lt.s32.totalorder %v4541_v30, 1  ;;  %vm2588_vm6 = vcmp.lt.s32.totalorder %v4541_v30, 7  ;;  %v2842_v30 = vld [vmem:[%s4856_s22 + $0xe8] sm:$0xff] }
 0x15d   : > { %3410 = vmatmul.mubr.msk.f32.gmra.mxu1 %vm1180_vm3, %v4342_v15  ;;  %3476 = vmatmul.mubr.msk.f32.gmra.mxu0 %vm1180_vm3, %v4204_v35 }
 0x15e   : > { %3412 = vmatprep.mubr.msk.f32.mxu1 %vm1180_vm3, %v4358_v17  ;;  %3478 = vmatprep.mubr.msk.f32.mxu0 %vm1180_vm3, %v4233_v59 }
 0x161   : > { %3413 = vmatmul.mubr.msk.f32.gmra.mxu1 %vm1180_vm3, %v4370_v9  ;;  %3479 = vmatmul.mubr.msk.f32.gmra.mxu0 %vm1180_vm3, %v4248_v39 }
 0x162   : > { %3415 = vmatprep.mubr.msk.f32.mxu1 %vm1180_vm3, %v4386_v61  ;;  %3481 = vmatprep.mubr.msk.f32.mxu0 %vm1180_vm3, %v4273_v48 }
 0x165   : > { %3416 = vmatmul.mubr.msk.f32.gmra.mxu1 %vm1180_vm3, %v4398_v24  ;;  %3482 = vmatmul.mubr.msk.f32.gmra.mxu0 %vm1180_vm3, %v4287_v55 }
 0x166   : > { %3418 = vmatprep.mubr.msk.f32.mxu1 %vm1180_vm3, %v4414_v19  ;;  %3484 = vmatprep.mubr.msk.f32.mxu0 %vm1180_vm3, %v4302_v0 }
 0x167   : > { %v3354_v46 = vpop.f32.mrf.mxu1 }
 0x168   : > { %v1654_v35 = vrot.slane %v3354_v46, 7 }
 0x169   : > { %v1511_v38 = vpop.f32.mrf.mxu1  ;;  %3419 = vmatmul.mubr.msk.f32.gmra.mxu1 %vm1180_vm3, %v4426_v28  ;;  %3485 = vmatmul.mubr.msk.f32.gmra.mxu0 %vm1180_vm3, %v4314_v6 }
 0x16a   : > { %v1638_v59 = vrot.slane %v1511_v38, 7  ;;  %3421 = vmatprep.mubr.msk.f32.mxu1 %vm1180_vm3, %v4442_v21  ;;  %3487 = vmatprep.mubr.msk.f32.mxu0 %vm1180_vm3, %v4330_v53 }
 0x16c   : > { %v1705_v39 = vsel %vm1680_vm0, %v1638_v59, %v1654_v35 }
 0x16d   : > { %1755 = vst.msk [vmem:[#allocation3 + $0xc8] sm:$0xff] %vm1729_vm5, %v1705_v39  ;;  %v3357_v48 = vpop.f32.mrf.mxu1  ;;  %3422 = vmatmul.mubr.msk.f32.gmra.mxu1 %vm1180_vm3, %v4454_v36  ;;  %3488 = vmatmul.mubr.msk.f32.gmra.mxu0 %vm1180_vm3, %v4342_v15 }
 0x16e   : > { %3424 = vmatprep.mubr.msk.f32.mxu1 %vm1180_vm3, %v4468_v41  ;;  %3490 = vmatprep.mubr.msk.f32.mxu0 %vm1180_vm3, %v4358_v17  ;;  %v1639_v17 = vrot.slane %v3357_v48, 7 }
 0x16f   : > { %v1521_v55 = vpop.f32.mrf.mxu1 }
 0x170   : > { %v1670_v0 = vrot.slane %v1521_v55, 7 }
 0x171   : > { %3425 = vmatmul.mubr.msk.f32.gmra.mxu1 %vm1180_vm3, %v4483_v16  ;;  %3491 = vmatmul.mubr.msk.f32.gmra.mxu0 %vm1180_vm3, %v4370_v9 }
 0x172   : > { %v1689_v6 = vsel %vm1680_vm0, %v1654_v35, %v1670_v0  ;;  %v1721_v53 = vsel %vm1680_vm0, %v1670_v0, %v1638_v59  ;;  %3427 = vmatprep.mubr.msk.f32.mxu1 %vm1180_vm3, %v4490_v18  ;;  %3493 = vmatprep.mubr.msk.f32.mxu0 %vm1180_vm3, %v4386_v61 }
 0x173   : > { %1754 = vst.msk [vmem:[#allocation3 + $0xc0] sm:$0xff] %vm1729_vm5, %v1721_v53  ;;  %1756 = vst.msk [vmem:[#allocation3 + $0xd0] sm:$0xff] %vm1729_vm5, %v1689_v6  ;;  %v3360_v15 = vpop.f32.mrf.mxu1 }
 0x174   : > { %v1671_v12 = vrot.slane %v3360_v15, 7 }
 0x175   : > { %v1531_v9 = vpop.f32.mrf.mxu1  ;;  %3428 = vmatmul.mubr.msk.f32.gmra.mxu1 %vm1180_vm3, %v4503_v37  ;;  %3494 = vmatmul.mubr.msk.f32.gmra.mxu0 %vm1180_vm3, %v4398_v24 }
 0x176   : > { %v1722_v27 = vsel %vm1680_vm0, %v1671_v12, %v1639_v17  ;;  %v1655_v29 = vrot.slane %v1531_v9, 7  ;;  %3430 = vmatprep.mubr.msk.f32.mxu1 %vm1180_vm3, %v4091_v50  ;;  %3496 = vmatprep.mubr.msk.f32.mxu0 %vm1180_vm3, %v4414_v19 }
 0x177   : > { %1757 = vst.msk [vmem:[#allocation3 + $0xd8] sm:$0xff] %vm1729_vm5, %v1722_v27 }
 0x178   : > { %v1690_v61 = vsel %vm1680_vm0, %v1655_v29, %v1671_v12  ;;  %v1706_v8 = vsel %vm1680_vm0, %v1639_v17, %v1655_v29 }
 0x179   : > { %1758 = vst.msk [vmem:[#allocation3 + $0xe0] sm:$0xff] %vm1729_vm5, %v1706_v8  ;;  %1759 = vst.msk [vmem:[#allocation3 + $0xe8] sm:$0xff] %vm1729_vm5, %v1690_v61  ;;  %v3318_v24 = vpop.f32.mrf.mxu0  ;;  %3431 = vmatmul.mubr.msk.f32.gmra.mxu1 %vm1180_vm3, %v4106_v58  ;;  %3497 = vmatmul.mubr.msk.f32.gmra.mxu0 %vm1180_vm3, %v4426_v28 }
 0x17a   : > { %3433 = vmatprep.mubr.msk.f32.mxu1 %vm1180_vm3, %v4111_v62  ;;  %3499 = vmatprep.mubr.msk.f32.mxu0 %vm1180_vm3, %v4442_v21  ;;  %v1646_v22 = vrot.slane %v3318_v24, 7 }
 0x17b   : > { %v1391_v19 = vpop.f32.mrf.mxu0 }
 0x17c   : > { %v1630_v43 = vrot.slane %v1391_v19, 7 }
 0x17d   : > { %3434 = vmatmul.mubr.msk.f32.gmra.mxu1 %vm1180_vm3, %v4128_v13  ;;  %3500 = vmatmul.mubr.msk.f32.gmra.mxu0 %vm1180_vm3, %v4454_v36 }
 0x17e   : > { %v1697_v60 = vsel %vm1680_vm0, %v1630_v43, %v1646_v22  ;;  %3436 = vmatprep.mubr.msk.f32.mxu1 %vm1180_vm3, %v4141_v49  ;;  %3502 = vmatprep.mubr.msk.f32.mxu0 %vm1180_vm3, %v4468_v41 }
 0x17f   : > { %1731 = vst.msk [vmem:[#allocation3 + $0x8] sm:$0xff] %vm1729_vm5, %v1697_v60 }
 0x181   : > { %v3321_v28 = vpop.f32.mrf.mxu0  ;;  %3437 = vmatmul.mubr.msk.f32.gmra.mxu1 %vm1180_vm3, %v4149_v23  ;;  %3503 = vmatmul.mubr.msk.f32.gmra.mxu0 %vm1180_vm3, %v4483_v16 }
 0x182   : > { %3439 = vmatprep.mubr.msk.f32.mxu1 %vm1180_vm3, %v4193_v54  ;;  %3505 = vmatprep.mubr.msk.f32.mxu0 %vm1180_vm3, %v4490_v18 }
 0x183   : > { %v1401_v21 = vpop.f32.mrf.mxu0 }
 0x184   : > { %v1662_v36 = vrot.slane %v1401_v21, 7 }
 0x185   : > { %v3363_v20 = vpop.f32.mrf.mxu1  ;;  %3440 = vmatmul.mubr.msk.f32.gmra.mxu1 %vm1180_vm3, %v4216_v34  ;;  %3506 = vmatmul.mubr.msk.f32.gmra.mxu0 %vm1180_vm3, %v4503_v37 }
 0x186   : > { %v1681_v41 = vsel %vm1680_vm0, %v1646_v22, %v1662_v36  ;;  %v1713_v44 = vsel %vm1680_vm0, %v1662_v36, %v1630_v43  ;;  %3442 = vmatprep.mubr.msk.f32.mxu1 %vm1180_vm3, %v4236_v5  ;;  %3508 = vmatprep.mubr.msk.f32.mxu0 %vm1180_vm3, %v4091_v50  ;;  %v1656_v14 = vrot.slane %v3363_v20, 7 }
 0x187   : > { %1730 = vst.msk [vmem:[#allocation3] sm:$0xff] %vm1729_vm5, %v1713_v44  ;;  %1732 = vst.msk [vmem:[#allocation3 + $0x10] sm:$0xff] %vm1729_vm5, %v1681_v41  ;;  %v1541_v31 = vpop.f32.mrf.mxu1 }
 0x188   : > { %v1640_v16 = vrot.slane %v1541_v31, 7 }
 0x189   : > { %3443 = vmatmul.mubr.msk.f32.gmra.mxu1 %vm1180_vm3, %v4258_v40  ;;  %3509 = vmatmul.mubr.msk.f32.gmra.mxu0 %vm1180_vm3, %v4106_v58  ;;  %v1631_v58 = vrot.slane %v3321_v28, 7 }
 0x18a   : > { %v1707_v26 = vsel %vm1680_vm0, %v1640_v16, %v1656_v14  ;;  %3445 = vmatprep.mubr.msk.f32.mxu1 %vm1180_vm3, %v4276_v51  ;;  %3511 = vmatprep.mubr.msk.f32.mxu0 %vm1180_vm3, %v4111_v62 }
 0x18b   : > { %1761 = vst.msk [vmem:[#allocation3 + $0xf8] sm:$0xff] %vm1729_vm5, %v1707_v26 }
 0x18d   : > { %3446 = vmatmul.mubr.msk.f32.gmra.mxu1 %vm1180_vm3, %v4294_v10  ;;  %3512 = vmatmul.mubr.msk.f32.gmra.mxu0 %vm1180_vm3, %v4128_v13 }
 0x18e   : > { %3448 = vmatprep.mubr.msk.f32.mxu1 %vm1180_vm3, %v4305_v3  ;;  %3514 = vmatprep.mubr.msk.f32.mxu0 %vm1180_vm3, %v4141_v49 }
 0x191   : > { %v3324_v50 = vpop.f32.mrf.mxu0  ;;  %3449 = vmatmul.mubr.msk.f32.gmra.mxu1 %vm1180_vm3, %v4321_v47  ;;  %3515 = vmatmul.mubr.msk.f32.gmra.mxu0 %vm1180_vm3, %v4149_v23 }
 0x192   : > { %v1663_v62 = vrot.slane %v3324_v50, 7  ;;  %3451 = vmatprep.mubr.msk.f32.mxu1 %vm1180_vm3, %v4333_v2  ;;  %3517 = vmatprep.mubr.msk.f32.mxu0 %vm1180_vm3, %v4193_v54 }
 0x193   : > { %v1411_v13 = vpop.f32.mrf.mxu0 }
 0x194   : > { %v1714_v18 = vsel %vm1680_vm0, %v1663_v62, %v1631_v58  ;;  %v1647_v49 = vrot.slane %v1411_v13, 7 }
 0x195   : > { %1733 = vst.msk [vmem:[#allocation3 + $0x18] sm:$0xff] %vm1729_vm5, %v1714_v18  ;;  %v3366_v7 = vpop.f32.mrf.mxu1  ;;  %3452 = vmatmul.mubr.msk.f32.gmra.mxu1 %vm1180_vm3, %v4349_v56  ;;  %3518 = vmatmul.mubr.msk.f32.gmra.mxu0 %vm1180_vm3, %v4216_v34 }
 0x196   : > { %v1682_v23 = vsel %vm1680_vm0, %v1647_v49, %v1663_v62  ;;  %v1698_v54 = vsel %vm1680_vm0, %v1631_v58, %v1647_v49  ;;  %3454 = vmatprep.mubr.msk.f32.mxu1 %vm1180_vm3, %v4361_v33  ;;  %3520 = vmatprep.mubr.msk.f32.mxu0 %vm1180_vm3, %v4236_v5 }
 0x197   : > { %1734 = vst.msk [vmem:[#allocation3 + $0x20] sm:$0xff] %vm1729_vm5, %v1698_v54  ;;  %1735 = vst.msk [vmem:[#allocation3 + $0x28] sm:$0xff] %vm1729_vm5, %v1682_v23  ;;  %v1551_v1 = vpop.f32.mrf.mxu1 }
 0x198   : > { %v1672_v32 = vrot.slane %v1551_v1, 7 }
 0x199   : > { %3455 = vmatmul.mubr.msk.f32.gmra.mxu1 %vm1180_vm3, %v4377_v45  ;;  %3521 = vmatmul.mubr.msk.f32.gmra.mxu0 %vm1180_vm3, %v4258_v40 }
 0x19a   : > { %v1691_v34 = vsel %vm1680_vm0, %v1656_v14, %v1672_v32  ;;  %v1723_v37 = vsel %vm1680_vm0, %v1672_v32, %v1640_v16  ;;  %3457 = vmatprep.mubr.msk.f32.mxu1 %vm1180_vm3, %v4389_v57  ;;  %3523 = vmatprep.mubr.msk.f32.mxu0 %vm1180_vm3, %v4276_v51 }
 0x19b   : > { %1760 = vst.msk [vmem:[#allocation3 + $0xf0] sm:$0xff] %vm1729_vm5, %v1723_v37  ;;  %1762 = vst.msk [vmem:[#allocation3 + $0x100] sm:$0xff] %vm1729_vm5, %v1691_v34 }
 0x19d   : > { %3458 = vmatmul.mubr.msk.f32.gmra.mxu1 %vm1180_vm3, %v4405_v11  ;;  %3524 = vmatmul.mubr.msk.f32.gmra.mxu0 %vm1180_vm3, %v4294_v10 }
 0x19e   : > { %3460 = vmatprep.mubr.msk.f32.mxu1 %vm1180_vm3, %v4417_v52  ;;  %3526 = vmatprep.mubr.msk.f32.mxu0 %vm1180_vm3, %v4305_v3  ;;  %v1641_v3 = vrot.slane %v3366_v7, 7 }
 0x1a1   : > { %v3327_v5 = vpop.f32.mrf.mxu0  ;;  %3461 = vmatmul.mubr.msk.f32.gmra.mxu1 %vm1180_vm3, %v4433_v4  ;;  %3527 = vmatmul.mubr.msk.f32.gmra.mxu0 %vm1180_vm3, %v4321_v47 }
 0x1a2   : > { %3463 = vmatprep.mubr.msk.f32.mxu1 %vm1180_vm3, %v4445_v42  ;;  %3529 = vmatprep.mubr.msk.f32.mxu0 %vm1180_vm3, %v4333_v2  ;;  %v1648_v51 = vrot.slane %v3327_v5, 7 }
 0x1a3   : > { %v1421_v40 = vpop.f32.mrf.mxu0 }
 0x1a4   : > { %v1632_v10 = vrot.slane %v1421_v40, 7 }
 0x1a5   : > { %v3369_v63 = vpop.f32.mrf.mxu1  ;;  %3464 = vmatmul.mubr.msk.f32.gmra.mxu1 %vm1180_vm3, %v4463_v25  ;;  %3530 = vmatmul.mubr.msk.f32.gmra.mxu0 %vm1180_vm3, %v4349_v56 }
 0x1a6   : > { %v1699_v47 = vsel %vm1680_vm0, %v1632_v10, %v1648_v51  ;;  %v1673_v46 = vrot.slane %v3369_v63, 7  ;;  %3532 = vmatprep.mubr.msk.f32.mxu0 %vm1180_vm3, %v4361_v33 }
 0x1a7   : > { %1737 = vst.msk [vmem:[#allocation3 + $0x38] sm:$0xff] %vm1729_vm5, %v1699_v47  ;;  %v1561_v2 = vpop.f32.mrf.mxu1 }
 0x1a8   : > { %v1724_v38 = vsel %vm1680_vm0, %v1673_v46, %v1641_v3  ;;  %v1657_v35 = vrot.slane %v1561_v2, 7 }
 0x1a9   : > { %1763 = vst.msk [vmem:[#allocation3 + $0x108] sm:$0xff] %vm1729_vm5, %v1724_v38  ;;  %3533 = vmatmul.mubr.msk.f32.gmra.mxu0 %vm1180_vm3, %v4377_v45 }
 0x1aa   : > { %v1692_v56 = vsel %vm1680_vm0, %v1657_v35, %v1673_v46  ;;  %v1708_v59 = vsel %vm1680_vm0, %v1641_v3, %v1657_v35  ;;  %3535 = vmatprep.mubr.msk.f32.mxu0 %vm1180_vm3, %v4389_v57 }
 0x1ab   : > { %1764 = vst.msk [vmem:[#allocation3 + $0x110] sm:$0xff] %vm1729_vm5, %v1708_v59  ;;  %1765 = vst.msk [vmem:[#allocation3 + $0x118] sm:$0xff] %vm1729_vm5, %v1692_v56 }
 0x1ad   : > { %3536 = vmatmul.mubr.msk.f32.gmra.mxu0 %vm1180_vm3, %v4405_v11 }
 0x1ae   : > { %3538 = vmatprep.mubr.msk.f32.mxu0 %vm1180_vm3, %v4417_v52 }
 0x1b1   : > { %v3330_v33 = vpop.f32.mrf.mxu0  ;;  %3539 = vmatmul.mubr.msk.f32.gmra.mxu0 %vm1180_vm3, %v4433_v4 }
 0x1b2   : > { %3541 = vmatprep.mubr.msk.f32.mxu0 %vm1180_vm3, %v4445_v42 }
 0x1b3   : > { %v1431_v45 = vpop.f32.mrf.mxu0 }
 0x1b4   : > { %v1664_v39 = vrot.slane %v1431_v45, 7 }
 0x1b5   : > { %v3372_v57 = vpop.f32.mrf.mxu1  ;;  %3542 = vmatmul.mubr.msk.f32.gmra.mxu0 %vm1180_vm3, %v4463_v25  ;;  %v1633_v25 = vrot.slane %v3330_v33, 7 }
 0x1b6   : > { %v1683_v48 = vsel %vm1680_vm0, %v1648_v51, %v1664_v39  ;;  %v1715_v11 = vsel %vm1680_vm0, %v1664_v39, %v1632_v10  ;;  %v1658_v4 = vrot.slane %v3372_v57, 7 }
 0x1b7   : > { %1736 = vst.msk [vmem:[#allocation3 + $0x30] sm:$0xff] %vm1729_vm5, %v1715_v11  ;;  %1738 = vst.msk [vmem:[#allocation3 + $0x40] sm:$0xff] %vm1729_vm5, %v1683_v48  ;;  %v1571_v52 = vpop.f32.mrf.mxu1 }
 0x1b8   : > { %v1642_v55 = vrot.slane %v1571_v52, 7 }
 0x1ba   : > { %v1709_v42 = vsel %vm1680_vm0, %v1642_v55, %v1658_v4 }
 0x1bb   : > { %1767 = vst.msk [vmem:[#allocation3 + $0x128] sm:$0xff] %vm1729_vm5, %v1709_v42 }
 0x1c1   : > { %v3333_v0 = vpop.f32.mrf.mxu0 }
 0x1c2   : > { %v1665_v6 = vrot.slane %v3333_v0, 7 }
 0x1c3   : > { %v1441_v53 = vpop.f32.mrf.mxu0 }
 0x1c4   : > { %v1716_v15 = vsel %vm1680_vm0, %v1665_v6, %v1633_v25  ;;  %v1649_v17 = vrot.slane %v1441_v53, 7  ;;  %v2087_v53 = vld [vmem:[#allocation3] sm:$0xff] }
 0x1c5   : > { %1739 = vst.msk [vmem:[#allocation3 + $0x48] sm:$0xff] %vm1729_vm5, %v1716_v15  ;;  %v3375_v12 = vpop.f32.mrf.mxu1 }
 0x1c6   : > { %v1684_v9 = vsel %vm1680_vm0, %v1649_v17, %v1665_v6  ;;  %v1700_v27 = vsel %vm1680_vm0, %v1633_v25, %v1649_v17  ;;  %v1643_v21 = vrot.slane %v3375_v12, 7 }
 0x1c7   : > { %1740 = vst.msk [vmem:[#allocation3 + $0x50] sm:$0xff] %vm1729_vm5, %v1700_v27  ;;  %1741 = vst.msk [vmem:[#allocation3 + $0x58] sm:$0xff] %vm1729_vm5, %v1684_v9  ;;  %v1581_v29 = vpop.f32.mrf.mxu1  ;;  %v2090_v9 = vld [vmem:[#allocation3 + $0x18] sm:$0xff] }
 0x1c8   : > { %v1674_v61 = vrot.slane %v1581_v29, 7 }
 0x1ca   : > { %v1693_v8 = vsel %vm1680_vm0, %v1658_v4, %v1674_v61  ;;  %v1725_v24 = vsel %vm1680_vm0, %v1674_v61, %v1642_v55  ;;  %v2088_v55 = vld [vmem:[#allocation3 + $0x8] sm:$0xff] }
 0x1cb   : > { %1766 = vst.msk [vmem:[#allocation3 + $0x120] sm:$0xff] %vm1729_vm5, %v1725_v24  ;;  %1768 = vst.msk [vmem:[#allocation3 + $0x130] sm:$0xff] %vm1729_vm5, %v1693_v8  ;;  %v2089_v8 = vld [vmem:[#allocation3 + $0x10] sm:$0xff] }
 0x1d1   : > { %v3336_v19 = vpop.f32.mrf.mxu0 }
 0x1d2   : > { %v1650_v43 = vrot.slane %v3336_v19, 7 }
 0x1d3   : > { %v1451_v22 = vpop.f32.mrf.mxu0 }
 0x1d4   : > { %v1634_v60 = vrot.slane %v1451_v22, 7 }
 0x1d5   : > { %v3378_v28 = vpop.f32.mrf.mxu1 }
 0x1d6   : > { %v1701_v36 = vsel %vm1680_vm0, %v1634_v60, %v1650_v43  ;;  %v1675_v20 = vrot.slane %v3378_v28, 7 }
 0x1d7   : > { %1743 = vst.msk [vmem:[#allocation3 + $0x68] sm:$0xff] %vm1729_vm5, %v1701_v36  ;;  %v1591_v41 = vpop.f32.mrf.mxu1 }
 0x1d8   : > { %v1726_v44 = vsel %vm1680_vm0, %v1675_v20, %v1643_v21  ;;  %v1659_v31 = vrot.slane %v1591_v41, 7 }
 0x1d9   : > { %1769 = vst.msk [vmem:[#allocation3 + $0x138] sm:$0xff] %vm1729_vm5, %v1726_v44 }
 0x1da   : > { %v1694_v14 = vsel %vm1680_vm0, %v1659_v31, %v1675_v20  ;;  %v1710_v16 = vsel %vm1680_vm0, %v1643_v21, %v1659_v31  ;;  %v2091_v20 = vld [vmem:[#allocation3 + $0x20] sm:$0xff] }
 0x1db   : > { %1770 = vst.msk [vmem:[#allocation3 + $0x140] sm:$0xff] %vm1729_vm5, %v1710_v16  ;;  %1771 = vst.msk [vmem:[#allocation3 + $0x148] sm:$0xff] %vm1729_vm5, %v1694_v14  ;;  %v2094_v14 = vld [vmem:[#allocation3 + $0x38] sm:$0xff] }
 0x1e1   : > { %v3339_v26 = vpop.f32.mrf.mxu0 }
 0x1e2   : > { %v1635_v32 = vrot.slane %v3339_v26, 7 }
 0x1e3   : > { %v1461_v50 = vpop.f32.mrf.mxu0 }
 0x1e4   : > { %v1666_v58 = vrot.slane %v1461_v50, 7 }
 0x1e5   : > { %v3381_v62 = vpop.f32.mrf.mxu1 }
 0x1e6   : > { %v1685_v13 = vsel %vm1680_vm0, %v1650_v43, %v1666_v58  ;;  %v1717_v18 = vsel %vm1680_vm0, %v1666_v58, %v1634_v60  ;;  %v1660_v7 = vrot.slane %v3381_v62, 7  ;;  %v2092_v43 = vld [vmem:[#allocation3 + $0x28] sm:$0xff] }
 0x1e7   : > { %1742 = vst.msk [vmem:[#allocation3 + $0x60] sm:$0xff] %vm1729_vm5, %v1717_v18  ;;  %1744 = vst.msk [vmem:[#allocation3 + $0x70] sm:$0xff] %vm1729_vm5, %v1685_v13  ;;  %v1601_v49 = vpop.f32.mrf.mxu1  ;;  %v2093_v13 = vld [vmem:[#allocation3 + $0x30] sm:$0xff] }
 0x1e8   : > { %v1644_v23 = vrot.slane %v1601_v49, 7 }
 0x1ea   : > { %v1711_v54 = vsel %vm1680_vm0, %v1644_v23, %v1660_v7 }
 0x1eb   : > { %1773 = vst.msk [vmem:[#allocation3 + $0x158] sm:$0xff] %vm1729_vm5, %v1711_v54  ;;  %v2096_v54 = vld [vmem:[#allocation3 + $0x48] sm:$0xff] }
 0x1f1   : > { %v3342_v1 = vpop.f32.mrf.mxu0 }
 0x1f2   : > { %v1667_v34 = vrot.slane %v3342_v1, 7 }
 0x1f3   : > { %v1471_v37 = vpop.f32.mrf.mxu0 }
 0x1f4   : > { %v1718_v5 = vsel %vm1680_vm0, %v1667_v34, %v1635_v32  ;;  %v1651_v40 = vrot.slane %v1471_v37, 7 }
 0x1f5   : > { %1745 = vst.msk [vmem:[#allocation3 + $0x78] sm:$0xff] %vm1729_vm5, %v1718_v5  ;;  %v3384_v51 = vpop.f32.mrf.mxu1 }
 0x1f6   : > { %v1686_v10 = vsel %vm1680_vm0, %v1651_v40, %v1667_v34  ;;  %v1702_v63 = vsel %vm1680_vm0, %v1635_v32, %v1651_v40  ;;  %v1645_v45 = vrot.slane %v3384_v51, 7  ;;  %v2095_v40 = vld [vmem:[#allocation3 + $0x40] sm:$0xff] }
 0x1f7   : > { %1746 = vst.msk [vmem:[#allocation3 + $0x80] sm:$0xff] %vm1729_vm5, %v1702_v63  ;;  %1747 = vst.msk [vmem:[#allocation3 + $0x88] sm:$0xff] %vm1729_vm5, %v1686_v10  ;;  %v1611_v3 = vpop.f32.mrf.mxu1 }
 0x1f8   : > { %v1676_v47 = vrot.slane %v1611_v3, 7 }
 0x1fa   : > { %v1695_v46 = vsel %vm1680_vm0, %v1660_v7, %v1676_v47  ;;  %v1727_v2 = vsel %vm1680_vm0, %v1676_v47, %v1644_v23 }
 0x1fb   : > { %1772 = vst.msk [vmem:[#allocation3 + $0x150] sm:$0xff] %vm1729_vm5, %v1727_v2  ;;  %1774 = vst.msk [vmem:[#allocation3 + $0x160] sm:$0xff] %vm1729_vm5, %v1695_v46  ;;  %v2098_v46 = vld [vmem:[#allocation3 + $0x58] sm:$0xff] }
 0x201   : > { %v3345_v38 = vpop.f32.mrf.mxu0 }
 0x202   : > { %v1652_v56 = vrot.slane %v3345_v38, 7 }
 0x203   : > { %v1481_v35 = vpop.f32.mrf.mxu0 }
 0x204   : > { %v1636_v59 = vrot.slane %v1481_v35, 7 }
 0x205   : > { %v3387_v33 = vpop.f32.mrf.mxu1 }
 0x206   : > { %v1703_v39 = vsel %vm1680_vm0, %v1636_v59, %v1652_v56  ;;  %v1677_v57 = vrot.slane %v3387_v33, 7 }
 0x207   : > { %1749 = vst.msk [vmem:[#allocation3 + $0x98] sm:$0xff] %vm1729_vm5, %v1703_v39  ;;  %v1621_v48 = vpop.f32.mrf.mxu1 }
 0x208   : > { %v1728_v11 = vsel %vm1680_vm0, %v1677_v57, %v1645_v45  ;;  %v1661_v52 = vrot.slane %v1621_v48, 7 }
 0x209   : > { %1775 = vst.msk [vmem:[#allocation3 + $0x168] sm:$0xff] %vm1729_vm5, %v1728_v11  ;;  %v3396_v4 = vpop.f32.mrf.mxu1 }
 0x20a   : > { %v1696_v42 = vsel %vm1680_vm0, %v1661_v52, %v1677_v57  ;;  %v1712_v0 = vsel %vm1680_vm0, %v1645_v45, %v1661_v52  ;;  %v2136_v25 = vadd.f32 %v3396_v4, %v2088_v55  ;;  %v2097_v45 = vld [vmem:[#allocation3 + $0x50] sm:$0xff]  ;;  %v2100_v4 = vld [vmem:[#allocation3 + $0x68] sm:$0xff] }
 0x20b   : > { %1776 = vst.msk [vmem:[#allocation3 + $0x170] sm:$0xff] %vm1729_vm5, %v1712_v0  ;;  %1777 = vst.msk [vmem:[#allocation3 + $0x178] sm:$0xff] %vm1729_vm5, %v1696_v42  ;;  %v1848_v6 = vpop.f32.mrf.mxu1 }
 0x20c   : > { %2184 = vst.msk [vmem:[#allocation3 + $0x8] sm:$0xff] %vm1729_vm5, %v2136_v25  ;;  %v2135_v15 = vadd.f32 %v2087_v53, %v1848_v6 }
 0x20d   : > { %v3348_v17 = vpop.f32.mrf.mxu0  ;;  %v3399_v12 = vpop.f32.mrf.mxu1 }
 0x20e   : > { %2183 = vst.msk [vmem:[#allocation3] sm:$0xff] %vm1729_vm5, %v2135_v15  ;;  %v2138_v27 = vadd.f32 %v3399_v12, %v2090_v9  ;;  %v1637_v16 = vrot.slane %v3348_v17, 7 }
 0x20f   : > { %v1491_v29 = vpop.f32.mrf.mxu0  ;;  %v1858_v61 = vpop.f32.mrf.mxu1 }
 0x210   : > { %2186 = vst.msk [vmem:[#allocation3 + $0x18] sm:$0xff] %vm1729_vm5, %v2138_v27  ;;  %v1668_v24 = vrot.slane %v1491_v29, 7  ;;  %v2137_v19 = vadd.f32 %v2089_v8, %v1858_v61  ;;  %v2099_v27 = vld [vmem:[#allocation3 + $0x60] sm:$0xff] }
 0x211   : > { %v3402_v22 = vpop.f32.mrf.mxu1 }
 0x212   : > { %v1687_v60 = vsel %vm1680_vm0, %v1652_v56, %v1668_v24  ;;  %v1719_v28 = vsel %vm1680_vm0, %v1668_v24, %v1636_v59  ;;  %2185 = vst.msk [vmem:[#allocation3 + $0x10] sm:$0xff] %vm1729_vm5, %v2137_v19  ;;  %v2140_v21 = vadd.f32 %v3402_v22, %v2092_v43 }
 0x213   : > { %1748 = vst.msk [vmem:[#allocation3 + $0x90] sm:$0xff] %vm1729_vm5, %v1719_v28  ;;  %1750 = vst.msk [vmem:[#allocation3 + $0xa0] sm:$0xff] %vm1729_vm5, %v1687_v60  ;;  %v1868_v36 = vpop.f32.mrf.mxu1  ;;  %v2638_v25 = vld [vmem:[#allocation3 + $0x8] sm:$0xff]  ;;  %v2102_v60 = vld [vmem:[#allocation3 + $0x78] sm:$0xff] }
 0x214   : > { %2188 = vst.msk [vmem:[#allocation3 + $0x28] sm:$0xff] %vm1729_vm5, %v2140_v21  ;;  %v2139_v41 = vadd.f32 %v2091_v20, %v1868_v36  ;;  %v2813_v21 = vld [vmem:[%s4856_s22] sm:$0xff] }
 0x215   : > { %v3351_v44 = vpop.f32.mrf.mxu0  ;;  %v3405_v31 = vpop.f32.mrf.mxu1  ;;  %v2637_v35 = vld [vmem:[#allocation3] sm:$0xff] }
 0x216   : > { %2187 = vst.msk [vmem:[#allocation3 + $0x20] sm:$0xff] %vm1729_vm5, %v2139_v41  ;;  %v1669_v26 = vrot.slane %v3351_v44, 7  ;;  %v2142_v50 = vadd.f32 %v3405_v31, %v2094_v14 }
 0x217   : > { %v1501_v58 = vpop.f32.mrf.mxu0  ;;  %v1878_v62 = vpop.f32.mrf.mxu1  ;;  %v2640_v41 = vld [vmem:[#allocation3 + $0x18] sm:$0xff] }
 0x218   : > { %v1720_v18 = vsel %vm1680_vm0, %v1669_v26, %v1637_v16  ;;  %2190 = vst.msk [vmem:[#allocation3 + $0x38] sm:$0xff] %vm1729_vm5, %v2142_v50  ;;  %v1653_v49 = vrot.slane %v1501_v58, 7  ;;  %v2141_v7 = vadd.f32 %v2093_v13, %v1878_v62  ;;  %v2101_v50 = vld [vmem:[#allocation3 + $0x70] sm:$0xff] }
 0x219   : > { %1751 = vst.msk [vmem:[#allocation3 + $0xa8] sm:$0xff] %vm1729_vm5, %v1720_v18  ;;  %v3408_v23 = vpop.f32.mrf.mxu1  ;;  %v3474_v1 = vpop.f32.mrf.mxu0  ;;  %v2639_v6 = vld [vmem:[#allocation3 + $0x10] sm:$0xff] }
 0x21a   : > { %v1688_v32 = vsel %vm1680_vm0, %v1653_v49, %v1669_v26  ;;  %v1704_v34 = vsel %vm1680_vm0, %v1637_v16, %v1653_v49  ;;  %2189 = vst.msk [vmem:[#allocation3 + $0x30] sm:$0xff] %vm1729_vm5, %v2141_v7  ;;  %v2144_v37 = vadd.f32 %v3408_v23, %v2096_v54  ;;  %v2556_v10 = vrot.slane %v3474_v1, 1  ;;  %v2104_v54 = vld [vmem:[#allocation3 + $0x88] sm:$0xff] }
 0x21b   : > { %1752 = vst.msk [vmem:[#allocation3 + $0xb0] sm:$0xff] %vm1729_vm5, %v1704_v34  ;;  %1753 = vst.msk [vmem:[#allocation3 + $0xb8] sm:$0xff] %vm1729_vm5, %v1688_v32  ;;  %v1888_v5 = vpop.f32.mrf.mxu1  ;;  %v2301_v51 = vpop.f32.mrf.mxu0  ;;  %v2642_v8 = vld [vmem:[#allocation3 + $0x28] sm:$0xff]  ;;  %v2814_v32 = vld [vmem:[%s4856_s22 + $0x8] sm:$0xff] }
 0x21c   : > { %2192 = vst.msk [vmem:[#allocation3 + $0x48] sm:$0xff] %vm1729_vm5, %v2144_v37  ;;  %v2143_v63 = vadd.f32 %v2095_v40, %v1888_v5  ;;  %v2540_v3 = vrot.slane %v2301_v51, 1 }
 0x21d   : > { %v3411_v47 = vpop.f32.mrf.mxu1  ;;  %v3477_v2 = vpop.f32.mrf.mxu0  ;;  %v2641_v44 = vld [vmem:[#allocation3 + $0x20] sm:$0xff] }
 0x21e   : > { %2191 = vst.msk [vmem:[#allocation3 + $0x40] sm:$0xff] %vm1729_vm5, %v2143_v63  ;;  %v2605_v38 = vsel %vm2588_vm6, %v2540_v3, %v2556_v10  ;;  %v2146_v56 = vadd.f32 %v3411_v47, %v2098_v46  ;;  %v2541_v11 = vrot.slane %v3477_v2, 1 }
 0x21f   : > { %v2685_v59 = vadd.f32 %v2637_v35, %v2605_v38  ;;  %v1898_v33 = vpop.f32.mrf.mxu1  ;;  %v2311_v39 = vpop.f32.mrf.mxu0  ;;  %v2815_v38 = vld [vmem:[%s4856_s22 + $0x10] sm:$0xff] }
 0x220   : > { %2194 = vst.msk [vmem:[#allocation3 + $0x58] sm:$0xff] %vm1729_vm5, %v2146_v56  ;;  %v2145_v57 = vadd.f32 %v2097_v45, %v1898_v33  ;;  %v2572_v48 = vrot.slane %v2311_v39, 1  ;;  %v2816_v45 = vld [vmem:[%s4856_s22 + $0x18] sm:$0xff] }
 0x221   : > { %2733 = vst.msk [vmem:[#allocation3] sm:$0xff] %vm1729_vm5, %v2685_v59  ;;  %v3414_v52 = vpop.f32.mrf.mxu1  ;;  %v3480_v55 = vpop.f32.mrf.mxu0  ;;  %v2643_v37 = vld [vmem:[#allocation3 + $0x30] sm:$0xff]  ;;  %v2106_v59 = vld [vmem:[#allocation3 + $0x98] sm:$0xff] }
 0x222   : > { %2193 = vst.msk [vmem:[#allocation3 + $0x50] sm:$0xff] %vm1729_vm5, %v2145_v57  ;;  %v2589_v42 = vsel %vm2588_vm6, %v2556_v10, %v2572_v48  ;;  %v2621_v0 = vsel %vm2588_vm6, %v2572_v48, %v2540_v3  ;;  %v2148_v53 = vadd.f32 %v3414_v52, %v2100_v4  ;;  %v2573_v15 = vrot.slane %v3480_v55, 1  ;;  %v2103_v10 = vld [vmem:[#allocation3 + $0x80] sm:$0xff]  ;;  %v2644_v48 = vld [vmem:[#allocation3 + $0x38] sm:$0xff] }
 0x223   : > { %v2686_v17 = vadd.f32 %v2638_v25, %v2589_v42  ;;  %v2687_v12 = vadd.f32 %v2639_v6, %v2621_v0  ;;  %v1908_v9 = vpop.f32.mrf.mxu1  ;;  %v2321_v29 = vpop.f32.mrf.mxu0  ;;  %v2105_v25 = vld [vmem:[#allocation3 + $0x90] sm:$0xff] }
 0x224   : > { %2196 = vst.msk [vmem:[#allocation3 + $0x68] sm:$0xff] %vm1729_vm5, %v2148_v53  ;;  %v2622_v61 = vsel %vm2588_vm6, %v2573_v15, %v2541_v11  ;;  %v2147_v24 = vadd.f32 %v2099_v27, %v1908_v9  ;;  %v2557_v19 = vrot.slane %v2321_v29, 1 }
 0x225   : > { %2734 = vst.msk [vmem:[#allocation3 + $0x8] sm:$0xff] %vm1729_vm5, %v2686_v17  ;;  %2735 = vst.msk [vmem:[#allocation3 + $0x10] sm:$0xff] %vm1729_vm5, %v2687_v12  ;;  %v2690_v22 = vadd.f32 %v2642_v8, %v2622_v61  ;;  %v3417_v43 = vpop.f32.mrf.mxu1  ;;  %v3483_v28 = vpop.f32.mrf.mxu0 }
 0x226   : > { %2195 = vst.msk [vmem:[#allocation3 + $0x60] sm:$0xff] %vm1729_vm5, %v2147_v24  ;;  %v2590_v36 = vsel %vm2588_vm6, %v2557_v19, %v2573_v15  ;;  %v2606_v20 = vsel %vm2588_vm6, %v2541_v11, %v2557_v19  ;;  %v2150_v31 = vadd.f32 %v3417_v43, %v2102_v60  ;;  %v2558_v13 = vrot.slane %v3483_v28, 1  ;;  %v2645_v11 = vld [vmem:[#allocation3 + $0x40] sm:$0xff]  ;;  %v2108_v19 = vld [vmem:[#allocation3 + $0xa8] sm:$0xff]  ;;  %v2817_v43 = vld [vmem:[%s4856_s22 + $0x20] sm:$0xff] }
 0x227   : > { %2738 = vst.msk [vmem:[#allocation3 + $0x28] sm:$0xff] %vm1729_vm5, %v2690_v22  ;;  %v2688_v14 = vadd.f32 %v2640_v41, %v2606_v20  ;;  %v2689_v16 = vadd.f32 %v2641_v44, %v2590_v36  ;;  %v1918_v26 = vpop.f32.mrf.mxu1  ;;  %v2331_v58 = vpop.f32.mrf.mxu0  ;;  %v2648_v12 = vld [vmem:[#allocation3 + $0x58] sm:$0xff] }
 0x228   : > { %v2781_v62 = vld [vmem:[#allocation3] sm:$0xff]  ;;  %2198 = vst.msk [vmem:[#allocation3 + $0x78] sm:$0xff] %vm1729_vm5, %v2150_v31  ;;  %v2149_v18 = vadd.f32 %v2101_v50, %v1918_v26  ;;  %v2542_v49 = vrot.slane %v2331_v58, 1 }
 0x229   : > { %v2845_v7 = vmul.f32 %v2813_v21, %v2781_v62  ;;  %2736 = vst.msk [vmem:[#allocation3 + $0x18] sm:$0xff] %vm1729_vm5, %v2688_v14  ;;  %2737 = vst.msk [vmem:[#allocation3 + $0x20] sm:$0xff] %vm1729_vm5, %v2689_v16  ;;  %v3420_v23 = vpop.f32.mrf.mxu1  ;;  %v3486_v1 = vpop.f32.mrf.mxu0  ;;  %v2646_v21 = vld [vmem:[#allocation3 + $0x48] sm:$0xff]  ;;  %v2647_v36 = vld [vmem:[#allocation3 + $0x50] sm:$0xff] }
 0x22a   : > { %2197 = vst.msk [vmem:[#allocation3 + $0x70] sm:$0xff] %vm1729_vm5, %v2149_v18  ;;  %v2607_v34 = vsel %vm2588_vm6, %v2542_v49, %v2558_v13  ;;  %v2152_v5 = vadd.f32 %v3420_v23, %v2104_v54  ;;  %v2543_v35 = vrot.slane %v3486_v1, 1  ;;  %v2107_v14 = vld [vmem:[#allocation3 + $0xa0] sm:$0xff]  ;;  %v2818_v23 = vld [vmem:[%s4856_s22 + $0x28] sm:$0xff] }
 0x22b   : > { %2877 = vst.msk [vmem:[%s4874_s25] sm:$0xff] %vm1729_vm5, %v2845_v7  ;;  %v2691_v40 = vadd.f32 %v2643_v37, %v2607_v34  ;;  %v1928_v51 = vpop.f32.mrf.mxu1  ;;  %v2341_v63 = vpop.f32.mrf.mxu0 }
 0x22c   : > { %v2782_v3 = vld [vmem:[#allocation3 + $0x8] sm:$0xff]  ;;  %2200 = vst.msk [vmem:[#allocation3 + $0x88] sm:$0xff] %vm1729_vm5, %v2152_v5  ;;  %v2151_v47 = vadd.f32 %v2103_v10, %v1928_v51  ;;  %v2574_v46 = vrot.slane %v2341_v63, 1  ;;  %v2109_v5 = vld [vmem:[#allocation3 + $0xb0] sm:$0xff] }
 0x22d   : > { %v2846_v2 = vmul.f32 %v2814_v32, %v2782_v3  ;;  %2739 = vst.msk [vmem:[#allocation3 + $0x30] sm:$0xff] %vm1729_vm5, %v2691_v40  ;;  %v3423_v56 = vpop.f32.mrf.mxu1  ;;  %v3489_v33 = vpop.f32.mrf.mxu0  ;;  %v2649_v1 = vld [vmem:[#allocation3 + $0x60] sm:$0xff] }
 0x22e   : > { %2199 = vst.msk [vmem:[#allocation3 + $0x80] sm:$0xff] %vm1729_vm5, %v2151_v47  ;;  %v2591_v39 = vsel %vm2588_vm6, %v2558_v13, %v2574_v46  ;;  %v2623_v57 = vsel %vm2588_vm6, %v2574_v46, %v2542_v49  ;;  %v2154_v52 = vadd.f32 %v3423_v56, %v2106_v59  ;;  %v2575_v4 = vrot.slane %v3489_v33, 1  ;;  %v2110_v49 = vld [vmem:[#allocation3 + $0xb8] sm:$0xff]  ;;  %v2819_v47 = vld [vmem:[%s4856_s22 + $0x30] sm:$0xff]  ;;  %v2820_v56 = vld [vmem:[%s4856_s22 + $0x38] sm:$0xff] }
 0x22f   : > { %2878 = vst.msk [vmem:[%s4874_s25 + $0x8] sm:$0xff] %vm1729_vm5, %v2846_v2  ;;  %v2692_v55 = vadd.f32 %v2644_v48, %v2591_v39  ;;  %v2693_v42 = vadd.f32 %v2645_v11, %v2623_v57  ;;  %v1938_v0 = vpop.f32.mrf.mxu1  ;;  %v2351_v6 = vpop.f32.mrf.mxu0 }
 0x230   : > { %v2783_v53 = vld [vmem:[#allocation3 + $0x18] sm:$0xff]  ;;  %v2784_v15 = vld [vmem:[#allocation3 + $0x20] sm:$0xff]  ;;  %2202 = vst.msk [vmem:[#allocation3 + $0x98] sm:$0xff] %vm1729_vm5, %v2154_v52  ;;  %v2624_v17 = vsel %vm2588_vm6, %v2575_v4, %v2543_v35  ;;  %v2153_v9 = vadd.f32 %v2105_v25, %v1938_v0  ;;  %v2559_v27 = vrot.slane %v2351_v6, 1 }
 0x231   : > { %v2847_v29 = vmul.f32 %v2815_v38, %v2783_v53  ;;  %v2848_v61 = vmul.f32 %v2816_v45, %v2784_v15  ;;  %2740 = vst.msk [vmem:[#allocation3 + $0x38] sm:$0xff] %vm1729_vm5, %v2692_v55  ;;  %2741 = vst.msk [vmem:[#allocation3 + $0x40] sm:$0xff] %vm1729_vm5, %v2693_v42  ;;  %v2696_v8 = vadd.f32 %v2648_v12, %v2624_v17  ;;  %v3426_v24 = vpop.f32.mrf.mxu1  ;;  %v3492_v22 = vpop.f32.mrf.mxu0  ;;  %v2112_v38 = vld [vmem:[#allocation3 + $0xc8] sm:$0xff]  ;;  %v2651_v39 = vld [vmem:[#allocation3 + $0x70] sm:$0xff] }
 0x232   : > { %2201 = vst.msk [vmem:[#allocation3 + $0x90] sm:$0xff] %vm1729_vm5, %v2153_v9  ;;  %v2592_v60 = vsel %vm2588_vm6, %v2559_v27, %v2575_v4  ;;  %v2608_v28 = vsel %vm2588_vm6, %v2543_v35, %v2559_v27  ;;  %v2156_v20 = vadd.f32 %v3426_v24, %v2108_v19  ;;  %v2560_v50 = vrot.slane %v3492_v22, 1  ;;  %v2650_v45 = vld [vmem:[#allocation3 + $0x68] sm:$0xff]  ;;  %v2111_v55 = vld [vmem:[#allocation3 + $0xc0] sm:$0xff]  ;;  %v2821_v24 = vld [vmem:[%s4856_s22 + $0x40] sm:$0xff] }
 0x233   : > { %2879 = vst.msk [vmem:[%s4874_s25 + $0x10] sm:$0xff] %vm1729_vm5, %v2847_v29  ;;  %2880 = vst.msk [vmem:[%s4874_s25 + $0x18] sm:$0xff] %vm1729_vm5, %v2848_v61  ;;  %v2694_v41 = vadd.f32 %v2646_v21, %v2608_v28  ;;  %v2695_v44 = vadd.f32 %v2647_v36, %v2592_v60  ;;  %v1948_v31 = vpop.f32.mrf.mxu1  ;;  %v2361_v16 = vpop.f32.mrf.mxu0  ;;  %v2654_v53 = vld [vmem:[#allocation3 + $0x88] sm:$0xff]  ;;  %v2114_v61 = vld [vmem:[#allocation3 + $0xd8] sm:$0xff] }
 0x234   : > { %2744 = vst.msk [vmem:[#allocation3 + $0x58] sm:$0xff] %vm1729_vm5, %v2696_v8  ;;  %v2785_v26 = vld [vmem:[#allocation3 + $0x30] sm:$0xff]  ;;  %2204 = vst.msk [vmem:[#allocation3 + $0xa8] sm:$0xff] %vm1729_vm5, %v2156_v20  ;;  %v2155_v58 = vadd.f32 %v2107_v14, %v1948_v31  ;;  %v2544_v62 = vrot.slane %v2361_v16, 1 }
 0x235   : > { %v2849_v13 = vmul.f32 %v2817_v43, %v2785_v26  ;;  %2742 = vst.msk [vmem:[#allocation3 + $0x48] sm:$0xff] %vm1729_vm5, %v2694_v41  ;;  %2743 = vst.msk [vmem:[#allocation3 + $0x50] sm:$0xff] %vm1729_vm5, %v2695_v44  ;;  %v3429_v18 = vpop.f32.mrf.mxu1  ;;  %v3495_v7 = vpop.f32.mrf.mxu0  ;;  %v2652_v43 = vld [vmem:[#allocation3 + $0x78] sm:$0xff]  ;;  %v2653_v60 = vld [vmem:[#allocation3 + $0x80] sm:$0xff] }
 0x236   : > { %2203 = vst.msk [vmem:[#allocation3 + $0xa0] sm:$0xff] %vm1729_vm5, %v2155_v58  ;;  %v2609_v54 = vsel %vm2588_vm6, %v2544_v62, %v2560_v50  ;;  %v2158_v32 = vadd.f32 %v3429_v18, %v2110_v49  ;;  %v2545_v46 = vrot.slane %v3495_v7, 1  ;;  %v2113_v41 = vld [vmem:[#allocation3 + $0xd0] sm:$0xff]  ;;  %v2822_v18 = vld [vmem:[%s4856_s22 + $0x48] sm:$0xff] }
 0x237   : > { %2881 = vst.msk [vmem:[%s4874_s25 + $0x20] sm:$0xff] %vm1729_vm5, %v2849_v13  ;;  %v2697_v34 = vadd.f32 %v2649_v1, %v2609_v54  ;;  %v1958_v37 = vpop.f32.mrf.mxu1  ;;  %v2371_v40 = vpop.f32.mrf.mxu0 }
 0x238   : > { %v2786_v51 = vld [vmem:[#allocation3 + $0x38] sm:$0xff]  ;;  %2206 = vst.msk [vmem:[#allocation3 + $0xb8] sm:$0xff] %vm1729_vm5, %v2158_v32  ;;  %v2157_v10 = vadd.f32 %v2109_v5, %v1958_v37  ;;  %v2576_v63 = vrot.slane %v2371_v40, 1  ;;  %v2115_v32 = vld [vmem:[#allocation3 + $0xe0] sm:$0xff] }
 0x239   : > { %v2850_v3 = vmul.f32 %v2818_v23, %v2786_v51  ;;  %2745 = vst.msk [vmem:[#allocation3 + $0x60] sm:$0xff] %vm1729_vm5, %v2697_v34  ;;  %v3432_v2 = vpop.f32.mrf.mxu1  ;;  %v3498_v35 = vpop.f32.mrf.mxu0  ;;  %v2655_v7 = vld [vmem:[#allocation3 + $0x90] sm:$0xff] }
 0x23a   : > { %2205 = vst.msk [vmem:[#allocation3 + $0xb0] sm:$0xff] %vm1729_vm5, %v2157_v10  ;;  %v2593_v59 = vsel %vm2588_vm6, %v2560_v50, %v2576_v63  ;;  %v2625_v33 = vsel %vm2588_vm6, %v2576_v63, %v2544_v62  ;;  %v2160_v57 = vadd.f32 %v3432_v2, %v2112_v38  ;;  %v2577_v48 = vrot.slane %v3498_v35, 1  ;;  %v2116_v62 = vld [vmem:[#allocation3 + $0xe8] sm:$0xff]  ;;  %v2823_v10 = vld [vmem:[%s4856_s22 + $0x50] sm:$0xff] }
 0x23b   : > { %2882 = vst.msk [vmem:[%s4874_s25 + $0x28] sm:$0xff] %vm1729_vm5, %v2850_v3  ;;  %v2698_v11 = vadd.f32 %v2650_v45, %v2593_v59  ;;  %v2699_v52 = vadd.f32 %v2651_v39, %v2625_v33  ;;  %v1968_v4 = vpop.f32.mrf.mxu1  ;;  %v2381_v42 = vpop.f32.mrf.mxu0  ;;  %v2824_v2 = vld [vmem:[%s4856_s22 + $0x58] sm:$0xff] }
 0x23c   : > { %v2787_v0 = vld [vmem:[#allocation3 + $0x48] sm:$0xff]  ;;  %v2788_v25 = vld [vmem:[#allocation3 + $0x50] sm:$0xff]  ;;  %2208 = vst.msk [vmem:[#allocation3 + $0xc8] sm:$0xff] %vm1729_vm5, %v2160_v57  ;;  %v2626_v6 = vsel %vm2588_vm6, %v2577_v48, %v2545_v46  ;;  %v2159_v15 = vadd.f32 %v2111_v55, %v1968_v4  ;;  %v2561_v17 = vrot.slane %v2381_v42, 1 }
 0x23d   : > { %v2851_v12 = vmul.f32 %v2819_v47, %v2787_v0  ;;  %v2852_v9 = vmul.f32 %v2820_v56, %v2788_v25  ;;  %2746 = vst.msk [vmem:[#allocation3 + $0x68] sm:$0xff] %vm1729_vm5, %v2698_v11  ;;  %2747 = vst.msk [vmem:[#allocation3 + $0x70] sm:$0xff] %vm1729_vm5, %v2699_v52  ;;  %v2702_v27 = vadd.f32 %v2654_v53, %v2626_v6  ;;  %v3435_v29 = vpop.f32.mrf.mxu1  ;;  %v3501_v8 = vpop.f32.mrf.mxu0  ;;  %v2118_v47 = vld [vmem:[#allocation3 + $0xf8] sm:$0xff]  ;;  %v2657_v59 = vld [vmem:[#allocation3 + $0xa0] sm:$0xff] }
 0x23e   : > { %2207 = vst.msk [vmem:[#allocation3 + $0xc0] sm:$0xff] %vm1729_vm5, %v2159_v15  ;;  %v2594_v19 = vsel %vm2588_vm6, %v2561_v17, %v2577_v48  ;;  %v2610_v22 = vsel %vm2588_vm6, %v2545_v46, %v2561_v17  ;;  %v2162_v28 = vadd.f32 %v3435_v29, %v2114_v61  ;;  %v2562_v14 = vrot.slane %v3501_v8, 1  ;;  %v2656_v56 = vld [vmem:[#allocation3 + $0x98] sm:$0xff]  ;;  %v2117_v11 = vld [vmem:[#allocation3 + $0xf0] sm:$0xff] }
 0x23f   : > { %2883 = vst.msk [vmem:[%s4874_s25 + $0x30] sm:$0xff] %vm1729_vm5, %v2851_v12  ;;  %2884 = vst.msk [vmem:[%s4874_s25 + $0x38] sm:$0xff] %vm1729_vm5, %v2852_v9  ;;  %v2700_v21 = vadd.f32 %v2652_v43, %v2610_v22  ;;  %v2701_v36 = vadd.f32 %v2653_v60, %v2594_v19  ;;  %v1978_v20 = vpop.f32.mrf.mxu1  ;;  %v2391_v44 = vpop.f32.mrf.mxu0  ;;  %v2660_v0 = vld [vmem:[#allocation3 + $0xb8] sm:$0xff]  ;;  %v2120_v9 = vld [vmem:[#allocation3 + $0x108] sm:$0xff] }
 0x240   : > { %2750 = vst.msk [vmem:[#allocation3 + $0x88] sm:$0xff] %vm1729_vm5, %v2702_v27  ;;  %v2789_v31 = vld [vmem:[#allocation3 + $0x60] sm:$0xff]  ;;  %2210 = vst.msk [vmem:[#allocation3 + $0xd8] sm:$0xff] %vm1729_vm5, %v2162_v28  ;;  %v2161_v16 = vadd.f32 %v2113_v41, %v1978_v20  ;;  %v2546_v26 = vrot.slane %v2391_v44, 1  ;;  %v2825_v29 = vld [vmem:[%s4856_s22 + $0x60] sm:$0xff] }
 0x241   : > { %v2853_v50 = vmul.f32 %v2821_v24, %v2789_v31  ;;  %2748 = vst.msk [vmem:[#allocation3 + $0x78] sm:$0xff] %vm1729_vm5, %v2700_v21  ;;  %2749 = vst.msk [vmem:[#allocation3 + $0x80] sm:$0xff] %vm1729_vm5, %v2701_v36  ;;  %v3438_v58 = vpop.f32.mrf.mxu1  ;;  %v3504_v13 = vpop.f32.mrf.mxu0  ;;  %v2658_v24 = vld [vmem:[#allocation3 + $0xa8] sm:$0xff]  ;;  %v2659_v19 = vld [vmem:[#allocation3 + $0xb0] sm:$0xff] }
 0x242   : > { %2209 = vst.msk [vmem:[#allocation3 + $0xd0] sm:$0xff] %vm1729_vm5, %v2161_v16  ;;  %v2611_v49 = vsel %vm2588_vm6, %v2546_v26, %v2562_v14  ;;  %v2164_v23 = vadd.f32 %v3438_v58, %v2116_v62  ;;  %v2547_v63 = vrot.slane %v3504_v13, 1  ;;  %v2119_v21 = vld [vmem:[#allocation3 + $0x100] sm:$0xff]  ;;  %v2826_v58 = vld [vmem:[%s4856_s22 + $0x68] sm:$0xff] }
 0x243   : > { %2885 = vst.msk [vmem:[%s4874_s25 + $0x40] sm:$0xff] %vm1729_vm5, %v2853_v50  ;;  %v2703_v54 = vadd.f32 %v2655_v7, %v2611_v49  ;;  %v1988_v1 = vpop.f32.mrf.mxu1  ;;  %v2401_v34 = vpop.f32.mrf.mxu0 }
 0x244   : > { %v2790_v37 = vld [vmem:[#allocation3 + $0x68] sm:$0xff]  ;;  %2212 = vst.msk [vmem:[#allocation3 + $0xe8] sm:$0xff] %vm1729_vm5, %v2164_v23  ;;  %v2163_v5 = vadd.f32 %v2115_v32, %v1988_v1  ;;  %v2578_v40 = vrot.slane %v2401_v34, 1  ;;  %v2121_v23 = vld [vmem:[#allocation3 + $0x110] sm:$0xff] }
 0x245   : > { %v2854_v51 = vmul.f32 %v2822_v18, %v2790_v37  ;;  %2751 = vst.msk [vmem:[#allocation3 + $0x90] sm:$0xff] %vm1729_vm5, %v2703_v54  ;;  %v3441_v3 = vpop.f32.mrf.mxu1  ;;  %v3507_v46 = vpop.f32.mrf.mxu0  ;;  %v2661_v13 = vld [vmem:[#allocation3 + $0xc0] sm:$0xff] }
 0x246   : > { %2211 = vst.msk [vmem:[#allocation3 + $0xe0] sm:$0xff] %vm1729_vm5, %v2163_v5  ;;  %v2595_v38 = vsel %vm2588_vm6, %v2562_v14, %v2578_v40  ;;  %v2627_v35 = vsel %vm2588_vm6, %v2578_v40, %v2546_v26  ;;  %v2166_v33 = vadd.f32 %v3441_v3, %v2118_v47  ;;  %v2579_v45 = vrot.slane %v3507_v46, 1  ;;  %v2122_v26 = vld [vmem:[#allocation3 + $0x118] sm:$0xff]  ;;  %v2827_v5 = vld [vmem:[%s4856_s22 + $0x70] sm:$0xff]  ;;  %v2828_v3 = vld [vmem:[%s4856_s22 + $0x78] sm:$0xff] }
 0x247   : > { %2886 = vst.msk [vmem:[%s4874_s25 + $0x48] sm:$0xff] %vm1729_vm5, %v2854_v51  ;;  %v2704_v39 = vadd.f32 %v2656_v56, %v2595_v38  ;;  %v2705_v57 = vadd.f32 %v2657_v59, %v2627_v35  ;;  %v1998_v48 = vpop.f32.mrf.mxu1  ;;  %v2411_v52 = vpop.f32.mrf.mxu0 }
 0x248   : > { %v2791_v4 = vld [vmem:[#allocation3 + $0x78] sm:$0xff]  ;;  %v2792_v55 = vld [vmem:[#allocation3 + $0x80] sm:$0xff]  ;;  %2214 = vst.msk [vmem:[#allocation3 + $0xf8] sm:$0xff] %vm1729_vm5, %v2166_v33  ;;  %v2628_v42 = vsel %vm2588_vm6, %v2579_v45, %v2547_v63  ;;  %v2165_v25 = vadd.f32 %v2117_v11, %v1998_v48  ;;  %v2563_v6 = vrot.slane %v2411_v52, 1 }
 0x249   : > { %v2855_v53 = vmul.f32 %v2823_v10, %v2791_v4  ;;  %v2856_v15 = vmul.f32 %v2824_v2, %v2792_v55  ;;  %2752 = vst.msk [vmem:[#allocation3 + $0x98] sm:$0xff] %vm1729_vm5, %v2704_v39  ;;  %2753 = vst.msk [vmem:[#allocation3 + $0xa0] sm:$0xff] %vm1729_vm5, %v2705_v57  ;;  %v2708_v17 = vadd.f32 %v2660_v0, %v2628_v42  ;;  %v3444_v12 = vpop.f32.mrf.mxu1  ;;  %v3510_v27 = vpop.f32.mrf.mxu0  ;;  %v2124_v10 = vld [vmem:[#allocation3 + $0x128] sm:$0xff]  ;;  %v2663_v38 = vld [vmem:[#allocation3 + $0xd0] sm:$0xff] }
 0x24a   : > { %2213 = vst.msk [vmem:[#allocation3 + $0xf0] sm:$0xff] %vm1729_vm5, %v2165_v25  ;;  %v2596_v61 = vsel %vm2588_vm6, %v2563_v6, %v2579_v45  ;;  %v2612_v8 = vsel %vm2588_vm6, %v2547_v63, %v2563_v6  ;;  %v2168_v22 = vadd.f32 %v3444_v12, %v2120_v9  ;;  %v2564_v41 = vrot.slane %v3510_v27, 1  ;;  %v2662_v2 = vld [vmem:[#allocation3 + $0xc8] sm:$0xff]  ;;  %v2123_v39 = vld [vmem:[#allocation3 + $0x120] sm:$0xff]  ;;  %v2829_v12 = vld [vmem:[%s4856_s22 + $0x80] sm:$0xff] }
 0x24b   : > { %2887 = vst.msk [vmem:[%s4874_s25 + $0x50] sm:$0xff] %vm1729_vm5, %v2855_v53  ;;  %2888 = vst.msk [vmem:[%s4874_s25 + $0x58] sm:$0xff] %vm1729_vm5, %v2856_v15  ;;  %v2706_v43 = vadd.f32 %v2658_v24, %v2612_v8  ;;  %v2707_v60 = vadd.f32 %v2659_v19, %v2596_v61  ;;  %v2008_v28 = vpop.f32.mrf.mxu1  ;;  %v2421_v36 = vpop.f32.mrf.mxu0  ;;  %v2666_v4 = vld [vmem:[#allocation3 + $0xe8] sm:$0xff]  ;;  %v2126_v15 = vld [vmem:[#allocation3 + $0x138] sm:$0xff] }
 0x24c   : > { %2756 = vst.msk [vmem:[#allocation3 + $0xb8] sm:$0xff] %vm1729_vm5, %v2708_v17  ;;  %v2793_v20 = vld [vmem:[#allocation3 + $0x90] sm:$0xff]  ;;  %2216 = vst.msk [vmem:[#allocation3 + $0x108] sm:$0xff] %vm1729_vm5, %v2168_v22  ;;  %v2167_v44 = vadd.f32 %v2119_v21, %v2008_v28  ;;  %v2548_v31 = vrot.slane %v2421_v36, 1 }
 0x24d   : > { %v2857_v14 = vmul.f32 %v2825_v29, %v2793_v20  ;;  %2754 = vst.msk [vmem:[#allocation3 + $0xa8] sm:$0xff] %vm1729_vm5, %v2706_v43  ;;  %2755 = vst.msk [vmem:[#allocation3 + $0xb0] sm:$0xff] %vm1729_vm5, %v2707_v60  ;;  %v3447_v16 = vpop.f32.mrf.mxu1  ;;  %v3513_v50 = vpop.f32.mrf.mxu0  ;;  %v2664_v29 = vld [vmem:[#allocation3 + $0xd8] sm:$0xff]  ;;  %v2665_v61 = vld [vmem:[#allocation3 + $0xe0] sm:$0xff] }
 0x24e   : > { %2215 = vst.msk [vmem:[#allocation3 + $0x100] sm:$0xff] %vm1729_vm5, %v2167_v44  ;;  %v2613_v62 = vsel %vm2588_vm6, %v2548_v31, %v2564_v41  ;;  %v2170_v18 = vadd.f32 %v3447_v16, %v2122_v26  ;;  %v2549_v40 = vrot.slane %v3513_v50, 1  ;;  %v2125_v43 = vld [vmem:[#allocation3 + $0x130] sm:$0xff]  ;;  %v2830_v16 = vld [vmem:[%s4856_s22 + $0x88] sm:$0xff] }
 0x24f   : > { %2889 = vst.msk [vmem:[%s4874_s25 + $0x60] sm:$0xff] %vm1729_vm5, %v2857_v14  ;;  %v2709_v49 = vadd.f32 %v2661_v13, %v2613_v62  ;;  %v2018_v7 = vpop.f32.mrf.mxu1  ;;  %v2431_v54 = vpop.f32.mrf.mxu0 }
 0x250   : > { %v2794_v1 = vld [vmem:[#allocation3 + $0x98] sm:$0xff]  ;;  %2218 = vst.msk [vmem:[#allocation3 + $0x118] sm:$0xff] %vm1729_vm5, %v2170_v18  ;;  %v2169_v32 = vadd.f32 %v2121_v23, %v2018_v7  ;;  %v2580_v34 = vrot.slane %v2431_v54, 1  ;;  %v2127_v18 = vld [vmem:[#allocation3 + $0x140] sm:$0xff] }
 0x251   : > { %v2858_v37 = vmul.f32 %v2826_v58, %v2794_v1  ;;  %2757 = vst.msk [vmem:[#allocation3 + $0xc0] sm:$0xff] %vm1729_vm5, %v2709_v49  ;;  %v3450_v51 = vpop.f32.mrf.mxu1  ;;  %v3516_v63 = vpop.f32.mrf.mxu0  ;;  %v2667_v50 = vld [vmem:[#allocation3 + $0xf0] sm:$0xff] }
 0x252   : > { %2217 = vst.msk [vmem:[#allocation3 + $0x110] sm:$0xff] %vm1729_vm5, %v2169_v32  ;;  %v2597_v47 = vsel %vm2588_vm6, %v2564_v41, %v2580_v34  ;;  %v2629_v46 = vsel %vm2588_vm6, %v2580_v34, %v2548_v31  ;;  %v2172_v35 = vadd.f32 %v3450_v51, %v2124_v10  ;;  %v2581_v56 = vrot.slane %v3516_v63, 1  ;;  %v2128_v31 = vld [vmem:[#allocation3 + $0x148] sm:$0xff]  ;;  %v2831_v32 = vld [vmem:[%s4856_s22 + $0x90] sm:$0xff] }
 0x253   : > { %2890 = vst.msk [vmem:[%s4874_s25 + $0x68] sm:$0xff] %vm1729_vm5, %v2858_v37  ;;  %v2710_v59 = vadd.f32 %v2662_v2, %v2597_v47  ;;  %v2711_v33 = vadd.f32 %v2663_v38, %v2629_v46  ;;  %v2028_v45 = vpop.f32.mrf.mxu1  ;;  %v2441_v57 = vpop.f32.mrf.mxu0  ;;  %v2832_v51 = vld [vmem:[%s4856_s22 + $0x98] sm:$0xff] }
 0x254   : > { %v2795_v48 = vld [vmem:[#allocation3 + $0xa8] sm:$0xff]  ;;  %v2796_v11 = vld [vmem:[#allocation3 + $0xb0] sm:$0xff]  ;;  %2220 = vst.msk [vmem:[#allocation3 + $0x128] sm:$0xff] %vm1729_vm5, %v2172_v35  ;;  %v2630_v52 = vsel %vm2588_vm6, %v2581_v56, %v2549_v40  ;;  %v2171_v55 = vadd.f32 %v2123_v39, %v2028_v45  ;;  %v2565_v42 = vrot.slane %v2441_v57, 1 }
 0x255   : > { %v2859_v0 = vmul.f32 %v2827_v5, %v2795_v48  ;;  %v2860_v25 = vmul.f32 %v2828_v3, %v2796_v11  ;;  %2758 = vst.msk [vmem:[#allocation3 + $0xc8] sm:$0xff] %vm1729_vm5, %v2710_v59  ;;  %2759 = vst.msk [vmem:[#allocation3 + $0xd0] sm:$0xff] %vm1729_vm5, %v2711_v33  ;;  %v2714_v6 = vadd.f32 %v2666_v4, %v2630_v52  ;;  %v3453_v53 = vpop.f32.mrf.mxu1  ;;  %v3519_v17 = vpop.f32.mrf.mxu0  ;;  %v2130_v5 = vld [vmem:[#allocation3 + $0x158] sm:$0xff]  ;;  %v2669_v47 = vld [vmem:[#allocation3 + $0x100] sm:$0xff] }
 0x256   : > { %2219 = vst.msk [vmem:[#allocation3 + $0x120] sm:$0xff] %vm1729_vm5, %v2171_v55  ;;  %v2598_v9 = vsel %vm2588_vm6, %v2565_v42, %v2581_v56  ;;  %v2614_v27 = vsel %vm2588_vm6, %v2549_v40, %v2565_v42  ;;  %v2174_v8 = vadd.f32 %v3453_v53, %v2126_v15  ;;  %v2566_v21 = vrot.slane %v3519_v17, 1  ;;  %v2668_v3 = vld [vmem:[#allocation3 + $0xf8] sm:$0xff]  ;;  %v2129_v59 = vld [vmem:[#allocation3 + $0x150] sm:$0xff] }
 0x257   : > { %2891 = vst.msk [vmem:[%s4874_s25 + $0x70] sm:$0xff] %vm1729_vm5, %v2859_v0  ;;  %2892 = vst.msk [vmem:[%s4874_s25 + $0x78] sm:$0xff] %vm1729_vm5, %v2860_v25  ;;  %v2712_v24 = vadd.f32 %v2664_v29, %v2614_v27  ;;  %v2713_v19 = vadd.f32 %v2665_v61, %v2598_v9  ;;  %v2038_v22 = vpop.f32.mrf.mxu1  ;;  %v2451_v60 = vpop.f32.mrf.mxu0  ;;  %v2672_v48 = vld [vmem:[#allocation3 + $0x118] sm:$0xff]  ;;  %v2132_v25 = vld [vmem:[#allocation3 + $0x168] sm:$0xff] }
 0x258   : > { %2762 = vst.msk [vmem:[#allocation3 + $0xe8] sm:$0xff] %vm1729_vm5, %v2714_v6  ;;  %v2797_v28 = vld [vmem:[#allocation3 + $0xc0] sm:$0xff]  ;;  %2222 = vst.msk [vmem:[#allocation3 + $0x138] sm:$0xff] %vm1729_vm5, %v2174_v8  ;;  %v2173_v36 = vadd.f32 %v2125_v43, %v2038_v22  ;;  %v2550_v20 = vrot.slane %v2451_v60, 1  ;;  %v2833_v53 = vld [vmem:[%s4856_s22 + $0xa0] sm:$0xff] }
 0x259   : > { %v2861_v41 = vmul.f32 %v2829_v12, %v2797_v28  ;;  %2760 = vst.msk [vmem:[#allocation3 + $0xd8] sm:$0xff] %vm1729_vm5, %v2712_v24  ;;  %2761 = vst.msk [vmem:[#allocation3 + $0xe0] sm:$0xff] %vm1729_vm5, %v2713_v19  ;;  %v3456_v44 = vpop.f32.mrf.mxu1  ;;  %v3522_v14 = vpop.f32.mrf.mxu0  ;;  %v2670_v12 = vld [vmem:[#allocation3 + $0x108] sm:$0xff]  ;;  %v2671_v9 = vld [vmem:[#allocation3 + $0x110] sm:$0xff] }
 0x25a   : > { %2221 = vst.msk [vmem:[#allocation3 + $0x130] sm:$0xff] %vm1729_vm5, %v2173_v36  ;;  %v2615_v26 = vsel %vm2588_vm6, %v2550_v20, %v2566_v21  ;;  %v2176_v58 = vadd.f32 %v3456_v44, %v2128_v31  ;;  %v2551_v34 = vrot.slane %v3522_v14, 1  ;;  %v2131_v24 = vld [vmem:[#allocation3 + $0x160] sm:$0xff]  ;;  %v2834_v44 = vld [vmem:[%s4856_s22 + $0xa8] sm:$0xff] }
 0x25b   : > { %2893 = vst.msk [vmem:[%s4874_s25 + $0x80] sm:$0xff] %vm1729_vm5, %v2861_v41  ;;  %v2715_v62 = vadd.f32 %v2667_v50, %v2615_v26  ;;  %v2048_v13 = vpop.f32.mrf.mxu1  ;;  %v2461_v49 = vpop.f32.mrf.mxu0 }
 0x25c   : > { %v2798_v7 = vld [vmem:[#allocation3 + $0xc8] sm:$0xff]  ;;  %2224 = vst.msk [vmem:[#allocation3 + $0x148] sm:$0xff] %vm1729_vm5, %v2176_v58  ;;  %v2175_v23 = vadd.f32 %v2127_v18, %v2048_v13  ;;  %v2582_v54 = vrot.slane %v2461_v49, 1  ;;  %v2133_v58 = vld [vmem:[#allocation3 + $0x170] sm:$0xff] }
 0x25d   : > { %v2862_v1 = vmul.f32 %v2830_v16, %v2798_v7  ;;  %2763 = vst.msk [vmem:[#allocation3 + $0xf0] sm:$0xff] %vm1729_vm5, %v2715_v62  ;;  %v3459_v37 = vpop.f32.mrf.mxu1  ;;  %v3525_v40 = vpop.f32.mrf.mxu0  ;;  %v2673_v14 = vld [vmem:[#allocation3 + $0x120] sm:$0xff] }
 0x25e   : > { %2223 = vst.msk [vmem:[#allocation3 + $0x140] sm:$0xff] %vm1729_vm5, %v2175_v23  ;;  %v2599_v10 = vsel %vm2588_vm6, %v2566_v21, %v2582_v54  ;;  %v2631_v63 = vsel %vm2588_vm6, %v2582_v54, %v2550_v20  ;;  %v2178_v46 = vadd.f32 %v3459_v37, %v2130_v5  ;;  %v2583_v2 = vrot.slane %v3525_v40, 1  ;;  %v2134_v20 = vld [vmem:[#allocation3 + $0x178] sm:$0xff]  ;;  %v2835_v23 = vld [vmem:[%s4856_s22 + $0xb0] sm:$0xff]  ;;  %v2674_v5 = vld [vmem:[#allocation3 + $0x128] sm:$0xff] }
 0x25f   : > { %2894 = vst.msk [vmem:[%s4874_s25 + $0x88] sm:$0xff] %vm1729_vm5, %v2862_v1  ;;  %v2716_v38 = vadd.f32 %v2668_v3, %v2599_v10  ;;  %v2717_v35 = vadd.f32 %v2669_v47, %v2631_v63  ;;  %v2058_v56 = vpop.f32.mrf.mxu1  ;;  %v2471_v33 = vpop.f32.mrf.mxu0  ;;  %v2836_v1 = vld [vmem:[%s4856_s22 + $0xb8] sm:$0xff] }
 0x260   : > { %v2799_v45 = vld [vmem:[#allocation3 + $0xd8] sm:$0xff]  ;;  %v2800_v39 = vld [vmem:[#allocation3 + $0xe0] sm:$0xff]  ;;  %2226 = vst.msk [vmem:[#allocation3 + $0x158] sm:$0xff] %vm1729_vm5, %v2178_v46  ;;  %v2632_v57 = vsel %vm2588_vm6, %v2583_v2, %v2551_v34  ;;  %v2177_v11 = vadd.f32 %v2129_v59, %v2058_v56  ;;  %v2567_v52 = vrot.slane %v2471_v33, 1 }
 0x261   : > { %v2863_v4 = vmul.f32 %v2831_v32, %v2799_v45  ;;  %v2864_v55 = vmul.f32 %v2832_v51, %v2800_v39  ;;  %2764 = vst.msk [vmem:[#allocation3 + $0xf8] sm:$0xff] %vm1729_vm5, %v2716_v38  ;;  %2765 = vst.msk [vmem:[#allocation3 + $0x100] sm:$0xff] %vm1729_vm5, %v2717_v35  ;;  %v2720_v42 = vadd.f32 %v2672_v48, %v2632_v57  ;;  %v3462_v0 = vpop.f32.mrf.mxu1  ;;  %v3528_v6 = vpop.f32.mrf.mxu0  ;;  %v2675_v40 = vld [vmem:[#allocation3 + $0x130] sm:$0xff] }
 0x262   : > { %2225 = vst.msk [vmem:[#allocation3 + $0x150] sm:$0xff] %vm1729_vm5, %v2177_v11  ;;  %v2600_v15 = vsel %vm2588_vm6, %v2567_v52, %v2583_v2  ;;  %v2616_v17 = vsel %vm2588_vm6, %v2551_v34, %v2567_v52  ;;  %v2180_v27 = vadd.f32 %v3462_v0, %v2132_v25  ;;  %v2568_v43 = vrot.slane %v3528_v6, 1  ;;  %v2837_v39 = vld [vmem:[%s4856_s22 + $0xc0] sm:$0xff]  ;;  %v2676_v11 = vld [vmem:[#allocation3 + $0x138] sm:$0xff] }
 0x263   : > { %2895 = vst.msk [vmem:[%s4874_s25 + $0x90] sm:$0xff] %vm1729_vm5, %v2863_v4  ;;  %2896 = vst.msk [vmem:[%s4874_s25 + $0x98] sm:$0xff] %vm1729_vm5, %v2864_v55  ;;  %v2718_v29 = vadd.f32 %v2670_v12, %v2616_v17  ;;  %v2719_v61 = vadd.f32 %v2671_v9, %v2600_v15  ;;  %v2068_v8 = vpop.f32.mrf.mxu1  ;;  %v2481_v19 = vpop.f32.mrf.mxu0  ;;  %v2678_v38 = vld [vmem:[#allocation3 + $0x148] sm:$0xff]  ;;  %v2838_v17 = vld [vmem:[%s4856_s22 + $0xc8] sm:$0xff] }
 0x264   : > { %2768 = vst.msk [vmem:[#allocation3 + $0x118] sm:$0xff] %vm1729_vm5, %v2720_v42  ;;  %v2801_v22 = vld [vmem:[#allocation3 + $0xf0] sm:$0xff]  ;;  %2228 = vst.msk [vmem:[#allocation3 + $0x168] sm:$0xff] %vm1729_vm5, %v2180_v27  ;;  %v2179_v60 = vadd.f32 %v2131_v24, %v2068_v8  ;;  %v2552_v28 = vrot.slane %v2481_v19, 1  ;;  %v2839_v19 = vld [vmem:[%s4856_s22 + $0xd0] sm:$0xff] }
 0x265   : > { %v2865_v21 = vmul.f32 %v2833_v53, %v2801_v22  ;;  %2766 = vst.msk [vmem:[#allocation3 + $0x108] sm:$0xff] %vm1729_vm5, %v2718_v29  ;;  %2767 = vst.msk [vmem:[#allocation3 + $0x110] sm:$0xff] %vm1729_vm5, %v2719_v61  ;;  %v3465_v36 = vpop.f32.mrf.mxu1  ;;  %v3531_v41 = vpop.f32.mrf.mxu0  ;;  %v2677_v52 = vld [vmem:[#allocation3 + $0x140] sm:$0xff] }
 0x266   : > { %2227 = vst.msk [vmem:[#allocation3 + $0x160] sm:$0xff] %vm1729_vm5, %v2179_v60  ;;  %v2617_v31 = vsel %vm2588_vm6, %v2552_v28, %v2568_v43  ;;  %v2182_v16 = vadd.f32 %v3465_v36, %v2134_v20  ;;  %v2553_v32 = vrot.slane %v3531_v41, 1 }
 0x267   : > { %2897 = vst.msk [vmem:[%s4874_s25 + $0xa0] sm:$0xff] %vm1729_vm5, %v2865_v21  ;;  %v2721_v26 = vadd.f32 %v2673_v14, %v2617_v31  ;;  %v2078_v50 = vpop.f32.mrf.mxu1  ;;  %v2491_v62 = vpop.f32.mrf.mxu0  ;;  %v2680_v36 = vld [vmem:[#allocation3 + $0x158] sm:$0xff] }
 0x268   : > { %v2802_v13 = vld [vmem:[#allocation3 + $0xf8] sm:$0xff]  ;;  %2230 = vst.msk [vmem:[#allocation3 + $0x178] sm:$0xff] %vm1729_vm5, %v2182_v16  ;;  %v2181_v18 = vadd.f32 %v2133_v58, %v2078_v50  ;;  %v2584_v49 = vrot.slane %v2491_v62, 1 }
 0x269   : > { %v2866_v7 = vmul.f32 %v2834_v44, %v2802_v13  ;;  %2769 = vst.msk [vmem:[#allocation3 + $0x120] sm:$0xff] %vm1729_vm5, %v2721_v26  ;;  %v3534_v54 = vpop.f32.mrf.mxu0  ;;  %v2679_v9 = vld [vmem:[#allocation3 + $0x150] sm:$0xff] }
 0x26a   : > { %2229 = vst.msk [vmem:[#allocation3 + $0x170] sm:$0xff] %vm1729_vm5, %v2181_v18  ;;  %v2601_v34 = vsel %vm2588_vm6, %v2568_v43, %v2584_v49  ;;  %v2633_v37 = vsel %vm2588_vm6, %v2584_v49, %v2552_v28  ;;  %v2585_v51 = vrot.slane %v3534_v54, 1  ;;  %v2840_v43 = vld [vmem:[%s4856_s22 + $0xd8] sm:$0xff] }
 0x26b   : > { %2898 = vst.msk [vmem:[%s4874_s25 + $0xa8] sm:$0xff] %vm1729_vm5, %v2866_v7  ;;  %v2722_v10 = vadd.f32 %v2674_v5, %v2601_v34  ;;  %v2723_v63 = vadd.f32 %v2675_v40, %v2633_v37  ;;  %v2501_v3 = vpop.f32.mrf.mxu0  ;;  %v2841_v7 = vld [vmem:[%s4856_s22 + $0xe0] sm:$0xff] }
 0x26c   : > { %v2803_v47 = vld [vmem:[#allocation3 + $0x108] sm:$0xff]  ;;  %v2804_v46 = vld [vmem:[#allocation3 + $0x110] sm:$0xff]  ;;  %v2634_v2 = vsel %vm2588_vm6, %v2585_v51, %v2553_v32  ;;  %v2569_v35 = vrot.slane %v2501_v3, 1 }
 0x26d   : > { %v2867_v56 = vmul.f32 %v2835_v23, %v2803_v47  ;;  %v2868_v59 = vmul.f32 %v2836_v1, %v2804_v46  ;;  %2770 = vst.msk [vmem:[#allocation3 + $0x128] sm:$0xff] %vm1729_vm5, %v2722_v10  ;;  %2771 = vst.msk [vmem:[#allocation3 + $0x130] sm:$0xff] %vm1729_vm5, %v2723_v63  ;;  %v2726_v33 = vadd.f32 %v2678_v38, %v2634_v2  ;;  %v3537_v45 = vpop.f32.mrf.mxu0  ;;  %v2681_v20 = vld [vmem:[#allocation3 + $0x160] sm:$0xff]  ;;  %v2682_v1 = vld [vmem:[#allocation3 + $0x168] sm:$0xff] }
 0x26e   : > { %v2602_v57 = vsel %vm2588_vm6, %v2569_v35, %v2585_v51  ;;  %v2618_v48 = vsel %vm2588_vm6, %v2553_v32, %v2569_v35  ;;  %v2570_v25 = vrot.slane %v3537_v45, 1  ;;  %v2843_v63 = vld [vmem:[%s4856_s22 + $0xf0] sm:$0xff]  ;;  %v2844_v3 = vld [vmem:[%s4856_s22 + $0xf8] sm:$0xff] }
 0x26f   : > { %2899 = vst.msk [vmem:[%s4874_s25 + $0xb0] sm:$0xff] %vm1729_vm5, %v2867_v56  ;;  %2900 = vst.msk [vmem:[%s4874_s25 + $0xb8] sm:$0xff] %vm1729_vm5, %v2868_v59  ;;  %v2724_v4 = vadd.f32 %v2676_v11, %v2618_v48  ;;  %v2725_v55 = vadd.f32 %v2677_v52, %v2602_v57  ;;  %v2511_v42 = vpop.f32.mrf.mxu0  ;;  %v2684_v58 = vld [vmem:[#allocation3 + $0x178] sm:$0xff] }
 0x270   : > { %2774 = vst.msk [vmem:[#allocation3 + $0x148] sm:$0xff] %vm1729_vm5, %v2726_v33  ;;  %v2805_v0 = vld [vmem:[#allocation3 + $0x120] sm:$0xff]  ;;  %v2554_v6 = vrot.slane %v2511_v42, 1 }
 0x271   : > { %v2869_v53 = vmul.f32 %v2837_v39, %v2805_v0  ;;  %2772 = vst.msk [vmem:[#allocation3 + $0x138] sm:$0xff] %vm1729_vm5, %v2724_v4  ;;  %2773 = vst.msk [vmem:[#allocation3 + $0x140] sm:$0xff] %vm1729_vm5, %v2725_v55  ;;  %v3540_v15 = vpop.f32.mrf.mxu0  ;;  %v2683_v32 = vld [vmem:[#allocation3 + $0x170] sm:$0xff] }
 0x272   : > { %v2619_v12 = vsel %vm2588_vm6, %v2554_v6, %v2570_v25  ;;  %v2555_v60 = vrot.slane %v3540_v15, 1 }
 0x273   : > { %2901 = vst.msk [vmem:[%s4874_s25 + $0xc0] sm:$0xff] %vm1729_vm5, %v2869_v53  ;;  %v2727_v27 = vadd.f32 %v2679_v9, %v2619_v12  ;;  %v2521_v29 = vpop.f32.mrf.mxu0 }
 0x274   : > { %v2806_v61 = vld [vmem:[#allocation3 + $0x128] sm:$0xff]  ;;  %v2586_v8 = vrot.slane %v2521_v29, 1 }
 0x275   : > { %v2870_v24 = vmul.f32 %v2838_v17, %v2806_v61  ;;  %2775 = vst.msk [vmem:[#allocation3 + $0x150] sm:$0xff] %vm1729_vm5, %v2727_v27  ;;  %v3543_v22 = vpop.f32.mrf.mxu0 }
 0x276   : > { %v2603_v28 = vsel %vm2588_vm6, %v2570_v25, %v2586_v8  ;;  %v2635_v21 = vsel %vm2588_vm6, %v2586_v8, %v2554_v6  ;;  %v2587_v41 = vrot.slane %v3543_v22, 1 }
 0x277   : > { %2902 = vst.msk [vmem:[%s4874_s25 + $0xc8] sm:$0xff] %vm1729_vm5, %v2870_v24  ;;  %v2728_v44 = vadd.f32 %v2680_v36, %v2603_v28  ;;  %v2729_v31 = vadd.f32 %v2681_v20, %v2635_v21  ;;  %v2531_v14 = vpop.f32.mrf.mxu0 }
 0x278   : > { %v2807_v16 = vld [vmem:[#allocation3 + $0x138] sm:$0xff]  ;;  %v2808_v26 = vld [vmem:[#allocation3 + $0x140] sm:$0xff]  ;;  %v2636_v50 = vsel %vm2588_vm6, %v2587_v41, %v2555_v60  ;;  %v2571_v62 = vrot.slane %v2531_v14, 1 }
 0x279   : > { %v2871_v13 = vmul.f32 %v2839_v19, %v2807_v16  ;;  %v2872_v18 = vmul.f32 %v2840_v43, %v2808_v26  ;;  %2776 = vst.msk [vmem:[#allocation3 + $0x158] sm:$0xff] %vm1729_vm5, %v2728_v44  ;;  %2777 = vst.msk [vmem:[#allocation3 + $0x160] sm:$0xff] %vm1729_vm5, %v2729_v31  ;;  %v2732_v49 = vadd.f32 %v2684_v58, %v2636_v50 }
 0x27a   : > { %v2604_v23 = vsel %vm2588_vm6, %v2571_v62, %v2587_v41  ;;  %v2620_v54 = vsel %vm2588_vm6, %v2555_v60, %v2571_v62 }
 0x27b   : > { %2903 = vst.msk [vmem:[%s4874_s25 + $0xd0] sm:$0xff] %vm1729_vm5, %v2871_v13  ;;  %2904 = vst.msk [vmem:[%s4874_s25 + $0xd8] sm:$0xff] %vm1729_vm5, %v2872_v18  ;;  %v2730_v34 = vadd.f32 %v2682_v1, %v2620_v54  ;;  %v2731_v37 = vadd.f32 %v2683_v32, %v2604_v23 }
 0x27c   : > { %2780 = vst.msk [vmem:[#allocation3 + $0x178] sm:$0xff] %vm1729_vm5, %v2732_v49  ;;  %v2809_v5 = vld [vmem:[#allocation3 + $0x150] sm:$0xff] }
 0x27d   : > { %v2873_v40 = vmul.f32 %v2841_v7, %v2809_v5  ;;  %2778 = vst.msk [vmem:[#allocation3 + $0x168] sm:$0xff] %vm1729_vm5, %v2730_v34  ;;  %2779 = vst.msk [vmem:[#allocation3 + $0x170] sm:$0xff] %vm1729_vm5, %v2731_v37 }
 0x27f   : > { %2905 = vst.msk [vmem:[%s4874_s25 + $0xe0] sm:$0xff] %vm1729_vm5, %v2873_v40 }
 0x280   : > { %v2810_v51 = vld [vmem:[#allocation3 + $0x158] sm:$0xff] }
 0x281   : > { %v2874_v10 = vmul.f32 %v2842_v30, %v2810_v51 }
 0x283   : > { %2906 = vst.msk [vmem:[%s4874_s25 + $0xe8] sm:$0xff] %vm1729_vm5, %v2874_v10 }
 0x284   : > { %v2811_v47 = vld [vmem:[#allocation3 + $0x168] sm:$0xff]  ;;  %v2812_v46 = vld [vmem:[#allocation3 + $0x170] sm:$0xff] }
 0x285   : > { %v2875_v2 = vmul.f32 %v2843_v63, %v2811_v47  ;;  %v2876_v38 = vmul.f32 %v2844_v3, %v2812_v46 }
 0x287   : > { %2907 = vst.msk [vmem:[%s4874_s25 + $0xf0] sm:$0xff] %vm1729_vm5, %v2875_v2  ;;  %2908 = vst.msk [vmem:[%s4874_s25 + $0xf8] sm:$0xff] %vm1729_vm5, %v2876_v38 }
 0x288 PF: > { %s14_s15 = sadd.s32 1, %s3632_s15  }
 0x289   : > { %p11_p4 = scmp.ge.s32.totalorder %s14_s15, 4  }
 0x28b   :  { %13 = sbr.rel (!%p11_p4) target bundleno = 1 (0x1), region = 77 }

</bundles_post_ra>
